<compile_context>
chip_gen: v5e
topology: v5e:2x2
jax: 0.10.0
libtpu: 0.0.40
codegen_flags: <defaults>
</compile_context>

<pallas_src>
import functools
import math

import jax
import jax.numpy as jnp
from jax.experimental import pallas as pl
from jax.experimental.pallas import tpu as pltpu

LANES = 128
_COMPILER_PARAMS = pltpu.CompilerParams(dimension_semantics=("arbitrary",))


def _full_spec(shape):
    return pl.BlockSpec(shape, lambda i: (0,) * len(shape))


# ----------------------------------------------------------------------------
# The single fused Pallas kernel: all st blocks + output layer + fc tail.
# ----------------------------------------------------------------------------

def _stgcn_kernel(*refs, BN, T_in, kt, dil, ko, n_blocks):
    """Fused STGCN body.

    Activation rows are ordered (t, b, n); channels live on lanes 0..c-1 of a
    128-lane slab (padded lanes stay exactly 0).  Channel-matching residuals
    are folded into the last conv tap / bias at prepare time.  bd_i is
    kron(I_{T1*B}, S^T) in bf16.
    """
    idx = 0
    a_ref = refs[idx]; idx += 1
    bd_refs = refs[idx:idx + n_blocks]; idx += n_blocks
    blk_refs = [refs[idx + 6 * i: idx + 6 * (i + 1)] for i in range(n_blocks)]
    idx += 6 * n_blocks
    (wg_ref, bg_ref, bns_ref, bno_ref, ws_ref, bs_ref, wf_ref, bf_ref,
     k1_ref, c1_ref, k2_ref, c2_ref, o_ref) = refs[idx:]

    def tconv(x, rows_out, kt_, dil_, w_ref, b_ref):
        # Temporal conv as ONE MXU contraction: the kt_ shifted windows are
        # concatenated on the lane axis (K = kt_*128) against the tap-stacked
        # weight.  Windows are sliced from the f32 value (8-row aligned).
        wins = [x[k * dil_ * BN: k * dil_ * BN + rows_out, :].astype(jnp.bfloat16)
                for k in range(kt_)]
        lhs = wins[0] if kt_ == 1 else jnp.concatenate(wins, axis=1)
        return jnp.dot(lhs, w_ref[...],
                       preferred_element_type=jnp.float32) + b_ref[...]

    h = a_ref[...]                                       # [T_in*BN, 128] f32
    t_cur = T_in
    for i in range(n_blocks):
        w1_ref, b1_ref, thrs_ref, tb_ref, w2_ref, b2_ref = blk_refs[i]
        t1 = t_cur - dil * (kt - 1)
        t2 = t1 - dil * (kt - 1)
        R1, R2 = t1 * BN, t2 * BN

        # Temporal conv 1 (+ folded residual), relu.
        h1 = jnp.maximum(tconv(h, R1, kt, dil, w1_ref, b1_ref), 0.0)

        # Spatio conv: bf16 graph mix, then ONE K=256 dot against the stacked
        # [Theta; Rs] weight (concatenated [mixed | h1] operand), relu.
        h1_bf = h1.astype(jnp.bfloat16)                  # cast once, used twice
        mixed = jnp.dot(bd_refs[i][...], h1_bf,
                        preferred_element_type=jnp.float32)
        sp_lhs = jnp.concatenate([mixed.astype(jnp.bfloat16), h1_bf], axis=1)
        h2 = jnp.maximum(
            jnp.dot(sp_lhs, thrs_ref[...], preferred_element_type=jnp.float32)
            + tb_ref[...], 0.0)

        # Temporal conv 2 (+ folded residual), relu.
        h = jnp.maximum(tconv(h2, R2, kt, dil, w2_ref, b2_ref), 0.0)
        t_cur = t2
        # TODO(synk): F.dropout(x, keep_prob) in StConvBlock is stochastic even
        # in eval (functional default training=True); omitted for determinism.

    # -------------------- output layer --------------------
    # GLU temporal layer (kt=ko, dilation=1): disjoint windows -> one K=ko*128
    # dot; p-half in lanes [0,128), q-half in [128,256); residual folded in.
    yg = tconv(h, BN, ko, 1, wg_ref, bg_ref)             # [BN, 256]
    hg = yg[:, :LANES] * jax.nn.sigmoid(yg[:, LANES:])

    # BatchNorm2d (inference; default running stats folded into scale/offset).
    hb = hg * bns_ref[...] + bno_ref[...]

    # Sigmoid 1x1 temporal layer (kt=1, no residual).
    s = jax.nn.sigmoid(
        jnp.dot(hb.astype(jnp.bfloat16), ws_ref[...],
                preferred_element_type=jnp.float32) + bs_ref[...])

    # Final 1x1 conv down to one channel (lane 0).
    z = jnp.dot(s.astype(jnp.bfloat16), wf_ref[...],
                preferred_element_type=jnp.float32) + bf_ref[...]

    # fc tail: Linear(12,12) -> LeakyReLU(0.01) -> Dropout(eval: id) ->
    # Linear(12,5), batched over B as left-multiplies by kron(I_B, fc_w).
    u = jnp.dot(k1_ref[...], z, preferred_element_type=jnp.float32) + c1_ref[...]
    u = jnp.where(u >= 0, u, 0.01 * u)
    o_ref[...] = jnp.dot(k2_ref[...], u,
                         preferred_element_type=jnp.float32) + c2_ref[...]


def stgcn_fused_pallas(a, bds, prep, config, *, B, BN, T):
    kt, dil, ko = config["kt"], config["dilation"], config["ko"]
    args = [a] + list(bds)
    for bp in prep["blocks"]:
        args += [bp["w1"], bp["b1"], bp["thrs"], bp["tb"], bp["w2"], bp["b2"]]
    op = prep["out"]
    args += [op["wg"], op["bg"], op["bn_scale"], op["bn_offset"], op["ws"],
             op["bs"], op["wf"], op["bf"], op["k1"], op["c1"], op["k2"],
             op["c2"]]
    kernel = functools.partial(
        _stgcn_kernel, BN=BN, T_in=T, kt=kt, dil=dil, ko=ko,
        n_blocks=len(prep["blocks"]))
    # TODO(synk): on v7x a leading 'parallel' grid axis splitting (t,b) row
    # blocks across the two TensorCores becomes worthwhile once B/T grow; at
    # B=2 the work is too small to amortize the split (per review).
    return pl.pallas_call(
        kernel,
        grid=(1,),
        in_specs=[_full_spec(t.shape) for t in args],
        out_specs=_full_spec((5 * B, LANES)),
        out_shape=jax.ShapeDtypeStruct((5 * B, LANES), jnp.float32),
        compiler_params=_COMPILER_PARAMS,
    )(*args)


# ----------------------------------------------------------------------------
# One-time weight preparation (hoisted out of the forward pass).
# ----------------------------------------------------------------------------

def _pad2d(a, rows, cols):
    a = jnp.asarray(a, jnp.float32)
    out = jnp.zeros((rows, cols), jnp.float32)
    return out.at[:a.shape[0], :a.shape[1]].set(a)


def _residual_proj(p, c_in, c_out):
    """Channel-matching residual as a [c_in, c_out] projection + bias."""
    if c_in > c_out:                       # modify 1x1 conv
        return jnp.transpose(p["modify_w"][:, :, 0, 0]), p["modify_b"]
    # c_in <= c_out: identity embedding (zero-pad extra channels).
    return jnp.eye(c_in, c_out, dtype=jnp.float32), jnp.zeros((c_out,), jnp.float32)


def _prep_temporal_relu(p, kt, c_in, c_out):
    """Tap-stacked conv weight [kt*128, 128] bf16, residual folded into last tap."""
    rproj, rbias = _residual_proj(p, c_in, c_out)
    taps = []
    for k in range(kt):
        wk = jnp.transpose(p["conv_w"][:, :, k, 0])               # [c_in, c_out]
        if k == kt - 1:
            wk = wk + rproj
        taps.append(_pad2d(wk, LANES, LANES))
    w = jnp.concatenate(taps, axis=0).astype(jnp.bfloat16)        # [kt*128, 128]
    b = _pad2d((p["conv_b"] + rbias).reshape(1, c_out), 1, LANES)
    return w, b


def _prep_glu(p, kt, c_in, c_out):
    """Tap-stacked GLU weight [kt*128, 256]: p-half lanes [0,128), q-half [128,256)."""
    rproj, rbias = _residual_proj(p, c_in, c_out)
    taps = []
    for k in range(kt):
        wk = jnp.transpose(p["glu_w"][:, :, k, 0])                # [c_in, 2*c_out]
        wp = wk[:, :c_out] + (rproj if k == kt - 1 else 0.0)
        wq = wk[:, c_out:]
        tap = jnp.zeros((LANES, 2 * LANES), jnp.float32)
        tap = tap.at[:c_in, :c_out].set(wp)
        tap = tap.at[:c_in, LANES:LANES + c_out].set(wq)
        taps.append(tap)
    w = jnp.concatenate(taps, axis=0).astype(jnp.bfloat16)        # [kt*128, 256]
    b = jnp.zeros((1, 2 * LANES), jnp.float32)
    b = b.at[0, :c_out].set(p["glu_b"][:c_out] + rbias)
    b = b.at[0, LANES:LANES + c_out].set(p["glu_b"][c_out:])
    return w, b


def _prep_spatio(p, c_in, c_out):
    """Stacked [Theta; Rs] weight [256, 128] bf16 for the K=256 spatio dot."""
    rproj, rbias = _residual_proj(p, c_in, c_out)
    theta = _pad2d(jnp.transpose(p["theta_w"]), LANES, LANES)
    rs = _pad2d(rproj, LANES, LANES)
    thrs = jnp.concatenate([theta, rs], axis=0).astype(jnp.bfloat16)
    tb = _pad2d((p["theta_b"] + rbias).reshape(1, c_out), 1, LANES)
    return thrs, tb


def prepare_stgcn_params(params, config, batch):
    kt = config["kt"]
    prep = {"weight_key": params["weight_key"],
            "weight_query": params["weight_query"],
            "gru": params["gru"],
            "blocks": []}
    for bp, (c_si, c_t, c_oo) in zip(params["st_blocks"], config["blocks"]):
        w1, b1 = _prep_temporal_relu(bp["tc1"], kt, c_si, c_t)
        thrs, tb = _prep_spatio(bp["sc"], c_t, c_t)
        w2, b2 = _prep_temporal_relu(bp["tc2"], kt, c_t, c_oo)
        prep["blocks"].append({"w1": w1, "b1": b1, "thrs": thrs, "tb": tb,
                               "w2": w2, "b2": b2})

    op = params["out"]
    c = config["blocks"][-1][-1]
    ko = config["ko"]
    wg, bg = _prep_glu(op["glu_layer"], ko, c, c)
    # TODO(synk): BatchNorm2d uses default running stats (mean=0, var=1).
    bn_scale = _pad2d((op["bn_w"] / jnp.sqrt(1.0 + 1e-5)).reshape(1, c), 1, LANES)
    bn_offset = _pad2d(op["bn_b"].reshape(1, c), 1, LANES)
    ws = _pad2d(jnp.transpose(op["sig_layer"]["conv_w"][:, :, 0, 0]),
                LANES, LANES).astype(jnp.bfloat16)
    bs = _pad2d(op["sig_layer"]["conv_b"].reshape(1, c), 1, LANES)
    wf = _pad2d(jnp.transpose(op["final_w"][:, :, 0, 0]),
                LANES, LANES).astype(jnp.bfloat16)
    bf = _pad2d(op["final_b"].reshape(1, 1), 1, LANES)
    k1 = jnp.kron(jnp.eye(batch, dtype=jnp.float32), op["fc1_w"])
    c1 = jnp.zeros((batch * 12, LANES), jnp.float32).at[:, 0].set(
        jnp.tile(op["fc1_b"], batch))
    k2 = jnp.kron(jnp.eye(batch, dtype=jnp.float32), op["fc2_w"])
    c2 = jnp.zeros((batch * 5, LANES), jnp.float32).at[:, 0].set(
        jnp.tile(op["fc2_b"], batch))
    prep["out"] = {"wg": wg, "bg": bg, "bn_scale": bn_scale,
                   "bn_offset": bn_offset, "ws": ws, "bs": bs, "wf": wf,
                   "bf": bf, "k1": k1, "c1": c1, "k2": k2, "c2": c2}
    return prep


# ----------------------------------------------------------------------------
# Latent correlation layer (GRU + graph attention + Chebyshev): tiny sequential
# math -> plain JAX glue under the same jit.
# TODO(synk): this prelude is the next profiling / Pallas-fusion candidate.
# ----------------------------------------------------------------------------

def gru_forward(xx, gp):
    """PyTorch nn.GRU (1 layer) semantics. xx: [S, B, I] -> [S, B, 12]."""
    H = 12
    w_hh, b_hh = gp["w_hh"], gp["b_hh"]
    # Input projection hoisted out of the scan (one matmul for all steps).
    gi_all = jnp.einsum("sbi,gi->sbg", xx, gp["w_ih"]) + gp["b_ih"]

    def step(h, gi):
        gh = h @ w_hh.T + b_hh
        i_r, i_z, i_n = gi[:, :H], gi[:, H:2 * H], gi[:, 2 * H:]
        h_r, h_z, h_n = gh[:, :H], gh[:, H:2 * H], gh[:, 2 * H:]
        r = jax.nn.sigmoid(i_r + h_r)
        z = jax.nn.sigmoid(i_z + h_z)
        n = jnp.tanh(i_n + r * h_n)
        h_new = (1.0 - z) * n + z * h
        return h_new, h_new

    h0 = jnp.zeros((xx.shape[1], H), jnp.float32)
    _, ys = jax.lax.scan(step, h0, gi_all)
    return ys


def self_graph_attention(inp, params):
    """inp: [B, N, 12] -> attention [B, 12, 12]."""
    ip = jnp.transpose(inp, (0, 2, 1))                       # [B, 12, N]
    key = jnp.matmul(ip, params["weight_key"])[..., 0]       # [B, 12]
    query = jnp.matmul(ip, params["weight_query"])[..., 0]   # [B, 12]
    data = key[:, :, None] + query[:, None, :]
    data = jnp.where(data >= 0, data, 0.2 * data)            # LeakyReLU(0.2)
    att = jax.nn.softmax(data, axis=2)
    # nn.Dropout(p=0.5): identity at inference.
    return att


def cheb_polynomial(lap):
    n = lap.shape[0]
    first = jnp.zeros((1, n, n), jnp.float32)
    second = lap[None]
    third = 2.0 * jnp.matmul(lap[None], second) - first
    fourth = 2.0 * jnp.matmul(lap[None], third) - second
    return jnp.concatenate([first, second, third, fourth], axis=0)


def latent_correlation_layer(x_btn, params):
    """x_btn: [B, T, N]. Returns ([4,N,N], attention [N,N])."""
    xx = jnp.transpose(x_btn, (2, 0, 1))         # [N, B, T]: GRU over node axis
    gru_out = gru_forward(xx, params["gru"])     # [N, B, 12]
    inp = jnp.transpose(gru_out, (1, 0, 2))      # [B, N, 12]
    attention = self_graph_attention(inp, params)
    attention = jnp.mean(attention, axis=0)
    degree = jnp.sum(attention, axis=1)
    attention = 0.5 * (attention + attention.T)
    degree_l = jnp.diag(degree)
    diag_hat = jnp.diag(1.0 / (jnp.sqrt(degree) + 1e-7))
    laplacian = diag_hat @ ((degree_l - attention) @ diag_hat)
    return cheb_polynomial(laplacian), attention


# ----------------------------------------------------------------------------
# Fused forward: ONE pallas_call per forward, everything under one jit.
# ----------------------------------------------------------------------------

def stgcn_forward(x, prep, config):
    """x: [B, n_route, seq_len] -> [B, 5]."""
    B, N, T = x.shape
    kt, dil, ko = config["kt"], config["dilation"], config["ko"]
    BN = B * N

    graph_kernel, _att = latent_correlation_layer(jnp.transpose(x, (0, 2, 1)),
                                                  prep)
    s_t = jnp.transpose(jnp.sum(graph_kernel, axis=0))    # S^T (GConv sums kernels)

    # Activation layout: rows ordered (t, b, n), channels on lanes (zero-padded).
    a = jnp.zeros((T * BN, LANES), jnp.float32)
    a = a.at[:, 0].set(jnp.transpose(x, (2, 0, 1)).reshape(T * BN))

    # Per-block block-diagonal graph operands, built directly in bf16.
    bds = []
    t_cur = T
    for _ in prep["blocks"]:
        t1 = t_cur - dil * (kt - 1)
        bds.append(jnp.kron(jnp.eye(t1 * B, dtype=jnp.float32),
                            s_t).astype(jnp.bfloat16))
        t_cur = t1 - dil * (kt - 1)
    assert t_cur == ko

    out = stgcn_fused_pallas(a, bds, prep, config, B=B, BN=BN, T=T)
    # torch `.squeeze()` of [B,1,1,N] assumes B > 1 (B==1 would also drop batch).
    return out[:, 0].reshape(B, 5)


def build_forward(config):
    return jax.jit(lambda x, prep: stgcn_forward(x, prep, config))


# ----------------------------------------------------------------------------
# Pure-jnp f32 reference (same semantics) used as an in-script cross-check.
# ----------------------------------------------------------------------------

def _ref_channel_match(x, p, c_in, c_out):
    if c_in > c_out:
        return x @ jnp.transpose(p["modify_w"][:, :, 0, 0]) + p["modify_b"]
    if c_in < c_out:
        pads = ((0, 0),) * (x.ndim - 1) + ((0, c_out - c_in),)
        return jnp.pad(x, pads)
    return x


def _ref_temporal(x, p, kt, c_in, c_out, dil, act):
    B, T, N, _ = x.shape
    t_out = T - dil * (kt - 1)
    x_in = _ref_channel_match(x, p, c_in, c_out)[:, dil * (kt - 1):]

    def conv(w, b):
        y = None
        for k in range(kt):
            wk = jnp.transpose(w[:, :, k, 0])
            d = x[:, k * dil:k * dil + t_out] @ wk
            y = d if y is None else y + d
        return y + b

    if act == "GLU":
        y = conv(p["glu_w"], p["glu_b"])
        return (y[..., :c_out] + x_in) * jax.nn.sigmoid(y[..., c_out:])
    y = conv(p["conv_w"], p["conv_b"])
    if act == "linear":
        return y
    if act == "sigmoid":
        return jax.nn.sigmoid(y)
    return jnp.maximum(y + x_in, 0.0)                      # relu


def _ref_spatio(x, p, c, S):
    x_ker = jnp.einsum("btnc,nm->btmc", x, S)
    y = x_ker @ jnp.transpose(p["theta_w"]) + p["theta_b"]
    return jnp.maximum(y + _ref_channel_match(x, p, c, c), 0.0)


def stgcn_reference(x, params, config):
    B, N, T = x.shape
    kt, dil = config["kt"], config["dilation"]
    graph_kernel, _ = latent_correlation_layer(jnp.transpose(x, (0, 2, 1)), params)
    S = jnp.sum(graph_kernel, axis=0)
    h = jnp.transpose(x, (0, 2, 1))[..., None]             # [B, T, N, 1]
    for bp, (c_si, c_t, c_oo) in zip(params["st_blocks"], config["blocks"]):
        h = _ref_temporal(h, bp["tc1"], kt, c_si, c_t, dil, "relu")
        h = _ref_spatio(h, bp["sc"], c_t, S)
        h = _ref_temporal(h, bp["tc2"], kt, c_t, c_oo, dil, "relu")
    op = params["out"]
    c = config["blocks"][-1][-1]
    h = _ref_temporal(h, op["glu_layer"], config["ko"], c, c, 1, "GLU")
    h = h * (op["bn_w"] / jnp.sqrt(1.0 + 1e-5)) + op["bn_b"]
    h = _ref_temporal(h, op["sig_layer"], 1, c, c, 1, "sigmoid")
    y = (h @ jnp.transpose(op["final_w"][:, :, 0, 0]) + op["final_b"])[..., 0]
    y = y.reshape(B, N)
    y = y @ jnp.transpose(op["fc1_w"]) + op["fc1_b"]
    y = jnp.where(y >= 0, y, 0.01 * y)
    return y @ jnp.transpose(op["fc2_w"]) + op["fc2_b"]


# ----------------------------------------------------------------------------
# Deterministic parameter initialization (shapes follow the PyTorch __init__).
# ----------------------------------------------------------------------------

class _KeyGen:
    def __init__(self, key):
        self._key = key

    def __call__(self):
        self._key, sub = jax.random.split(self._key)
        return sub


def _uniform(key, shape, scale):
    return jax.random.uniform(key, shape, jnp.float32, minval=-scale, maxval=scale)


def init_temporal_params(kg, kt, c_in, c_out):
    s_conv = 1.0 / math.sqrt(c_in * kt)
    s_mod = 1.0 / math.sqrt(c_in)
    return {
        "conv_w": _uniform(kg(), (c_out, c_in, kt, 1), s_conv),
        "conv_b": _uniform(kg(), (c_out,), s_conv),
        "glu_w": _uniform(kg(), (2 * c_out, c_in, kt, 1), s_conv),
        "glu_b": _uniform(kg(), (2 * c_out,), s_conv),
        "modify_w": _uniform(kg(), (c_out, c_in, 1, 1), s_mod),
        "modify_b": _uniform(kg(), (c_out,), s_mod),
    }


def init_spatio_params(kg, c_in, c_out):
    s = 1.0 / math.sqrt(c_in)
    return {
        "theta_w": _uniform(kg(), (c_out, c_in), s),
        "theta_b": _uniform(kg(), (c_out,), s),
        "modify_w": _uniform(kg(), (c_out, c_in, 1, 1), s),
        "modify_b": _uniform(kg(), (c_out,), s),
    }


def init_output_params(kg, c_in, ko):
    s1 = 1.0 / math.sqrt(c_in)
    s12 = 1.0 / math.sqrt(12)
    return {
        "glu_layer": init_temporal_params(kg, ko, c_in, c_in),
        "bn_w": jnp.ones((c_in,), jnp.float32),
        "bn_b": jnp.zeros((c_in,), jnp.float32),
        "sig_layer": init_temporal_params(kg, 1, c_in, c_in),
        "final_w": _uniform(kg(), (1, c_in, 1, 1), s1),
        "final_b": _uniform(kg(), (1,), s1),
        "fc1_w": _uniform(kg(), (12, 12), s12),
        "fc1_b": _uniform(kg(), (12,), s12),
        "fc2_w": _uniform(kg(), (5, 12), s12),
        "fc2_b": _uniform(kg(), (5,), s12),
    }


def init_stgcn_params(key, seq_len, blocks, kt, dilation):
    kg = _KeyGen(key)
    hidden = 12
    s_gru = 1.0 / math.sqrt(hidden)
    xav = 1.414 * math.sqrt(6.0 / (12 + 1))
    params = {
        "weight_key": _uniform(kg(), (12, 1), xav),
        "weight_query": _uniform(kg(), (12, 1), xav),
        "gru": {
            "w_ih": _uniform(kg(), (3 * hidden, seq_len), s_gru),
            "w_hh": _uniform(kg(), (3 * hidden, hidden), s_gru),
            "b_ih": _uniform(kg(), (3 * hidden,), s_gru),
            "b_hh": _uniform(kg(), (3 * hidden,), s_gru),
        },
        "st_blocks": [],
    }
    ko = seq_len
    for (c_si, c_t, c_oo) in blocks:
        params["st_blocks"].append({
            "tc1": init_temporal_params(kg, kt, c_si, c_t),
            "sc": init_spatio_params(kg, c_t, c_t),
            "tc2": init_temporal_params(kg, kt, c_t, c_oo),
        })
        ko -= 2 * (kt - 1) * dilation
    if ko <= 1:
        raise ValueError(f"ko must be > 1, got {ko}")
    params["out"] = init_output_params(kg, blocks[-1][-1], ko)
    return params, ko


# ----------------------------------------------------------------------------
# Main.
# ----------------------------------------------------------------------------

if __name__ == "__main__":
    # n_route must be 12 (hard-coded by weight_key/query (12,1) and Linear(12,*)).
    B, N_ROUTE, SEQ_LEN = 2, 12, 12
    KT, DIL = 3, 1
    blocks = [[1, 4, 8], [8, 4, 4]]          # ko = 12 - 8 = 4 > 1

    assert N_ROUTE == 12, "STGCN hard-codes 12 nodes via weight_key/query and fc"

    key = jax.random.PRNGKey(0)
    pkey, xkey = jax.random.split(key)
    params, ko = init_stgcn_params(pkey, SEQ_LEN, blocks, KT, DIL)
    config = {"kt": KT, "dilation": DIL, "blocks": blocks, "ko": ko}

    # One-time weight preparation (fold residuals, stack taps/Theta+Rs, pad,
    # transpose, bf16 cast) -- hoisted out of the jitted forward.
    prep = prepare_stgcn_params(params, config, B)

    fwd = build_forward(config)              # jitted; ONE pallas_call inside

    x = jax.random.normal(xkey, (B, N_ROUTE, SEQ_LEN), jnp.float32)

    out = jax.block_until_ready(fwd(x, prep))
    assert out.shape == (B, 5), out.shape
    assert bool(jnp.all(jnp.isfinite(out)))

    # Cross-check the fused Pallas path against a pure-jnp f32 reference.
    # Tolerance covers bf16 matmul operands throughout the fused pipeline,
    # including the bf16 graph-mix operand recommended by the perf review.
    ref = jax.block_until_ready(
        jax.jit(lambda xx, pp: stgcn_reference(xx, pp, config))(x, params))
    err = float(jnp.max(jnp.abs(out - ref)))
    assert err < 1e-1, f"mismatch vs pure-JAX reference: max abs err {err}"

    print("KERNEL_OK")
</pallas_src>

<mosaic_0001>
module attributes {stable_mosaic.version = 11 : i64} {
  func.func @_stgcn_kernel(%arg0: i32, %arg1: memref<288x128xf32, #tpu.memory_space<vmem>>, %arg2: memref<240x240xbf16, #tpu.memory_space<vmem>>, %arg3: memref<144x144xbf16, #tpu.memory_space<vmem>>, %arg4: memref<384x128xbf16, #tpu.memory_space<vmem>>, %arg5: memref<1x128xf32, #tpu.memory_space<vmem>>, %arg6: memref<256x128xbf16, #tpu.memory_space<vmem>>, %arg7: memref<1x128xf32, #tpu.memory_space<vmem>>, %arg8: memref<384x128xbf16, #tpu.memory_space<vmem>>, %arg9: memref<1x128xf32, #tpu.memory_space<vmem>>, %arg10: memref<384x128xbf16, #tpu.memory_space<vmem>>, %arg11: memref<1x128xf32, #tpu.memory_space<vmem>>, %arg12: memref<256x128xbf16, #tpu.memory_space<vmem>>, %arg13: memref<1x128xf32, #tpu.memory_space<vmem>>, %arg14: memref<384x128xbf16, #tpu.memory_space<vmem>>, %arg15: memref<1x128xf32, #tpu.memory_space<vmem>>, %arg16: memref<512x256xbf16, #tpu.memory_space<vmem>>, %arg17: memref<1x256xf32, #tpu.memory_space<vmem>>, %arg18: memref<1x128xf32, #tpu.memory_space<vmem>>, %arg19: memref<1x128xf32, #tpu.memory_space<vmem>>, %arg20: memref<128x128xbf16, #tpu.memory_space<vmem>>, %arg21: memref<1x128xf32, #tpu.memory_space<vmem>>, %arg22: memref<128x128xbf16, #tpu.memory_space<vmem>>, %arg23: memref<1x128xf32, #tpu.memory_space<vmem>>, %arg24: memref<24x24xf32, #tpu.memory_space<vmem>>, %arg25: memref<24x128xf32, #tpu.memory_space<vmem>>, %arg26: memref<10x24xf32, #tpu.memory_space<vmem>>, %arg27: memref<10x128xf32, #tpu.memory_space<vmem>>, %arg28: memref<10x128xf32, #tpu.memory_space<vmem>>) attributes {dimension_semantics = [#tpu.dimension_semantics<arbitrary>], iteration_bounds = array<i64: 1>, scalar_prefetch = 0 : i64, scratch_operands = 0 : i64, tpu.core_type = #tpu.core_type<tc>, window_params = [{pipeline_mode = #tpu.pipeline_mode<synchronous>, transform_indices = @transform_0, window_bounds = array<i64: 288, 128>}, {pipeline_mode = #tpu.pipeline_mode<synchronous>, transform_indices = @transform_1, window_bounds = array<i64: 240, 240>}, {pipeline_mode = #tpu.pipeline_mode<synchronous>, transform_indices = @transform_2, window_bounds = array<i64: 144, 144>}, {pipeline_mode = #tpu.pipeline_mode<synchronous>, transform_indices = @transform_3, window_bounds = array<i64: 384, 128>}, {pipeline_mode = #tpu.pipeline_mode<synchronous>, transform_indices = @transform_4, window_bounds = array<i64: 1, 128>}, {pipeline_mode = #tpu.pipeline_mode<synchronous>, transform_indices = @transform_5, window_bounds = array<i64: 256, 128>}, {pipeline_mode = #tpu.pipeline_mode<synchronous>, transform_indices = @transform_6, window_bounds = array<i64: 1, 128>}, {pipeline_mode = #tpu.pipeline_mode<synchronous>, transform_indices = @transform_7, window_bounds = array<i64: 384, 128>}, {pipeline_mode = #tpu.pipeline_mode<synchronous>, transform_indices = @transform_8, window_bounds = array<i64: 1, 128>}, {pipeline_mode = #tpu.pipeline_mode<synchronous>, transform_indices = @transform_9, window_bounds = array<i64: 384, 128>}, {pipeline_mode = #tpu.pipeline_mode<synchronous>, transform_indices = @transform_10, window_bounds = array<i64: 1, 128>}, {pipeline_mode = #tpu.pipeline_mode<synchronous>, transform_indices = @transform_11, window_bounds = array<i64: 256, 128>}, {pipeline_mode = #tpu.pipeline_mode<synchronous>, transform_indices = @transform_12, window_bounds = array<i64: 1, 128>}, {pipeline_mode = #tpu.pipeline_mode<synchronous>, transform_indices = @transform_13, window_bounds = array<i64: 384, 128>}, {pipeline_mode = #tpu.pipeline_mode<synchronous>, transform_indices = @transform_14, window_bounds = array<i64: 1, 128>}, {pipeline_mode = #tpu.pipeline_mode<synchronous>, transform_indices = @transform_15, window_bounds = array<i64: 512, 256>}, {pipeline_mode = #tpu.pipeline_mode<synchronous>, transform_indices = @transform_16, window_bounds = array<i64: 1, 256>}, {pipeline_mode = #tpu.pipeline_mode<synchronous>, transform_indices = @transform_17, window_bounds = array<i64: 1, 128>}, {pipeline_mode = #tpu.pipeline_mode<synchronous>, transform_indices = @transform_18, window_bounds = array<i64: 1, 128>}, {pipeline_mode = #tpu.pipeline_mode<synchronous>, transform_indices = @transform_19, window_bounds = array<i64: 128, 128>}, {pipeline_mode = #tpu.pipeline_mode<synchronous>, transform_indices = @transform_20, window_bounds = array<i64: 1, 128>}, {pipeline_mode = #tpu.pipeline_mode<synchronous>, transform_indices = @transform_21, window_bounds = array<i64: 128, 128>}, {pipeline_mode = #tpu.pipeline_mode<synchronous>, transform_indices = @transform_22, window_bounds = array<i64: 1, 128>}, {pipeline_mode = #tpu.pipeline_mode<synchronous>, transform_indices = @transform_23, window_bounds = array<i64: 24, 24>}, {pipeline_mode = #tpu.pipeline_mode<synchronous>, transform_indices = @transform_24, window_bounds = array<i64: 24, 128>}, {pipeline_mode = #tpu.pipeline_mode<synchronous>, transform_indices = @transform_25, window_bounds = array<i64: 10, 24>}, {pipeline_mode = #tpu.pipeline_mode<synchronous>, transform_indices = @transform_26, window_bounds = array<i64: 10, 128>}, {pipeline_mode = #tpu.pipeline_mode<synchronous>, transform_indices = @transform_27, window_bounds = array<i64: 10, 128>}]} {
    %c0 = arith.constant 0 : index
    %c0_0 = arith.constant 0 : index
    %0 = vector.load %arg1[%c0, %c0_0] : memref<288x128xf32, #tpu.memory_space<vmem>>, vector<288x128xf32>
    %1 = vector.extract_strided_slice %0 {offsets = [0, 0], sizes = [240, 128], strides = [1, 1]} : vector<288x128xf32> to vector<240x128xf32>
    %2 = arith.truncf %1 : vector<240x128xf32> to vector<240x128xbf16>
    %3 = vector.extract_strided_slice %0 {offsets = [24, 0], sizes = [240, 128], strides = [1, 1]} : vector<288x128xf32> to vector<240x128xf32>
    %4 = arith.truncf %3 : vector<240x128xf32> to vector<240x128xbf16>
    %5 = vector.extract_strided_slice %0 {offsets = [48, 0], sizes = [240, 128], strides = [1, 1]} : vector<288x128xf32> to vector<240x128xf32>
    %6 = arith.truncf %5 : vector<240x128xf32> to vector<240x128xbf16>
    %7 = tpu.concatenate %2, %4, %6 in 1 : vector<240x128xbf16>, vector<240x128xbf16>, vector<240x128xbf16> -> vector<240x384xbf16>
    %c0_1 = arith.constant 0 : index
    %c0_2 = arith.constant 0 : index
    %8 = vector.load %arg4[%c0_1, %c0_2] : memref<384x128xbf16, #tpu.memory_space<vmem>>, vector<384x128xbf16>
    %cst = arith.constant dense<0.000000e+00> : vector<240x128xf32>
    %9 = tpu.matmul %7, %8, %cst {dimension_numbers = #tpu.dot_dimension_numbers<[1], [0], [0], [1], [0, 0, 1, 1], [], []>} : vector<240x384xbf16>, vector<384x128xbf16>, vector<240x128xf32> -> vector<240x128xf32>
    %c0_3 = arith.constant 0 : index
    %c0_4 = arith.constant 0 : index
    %10 = vector.load %arg5[%c0_3, %c0_4] : memref<1x128xf32, #tpu.memory_space<vmem>>, vector<1x128xf32>
    %11 = vector.broadcast %10 : vector<1x128xf32> to vector<240x128xf32>
    %12 = arith.addf %9, %11 : vector<240x128xf32>
    %cst_5 = arith.constant 0.000000e+00 : f32
    %13 = vector.broadcast %cst_5 : f32 to vector<240x128xf32>
    %14 = arith.maximumf %12, %13 : vector<240x128xf32>
    %15 = arith.truncf %14 : vector<240x128xf32> to vector<240x128xbf16>
    %c0_6 = arith.constant 0 : index
    %c0_7 = arith.constant 0 : index
    %16 = vector.load %arg2[%c0_6, %c0_7] : memref<240x240xbf16, #tpu.memory_space<vmem>>, vector<240x240xbf16>
    %cst_8 = arith.constant dense<0.000000e+00> : vector<240x128xf32>
    %17 = tpu.matmul %16, %15, %cst_8 {dimension_numbers = #tpu.dot_dimension_numbers<[1], [0], [0], [1], [0, 0, 1, 1], [], []>} : vector<240x240xbf16>, vector<240x128xbf16>, vector<240x128xf32> -> vector<240x128xf32>
    %18 = arith.truncf %17 : vector<240x128xf32> to vector<240x128xbf16>
    %19 = tpu.concatenate %18, %15 in 1 : vector<240x128xbf16>, vector<240x128xbf16> -> vector<240x256xbf16>
    %c0_9 = arith.constant 0 : index
    %c0_10 = arith.constant 0 : index
    %20 = vector.load %arg6[%c0_9, %c0_10] : memref<256x128xbf16, #tpu.memory_space<vmem>>, vector<256x128xbf16>
    %cst_11 = arith.constant dense<0.000000e+00> : vector<240x128xf32>
    %21 = tpu.matmul %19, %20, %cst_11 {dimension_numbers = #tpu.dot_dimension_numbers<[1], [0], [0], [1], [0, 0, 1, 1], [], []>} : vector<240x256xbf16>, vector<256x128xbf16>, vector<240x128xf32> -> vector<240x128xf32>
    %c0_12 = arith.constant 0 : index
    %c0_13 = arith.constant 0 : index
    %22 = vector.load %arg7[%c0_12, %c0_13] : memref<1x128xf32, #tpu.memory_space<vmem>>, vector<1x128xf32>
    %23 = vector.broadcast %22 : vector<1x128xf32> to vector<240x128xf32>
    %24 = arith.addf %21, %23 : vector<240x128xf32>
    %cst_14 = arith.constant 0.000000e+00 : f32
    %25 = vector.broadcast %cst_14 : f32 to vector<240x128xf32>
    %26 = arith.maximumf %24, %25 : vector<240x128xf32>
    %27 = vector.extract_strided_slice %26 {offsets = [0, 0], sizes = [192, 128], strides = [1, 1]} : vector<240x128xf32> to vector<192x128xf32>
    %28 = arith.truncf %27 : vector<192x128xf32> to vector<192x128xbf16>
    %29 = vector.extract_strided_slice %26 {offsets = [24, 0], sizes = [192, 128], strides = [1, 1]} : vector<240x128xf32> to vector<192x128xf32>
    %30 = arith.truncf %29 : vector<192x128xf32> to vector<192x128xbf16>
    %31 = vector.extract_strided_slice %26 {offsets = [48, 0], sizes = [192, 128], strides = [1, 1]} : vector<240x128xf32> to vector<192x128xf32>
    %32 = arith.truncf %31 : vector<192x128xf32> to vector<192x128xbf16>
    %33 = tpu.concatenate %28, %30, %32 in 1 : vector<192x128xbf16>, vector<192x128xbf16>, vector<192x128xbf16> -> vector<192x384xbf16>
    %c0_15 = arith.constant 0 : index
    %c0_16 = arith.constant 0 : index
    %34 = vector.load %arg8[%c0_15, %c0_16] : memref<384x128xbf16, #tpu.memory_space<vmem>>, vector<384x128xbf16>
    %cst_17 = arith.constant dense<0.000000e+00> : vector<192x128xf32>
    %35 = tpu.matmul %33, %34, %cst_17 {dimension_numbers = #tpu.dot_dimension_numbers<[1], [0], [0], [1], [0, 0, 1, 1], [], []>} : vector<192x384xbf16>, vector<384x128xbf16>, vector<192x128xf32> -> vector<192x128xf32>
    %c0_18 = arith.constant 0 : index
    %c0_19 = arith.constant 0 : index
    %36 = vector.load %arg9[%c0_18, %c0_19] : memref<1x128xf32, #tpu.memory_space<vmem>>, vector<1x128xf32>
    %37 = vector.broadcast %36 : vector<1x128xf32> to vector<192x128xf32>
    %38 = arith.addf %35, %37 : vector<192x128xf32>
    %cst_20 = arith.constant 0.000000e+00 : f32
    %39 = vector.broadcast %cst_20 : f32 to vector<192x128xf32>
    %40 = arith.maximumf %38, %39 : vector<192x128xf32>
    %41 = vector.extract_strided_slice %40 {offsets = [0, 0], sizes = [144, 128], strides = [1, 1]} : vector<192x128xf32> to vector<144x128xf32>
    %42 = arith.truncf %41 : vector<144x128xf32> to vector<144x128xbf16>
    %43 = vector.extract_strided_slice %40 {offsets = [24, 0], sizes = [144, 128], strides = [1, 1]} : vector<192x128xf32> to vector<144x128xf32>
    %44 = arith.truncf %43 : vector<144x128xf32> to vector<144x128xbf16>
    %45 = vector.extract_strided_slice %40 {offsets = [48, 0], sizes = [144, 128], strides = [1, 1]} : vector<192x128xf32> to vector<144x128xf32>
    %46 = arith.truncf %45 : vector<144x128xf32> to vector<144x128xbf16>
    %47 = tpu.concatenate %42, %44, %46 in 1 : vector<144x128xbf16>, vector<144x128xbf16>, vector<144x128xbf16> -> vector<144x384xbf16>
    %c0_21 = arith.constant 0 : index
    %c0_22 = arith.constant 0 : index
    %48 = vector.load %arg10[%c0_21, %c0_22] : memref<384x128xbf16, #tpu.memory_space<vmem>>, vector<384x128xbf16>
    %cst_23 = arith.constant dense<0.000000e+00> : vector<144x128xf32>
    %49 = tpu.matmul %47, %48, %cst_23 {dimension_numbers = #tpu.dot_dimension_numbers<[1], [0], [0], [1], [0, 0, 1, 1], [], []>} : vector<144x384xbf16>, vector<384x128xbf16>, vector<144x128xf32> -> vector<144x128xf32>
    %c0_24 = arith.constant 0 : index
    %c0_25 = arith.constant 0 : index
    %50 = vector.load %arg11[%c0_24, %c0_25] : memref<1x128xf32, #tpu.memory_space<vmem>>, vector<1x128xf32>
    %51 = vector.broadcast %50 : vector<1x128xf32> to vector<144x128xf32>
    %52 = arith.addf %49, %51 : vector<144x128xf32>
    %cst_26 = arith.constant 0.000000e+00 : f32
    %53 = vector.broadcast %cst_26 : f32 to vector<144x128xf32>
    %54 = arith.maximumf %52, %53 : vector<144x128xf32>
    %55 = arith.truncf %54 : vector<144x128xf32> to vector<144x128xbf16>
    %c0_27 = arith.constant 0 : index
    %c0_28 = arith.constant 0 : index
    %56 = vector.load %arg3[%c0_27, %c0_28] : memref<144x144xbf16, #tpu.memory_space<vmem>>, vector<144x144xbf16>
    %cst_29 = arith.constant dense<0.000000e+00> : vector<144x128xf32>
    %57 = tpu.matmul %56, %55, %cst_29 {dimension_numbers = #tpu.dot_dimension_numbers<[1], [0], [0], [1], [0, 0, 1, 1], [], []>} : vector<144x144xbf16>, vector<144x128xbf16>, vector<144x128xf32> -> vector<144x128xf32>
    %58 = arith.truncf %57 : vector<144x128xf32> to vector<144x128xbf16>
    %59 = tpu.concatenate %58, %55 in 1 : vector<144x128xbf16>, vector<144x128xbf16> -> vector<144x256xbf16>
    %c0_30 = arith.constant 0 : index
    %c0_31 = arith.constant 0 : index
    %60 = vector.load %arg12[%c0_30, %c0_31] : memref<256x128xbf16, #tpu.memory_space<vmem>>, vector<256x128xbf16>
    %cst_32 = arith.constant dense<0.000000e+00> : vector<144x128xf32>
    %61 = tpu.matmul %59, %60, %cst_32 {dimension_numbers = #tpu.dot_dimension_numbers<[1], [0], [0], [1], [0, 0, 1, 1], [], []>} : vector<144x256xbf16>, vector<256x128xbf16>, vector<144x128xf32> -> vector<144x128xf32>
    %c0_33 = arith.constant 0 : index
    %c0_34 = arith.constant 0 : index
    %62 = vector.load %arg13[%c0_33, %c0_34] : memref<1x128xf32, #tpu.memory_space<vmem>>, vector<1x128xf32>
    %63 = vector.broadcast %62 : vector<1x128xf32> to vector<144x128xf32>
    %64 = arith.addf %61, %63 : vector<144x128xf32>
    %cst_35 = arith.constant 0.000000e+00 : f32
    %65 = vector.broadcast %cst_35 : f32 to vector<144x128xf32>
    %66 = arith.maximumf %64, %65 : vector<144x128xf32>
    %67 = vector.extract_strided_slice %66 {offsets = [0, 0], sizes = [96, 128], strides = [1, 1]} : vector<144x128xf32> to vector<96x128xf32>
    %68 = arith.truncf %67 : vector<96x128xf32> to vector<96x128xbf16>
    %69 = vector.extract_strided_slice %66 {offsets = [24, 0], sizes = [96, 128], strides = [1, 1]} : vector<144x128xf32> to vector<96x128xf32>
    %70 = arith.truncf %69 : vector<96x128xf32> to vector<96x128xbf16>
    %71 = vector.extract_strided_slice %66 {offsets = [48, 0], sizes = [96, 128], strides = [1, 1]} : vector<144x128xf32> to vector<96x128xf32>
    %72 = arith.truncf %71 : vector<96x128xf32> to vector<96x128xbf16>
    %73 = tpu.concatenate %68, %70, %72 in 1 : vector<96x128xbf16>, vector<96x128xbf16>, vector<96x128xbf16> -> vector<96x384xbf16>
    %c0_36 = arith.constant 0 : index
    %c0_37 = arith.constant 0 : index
    %74 = vector.load %arg14[%c0_36, %c0_37] : memref<384x128xbf16, #tpu.memory_space<vmem>>, vector<384x128xbf16>
    %cst_38 = arith.constant dense<0.000000e+00> : vector<96x128xf32>
    %75 = tpu.matmul %73, %74, %cst_38 {dimension_numbers = #tpu.dot_dimension_numbers<[1], [0], [0], [1], [0, 0, 1, 1], [], []>} : vector<96x384xbf16>, vector<384x128xbf16>, vector<96x128xf32> -> vector<96x128xf32>
    %c0_39 = arith.constant 0 : index
    %c0_40 = arith.constant 0 : index
    %76 = vector.load %arg15[%c0_39, %c0_40] : memref<1x128xf32, #tpu.memory_space<vmem>>, vector<1x128xf32>
    %77 = vector.broadcast %76 : vector<1x128xf32> to vector<96x128xf32>
    %78 = arith.addf %75, %77 : vector<96x128xf32>
    %cst_41 = arith.constant 0.000000e+00 : f32
    %79 = vector.broadcast %cst_41 : f32 to vector<96x128xf32>
    %80 = arith.maximumf %78, %79 : vector<96x128xf32>
    %81 = vector.extract_strided_slice %80 {offsets = [0, 0], sizes = [24, 128], strides = [1, 1]} : vector<96x128xf32> to vector<24x128xf32>
    %82 = arith.truncf %81 : vector<24x128xf32> to vector<24x128xbf16>
    %83 = vector.extract_strided_slice %80 {offsets = [24, 0], sizes = [24, 128], strides = [1, 1]} : vector<96x128xf32> to vector<24x128xf32>
    %84 = arith.truncf %83 : vector<24x128xf32> to vector<24x128xbf16>
    %85 = vector.extract_strided_slice %80 {offsets = [48, 0], sizes = [24, 128], strides = [1, 1]} : vector<96x128xf32> to vector<24x128xf32>
    %86 = arith.truncf %85 : vector<24x128xf32> to vector<24x128xbf16>
    %87 = vector.extract_strided_slice %80 {offsets = [72, 0], sizes = [24, 128], strides = [1, 1]} : vector<96x128xf32> to vector<24x128xf32>
    %88 = arith.truncf %87 : vector<24x128xf32> to vector<24x128xbf16>
    %89 = tpu.concatenate %82, %84, %86, %88 in 1 : vector<24x128xbf16>, vector<24x128xbf16>, vector<24x128xbf16>, vector<24x128xbf16> -> vector<24x512xbf16>
    %c0_42 = arith.constant 0 : index
    %c0_43 = arith.constant 0 : index
    %90 = vector.load %arg16[%c0_42, %c0_43] : memref<512x256xbf16, #tpu.memory_space<vmem>>, vector<512x256xbf16>
    %cst_44 = arith.constant dense<0.000000e+00> : vector<24x256xf32>
    %91 = tpu.matmul %89, %90, %cst_44 {dimension_numbers = #tpu.dot_dimension_numbers<[1], [0], [0], [1], [0, 0, 1, 1], [], []>} : vector<24x512xbf16>, vector<512x256xbf16>, vector<24x256xf32> -> vector<24x256xf32>
    %c0_45 = arith.constant 0 : index
    %c0_46 = arith.constant 0 : index
    %92 = vector.load %arg17[%c0_45, %c0_46] : memref<1x256xf32, #tpu.memory_space<vmem>>, vector<1x256xf32>
    %93 = vector.broadcast %92 : vector<1x256xf32> to vector<24x256xf32>
    %94 = arith.addf %91, %93 : vector<24x256xf32>
    %95 = vector.extract_strided_slice %94 {offsets = [0, 0], sizes = [24, 128], strides = [1, 1]} : vector<24x256xf32> to vector<24x128xf32>
    %96 = vector.extract_strided_slice %94 {offsets = [0, 128], sizes = [24, 128], strides = [1, 1]} : vector<24x256xf32> to vector<24x128xf32>
    %97 = arith.negf %96 : vector<24x128xf32>
    %98 = math.exp %97 : vector<24x128xf32>
    %cst_47 = arith.constant 1.000000e+00 : f32
    %99 = vector.broadcast %cst_47 : f32 to vector<24x128xf32>
    %100 = arith.addf %99, %98 : vector<24x128xf32>
    %101 = arith.divf %99, %100 : vector<24x128xf32>
    %102 = arith.mulf %95, %101 : vector<24x128xf32>
    %c0_48 = arith.constant 0 : index
    %c0_49 = arith.constant 0 : index
    %103 = vector.load %arg18[%c0_48, %c0_49] : memref<1x128xf32, #tpu.memory_space<vmem>>, vector<1x128xf32>
    %104 = vector.broadcast %103 : vector<1x128xf32> to vector<24x128xf32>
    %105 = arith.mulf %102, %104 : vector<24x128xf32>
    %c0_50 = arith.constant 0 : index
    %c0_51 = arith.constant 0 : index
    %106 = vector.load %arg19[%c0_50, %c0_51] : memref<1x128xf32, #tpu.memory_space<vmem>>, vector<1x128xf32>
    %107 = vector.broadcast %106 : vector<1x128xf32> to vector<24x128xf32>
    %108 = arith.addf %105, %107 : vector<24x128xf32>
    %109 = arith.truncf %108 : vector<24x128xf32> to vector<24x128xbf16>
    %c0_52 = arith.constant 0 : index
    %c0_53 = arith.constant 0 : index
    %110 = vector.load %arg20[%c0_52, %c0_53] : memref<128x128xbf16, #tpu.memory_space<vmem>>, vector<128x128xbf16>
    %cst_54 = arith.constant dense<0.000000e+00> : vector<24x128xf32>
    %111 = tpu.matmul %109, %110, %cst_54 {dimension_numbers = #tpu.dot_dimension_numbers<[1], [0], [0], [1], [0, 0, 1, 1], [], []>} : vector<24x128xbf16>, vector<128x128xbf16>, vector<24x128xf32> -> vector<24x128xf32>
    %c0_55 = arith.constant 0 : index
    %c0_56 = arith.constant 0 : index
    %112 = vector.load %arg21[%c0_55, %c0_56] : memref<1x128xf32, #tpu.memory_space<vmem>>, vector<1x128xf32>
    %113 = vector.broadcast %112 : vector<1x128xf32> to vector<24x128xf32>
    %114 = arith.addf %111, %113 : vector<24x128xf32>
    %115 = arith.negf %114 : vector<24x128xf32>
    %116 = math.exp %115 : vector<24x128xf32>
    %cst_57 = arith.constant 1.000000e+00 : f32
    %117 = vector.broadcast %cst_57 : f32 to vector<24x128xf32>
    %118 = arith.addf %117, %116 : vector<24x128xf32>
    %119 = arith.divf %117, %118 : vector<24x128xf32>
    %120 = arith.truncf %119 : vector<24x128xf32> to vector<24x128xbf16>
    %c0_58 = arith.constant 0 : index
    %c0_59 = arith.constant 0 : index
    %121 = vector.load %arg22[%c0_58, %c0_59] : memref<128x128xbf16, #tpu.memory_space<vmem>>, vector<128x128xbf16>
    %cst_60 = arith.constant dense<0.000000e+00> : vector<24x128xf32>
    %122 = tpu.matmul %120, %121, %cst_60 {dimension_numbers = #tpu.dot_dimension_numbers<[1], [0], [0], [1], [0, 0, 1, 1], [], []>} : vector<24x128xbf16>, vector<128x128xbf16>, vector<24x128xf32> -> vector<24x128xf32>
    %c0_61 = arith.constant 0 : index
    %c0_62 = arith.constant 0 : index
    %123 = vector.load %arg23[%c0_61, %c0_62] : memref<1x128xf32, #tpu.memory_space<vmem>>, vector<1x128xf32>
    %124 = vector.broadcast %123 : vector<1x128xf32> to vector<24x128xf32>
    %125 = arith.addf %122, %124 : vector<24x128xf32>
    %c0_63 = arith.constant 0 : index
    %c0_64 = arith.constant 0 : index
    %126 = vector.load %arg24[%c0_63, %c0_64] : memref<24x24xf32, #tpu.memory_space<vmem>>, vector<24x24xf32>
    %cst_65 = arith.constant dense<0.000000e+00> : vector<24x128xf32>
    %127 = tpu.matmul %126, %125, %cst_65 {dimension_numbers = #tpu.dot_dimension_numbers<[1], [0], [0], [1], [0, 0, 1, 1], [], []>} : vector<24x24xf32>, vector<24x128xf32>, vector<24x128xf32> -> vector<24x128xf32>
    %c0_66 = arith.constant 0 : index
    %c0_67 = arith.constant 0 : index
    %128 = vector.load %arg25[%c0_66, %c0_67] : memref<24x128xf32, #tpu.memory_space<vmem>>, vector<24x128xf32>
    %129 = arith.addf %127, %128 : vector<24x128xf32>
    %cst_68 = arith.constant 0.000000e+00 : f32
    %130 = vector.broadcast %cst_68 : f32 to vector<24x128xf32>
    %131 = arith.cmpf oge, %129, %130 : vector<24x128xf32>
    %cst_69 = arith.constant 0.00999999977 : f32
    %132 = vector.broadcast %cst_69 : f32 to vector<24x128xf32>
    %133 = arith.mulf %132, %129 : vector<24x128xf32>
    %134 = arith.select %131, %129, %133 : vector<24x128xi1>, vector<24x128xf32>
    %c0_70 = arith.constant 0 : index
    %c0_71 = arith.constant 0 : index
    %135 = vector.load %arg26[%c0_70, %c0_71] : memref<10x24xf32, #tpu.memory_space<vmem>>, vector<10x24xf32>
    %cst_72 = arith.constant dense<0.000000e+00> : vector<10x128xf32>
    %136 = tpu.matmul %135, %134, %cst_72 {dimension_numbers = #tpu.dot_dimension_numbers<[1], [0], [0], [1], [0, 0, 1, 1], [], []>} : vector<10x24xf32>, vector<24x128xf32>, vector<10x128xf32> -> vector<10x128xf32>
    %c0_73 = arith.constant 0 : index
    %c0_74 = arith.constant 0 : index
    %137 = vector.load %arg27[%c0_73, %c0_74] : memref<10x128xf32, #tpu.memory_space<vmem>>, vector<10x128xf32>
    %138 = arith.addf %136, %137 : vector<10x128xf32>
    %c0_75 = arith.constant 0 : index
    %c0_76 = arith.constant 0 : index
    %139 = vector.load %arg28[%c0_75, %c0_76] : memref<10x128xf32, #tpu.memory_space<vmem>>, vector<10x128xf32>
    tpu.vector_store %arg28[%c0_75, %c0_76], %138 {strides = array<i32>} : memref<10x128xf32, #tpu.memory_space<vmem>>, vector<10x128xf32>,
    return
  }
  func.func @transform_0(%arg0: i32) -> (i32, i32) {
    %c0_i32 = arith.constant 0 : i32
    %c0_i32_0 = arith.constant 0 : i32
    %c0_i32_1 = arith.constant 0 : i32
    return %c0_i32, %c0_i32_0 : i32, i32
  }
  func.func @transform_1(%arg0: i32) -> (i32, i32) {
    %c0_i32 = arith.constant 0 : i32
    %c0_i32_0 = arith.constant 0 : i32
    %c0_i32_1 = arith.constant 0 : i32
    return %c0_i32, %c0_i32_0 : i32, i32
  }
  func.func @transform_2(%arg0: i32) -> (i32, i32) {
    %c0_i32 = arith.constant 0 : i32
    %c0_i32_0 = arith.constant 0 : i32
    %c0_i32_1 = arith.constant 0 : i32
    return %c0_i32, %c0_i32_0 : i32, i32
  }
  func.func @transform_3(%arg0: i32) -> (i32, i32) {
    %c0_i32 = arith.constant 0 : i32
    %c0_i32_0 = arith.constant 0 : i32
    %c0_i32_1 = arith.constant 0 : i32
    return %c0_i32, %c0_i32_0 : i32, i32
  }
  func.func @transform_4(%arg0: i32) -> (i32, i32) {
    %c0_i32 = arith.constant 0 : i32
    %c0_i32_0 = arith.constant 0 : i32
    %c0_i32_1 = arith.constant 0 : i32
    return %c0_i32, %c0_i32_0 : i32, i32
  }
  func.func @transform_5(%arg0: i32) -> (i32, i32) {
    %c0_i32 = arith.constant 0 : i32
    %c0_i32_0 = arith.constant 0 : i32
    %c0_i32_1 = arith.constant 0 : i32
    return %c0_i32, %c0_i32_0 : i32, i32
  }
  func.func @transform_6(%arg0: i32) -> (i32, i32) {
    %c0_i32 = arith.constant 0 : i32
    %c0_i32_0 = arith.constant 0 : i32
    %c0_i32_1 = arith.constant 0 : i32
    return %c0_i32, %c0_i32_0 : i32, i32
  }
  func.func @transform_7(%arg0: i32) -> (i32, i32) {
    %c0_i32 = arith.constant 0 : i32
    %c0_i32_0 = arith.constant 0 : i32
    %c0_i32_1 = arith.constant 0 : i32
    return %c0_i32, %c0_i32_0 : i32, i32
  }
  func.func @transform_8(%arg0: i32) -> (i32, i32) {
    %c0_i32 = arith.constant 0 : i32
    %c0_i32_0 = arith.constant 0 : i32
    %c0_i32_1 = arith.constant 0 : i32
    return %c0_i32, %c0_i32_0 : i32, i32
  }
  func.func @transform_9(%arg0: i32) -> (i32, i32) {
    %c0_i32 = arith.constant 0 : i32
    %c0_i32_0 = arith.constant 0 : i32
    %c0_i32_1 = arith.constant 0 : i32
    return %c0_i32, %c0_i32_0 : i32, i32
  }
  func.func @transform_10(%arg0: i32) -> (i32, i32) {
    %c0_i32 = arith.constant 0 : i32
    %c0_i32_0 = arith.constant 0 : i32
    %c0_i32_1 = arith.constant 0 : i32
    return %c0_i32, %c0_i32_0 : i32, i32
  }
  func.func @transform_11(%arg0: i32) -> (i32, i32) {
    %c0_i32 = arith.constant 0 : i32
    %c0_i32_0 = arith.constant 0 : i32
    %c0_i32_1 = arith.constant 0 : i32
    return %c0_i32, %c0_i32_0 : i32, i32
  }
  func.func @transform_12(%arg0: i32) -> (i32, i32) {
    %c0_i32 = arith.constant 0 : i32
    %c0_i32_0 = arith.constant 0 : i32
    %c0_i32_1 = arith.constant 0 : i32
    return %c0_i32, %c0_i32_0 : i32, i32
  }
  func.func @transform_13(%arg0: i32) -> (i32, i32) {
    %c0_i32 = arith.constant 0 : i32
    %c0_i32_0 = arith.constant 0 : i32
    %c0_i32_1 = arith.constant 0 : i32
    return %c0_i32, %c0_i32_0 : i32, i32
  }
  func.func @transform_14(%arg0: i32) -> (i32, i32) {
    %c0_i32 = arith.constant 0 : i32
    %c0_i32_0 = arith.constant 0 : i32
    %c0_i32_1 = arith.constant 0 : i32
    return %c0_i32, %c0_i32_0 : i32, i32
  }
  func.func @transform_15(%arg0: i32) -> (i32, i32) {
    %c0_i32 = arith.constant 0 : i32
    %c0_i32_0 = arith.constant 0 : i32
    %c0_i32_1 = arith.constant 0 : i32
    return %c0_i32, %c0_i32_0 : i32, i32
  }
  func.func @transform_16(%arg0: i32) -> (i32, i32) {
    %c0_i32 = arith.constant 0 : i32
    %c0_i32_0 = arith.constant 0 : i32
    %c0_i32_1 = arith.constant 0 : i32
    return %c0_i32, %c0_i32_0 : i32, i32
  }
  func.func @transform_17(%arg0: i32) -> (i32, i32) {
    %c0_i32 = arith.constant 0 : i32
    %c0_i32_0 = arith.constant 0 : i32
    %c0_i32_1 = arith.constant 0 : i32
    return %c0_i32, %c0_i32_0 : i32, i32
  }
  func.func @transform_18(%arg0: i32) -> (i32, i32) {
    %c0_i32 = arith.constant 0 : i32
    %c0_i32_0 = arith.constant 0 : i32
    %c0_i32_1 = arith.constant 0 : i32
    return %c0_i32, %c0_i32_0 : i32, i32
  }
  func.func @transform_19(%arg0: i32) -> (i32, i32) {
    %c0_i32 = arith.constant 0 : i32
    %c0_i32_0 = arith.constant 0 : i32
    %c0_i32_1 = arith.constant 0 : i32
    return %c0_i32, %c0_i32_0 : i32, i32
  }
  func.func @transform_20(%arg0: i32) -> (i32, i32) {
    %c0_i32 = arith.constant 0 : i32
    %c0_i32_0 = arith.constant 0 : i32
    %c0_i32_1 = arith.constant 0 : i32
    return %c0_i32, %c0_i32_0 : i32, i32
  }
  func.func @transform_21(%arg0: i32) -> (i32, i32) {
    %c0_i32 = arith.constant 0 : i32
    %c0_i32_0 = arith.constant 0 : i32
    %c0_i32_1 = arith.constant 0 : i32
    return %c0_i32, %c0_i32_0 : i32, i32
  }
  func.func @transform_22(%arg0: i32) -> (i32, i32) {
    %c0_i32 = arith.constant 0 : i32
    %c0_i32_0 = arith.constant 0 : i32
    %c0_i32_1 = arith.constant 0 : i32
    return %c0_i32, %c0_i32_0 : i32, i32
  }
  func.func @transform_23(%arg0: i32) -> (i32, i32) {
    %c0_i32 = arith.constant 0 : i32
    %c0_i32_0 = arith.constant 0 : i32
    %c0_i32_1 = arith.constant 0 : i32
    return %c0_i32, %c0_i32_0 : i32, i32
  }
  func.func @transform_24(%arg0: i32) -> (i32, i32) {
    %c0_i32 = arith.constant 0 : i32
    %c0_i32_0 = arith.constant 0 : i32
    %c0_i32_1 = arith.constant 0 : i32
    return %c0_i32, %c0_i32_0 : i32, i32
  }
  func.func @transform_25(%arg0: i32) -> (i32, i32) {
    %c0_i32 = arith.constant 0 : i32
    %c0_i32_0 = arith.constant 0 : i32
    %c0_i32_1 = arith.constant 0 : i32
    return %c0_i32, %c0_i32_0 : i32, i32
  }
  func.func @transform_26(%arg0: i32) -> (i32, i32) {
    %c0_i32 = arith.constant 0 : i32
    %c0_i32_0 = arith.constant 0 : i32
    %c0_i32_1 = arith.constant 0 : i32
    return %c0_i32, %c0_i32_0 : i32, i32
  }
  func.func @transform_27(%arg0: i32) -> (i32, i32) {
    %c0_i32 = arith.constant 0 : i32
    %c0_i32_0 = arith.constant 0 : i32
    %c0_i32_1 = arith.constant 0 : i32
    return %c0_i32, %c0_i32_0 : i32, i32
  }
}

</mosaic_0001>

<bundles_post_ra>
// kernel: custom-call
= control target key start
LH: loop header
LB: loop body
LE: loop exit
PB: predicated region body
PF: predicated region fallthrough
CT: control target
= control target key end

     0   :  { %s6_s0 = inlined_call_operand.vmem [shape: f32[2,12], index: 0, kind: output, shape index: {}]  }

// kernel: custom-call.1
= control target key start
LH: loop header
LB: loop body
LE: loop exit
PB: predicated region body
PF: predicated region fallthrough
CT: control target
= control target key end

     0   :  { %s6_s0 = inlined_call_operand.vmem [shape: f32[12,2,12], index: 0, kind: output, shape index: {}]  }

// kernel: squeeze.5
= control target key start
LH: loop header
LB: loop body
LE: loop exit
PB: predicated region body
PF: predicated region fallthrough
CT: control target
= control target key end

     0   :  { %s80_s0 = inlined_call_operand.vmem [shape: f32[10], index: 0, kind: input, shape index: {}]   ;;  %s81_s1 = inlined_call_operand.hbm [shape: f32[2,5], index: 1, kind: output, shape index: {}]  }
   0x1   :  { %v5_v0 = vld [vmem:[%s80_s0] sm:$0x1] }
   0x2   :  { %2 = vsyncpa [#allocation1], 0  ;;  %6 = vst [vmem:[#allocation3] sm:$0x1] %v5_v0  ;;  %vm8_vm0 = vcmask 39936   ;;  %s62_s0 = smov 123  }
   0x3   :  { %s63_s8 = smov [#allocation0]   ;;  %s27_s1 = sshll.u32 %s81_s1, 4  ;;  %s28_s1 = int_to_ptr.hbm [resolvable:$true] %s27_s1 }
   0x4   :  { %s25_s9 = sshll.u32 %s63_s8, 4  ;;  %s26_s9 = int_to_ptr.vmem [resolvable:$true] %s25_s9 }
   0x9   :  { %v10_v1 = vld [vmem:[#allocation3] sm:$0x1]  }
   0xa   :  { %v7_v2 = vld [vmem:[#allocation3] sm:$0x1]   ;;  %11 = vrot.lane.b32.xlu0 %v10_v1, %s62_s0 }
   0xb   :  { %9 = vst.msk [vmem:[#allocation2] sm:$0x1] %vm8_vm0, %v7_v2  }
  0x7c   :  { %v12_v3 = vpop.permute.xlu0 %11  }
  0x7d   :  { %15 = vst.msk [vmem:[#allocation2 + $0x1] sm:$0x1] %vm8_vm0, %v12_v3  }
  0x84   :  { %v18_v4 = vld [vmem:[#allocation2] sm:$0x3] }
  0x85   :  { %21 = vst [vmem:[#allocation0] sm:$0x3] %v18_v4 }
  0x86   :  { %30 = dma.vmem_to_hbm [thread:$0]  %s26_s9, 32, %s28_s1, [#allocation1]  }
  0x87   :  { %60 = dma.done.wait [#allocation1], 32  }
  0x88   :  { %61 = vsyncadd [#allocation1], 4294967264 }
  0x89   :  { %33 = vsyncpa [#allocation1], 1 }

// kernel: _lambda_.1
= control target key start
LH: loop header
LB: loop body
LE: loop exit
PB: predicated region body
PF: predicated region fallthrough
CT: control target
= control target key end

     0   :  { %vm1060_vm0 = vcmask 916480   ;;  %vm2956_vm1 = vcmask 130048   ;;  %s8122_s3 = inlined_call_operand.vmem [shape: bf16[384,128], index: 3, kind: input, shape index: {}]   ;;  %s8123_s0 = inlined_call_operand.vmem [shape: f32[288,128], index: 0, kind: input, shape index: {}]   ;;  %s8124_s4 = inlined_call_operand.vmem [shape: f32[1,128], index: 4, kind: input, shape index: {}]   ;;  %s8125_s5 = inlined_call_operand.vmem [shape: bf16[256,128], index: 5, kind: input, shape index: {}]   ;;  %s8126_s1 = inlined_call_operand.vmem [shape: bf16[240,240], index: 1, kind: input, shape index: {}]   ;;  %s8127_s6 = inlined_call_operand.vmem [shape: f32[1,128], index: 6, kind: input, shape index: {}]   ;;  %s8128_s7 = inlined_call_operand.vmem [shape: bf16[384,128], index: 7, kind: input, shape index: {}]   ;;  %s8129_s8 = inlined_call_operand.vmem [shape: f32[1,128], index: 8, kind: input, shape index: {}]   ;;  %s8130_s9 = inlined_call_operand.vmem [shape: bf16[384,128], index: 9, kind: input, shape index: {}]   ;;  %s8131_s10 = inlined_call_operand.vmem [shape: f32[1,128], index: 10, kind: input, shape index: {}]   ;;  %s8132_s11 = inlined_call_operand.vmem [shape: bf16[256,128], index: 11, kind: input, shape index: {}]   ;;  %s8133_s2 = inlined_call_operand.vmem [shape: bf16[144,144], index: 2, kind: input, shape index: {}]   ;;  %s8134_s12 = inlined_call_operand.vmem [shape: f32[1,128], index: 12, kind: input, shape index: {}]   ;;  %s8135_s13 = inlined_call_operand.vmem [shape: bf16[384,128], index: 13, kind: input, shape index: {}]   ;;  %s8136_s14 = inlined_call_operand.vmem [shape: f32[1,128], index: 14, kind: input, shape index: {}]   ;;  %s8137_s15 = inlined_call_operand.vmem [shape: bf16[512,256], index: 15, kind: input, shape index: {}]   ;;  %s8138_s16 = inlined_call_operand.vmem [shape: f32[1,256], index: 16, kind: input, shape index: {}]   ;;  %s8139_s17 = inlined_call_operand.vmem [shape: f32[1,128], index: 17, kind: input, shape index: {}]   ;;  %s8140_s18 = inlined_call_operand.vmem [shape: f32[1,128], index: 18, kind: input, shape index: {}]   ;;  %s8141_s20 = inlined_call_operand.vmem [shape: f32[1,128], index: 20, kind: input, shape index: {}]   ;;  %s8142_s19 = inlined_call_operand.vmem [shape: bf16[128,128], index: 19, kind: input, shape index: {}]   ;;  %s8143_s22 = inlined_call_operand.vmem [shape: f32[1,128], index: 22, kind: input, shape index: {}]   ;;  %s8144_s21 = inlined_call_operand.vmem [shape: bf16[128,128], index: 21, kind: input, shape index: {}]   ;;  %s8145_s23 = inlined_call_operand.vmem [shape: f32[24,24], index: 23, kind: input, shape index: {}]   ;;  %s8146_s24 = inlined_call_operand.vmem [shape: f32[24,128], index: 24, kind: input, shape index: {}]   ;;  %s8147_s25 = inlined_call_operand.vmem [shape: f32[10,24], index: 25, kind: input, shape index: {}]   ;;  %s8148_s26 = inlined_call_operand.vmem [shape: f32[10,128], index: 26, kind: input, shape index: {}]   ;;  %s8149_s27 = inlined_call_operand.vmem [shape: f32[10,128], index: 27, kind: output, shape index: {}]  }
   0x1   :  { %8158 = sst [smem:[#allocation2_spill]] %s8122_s3 }
   0x2   :  { %8159 = sst [smem:[#allocation3_spill]] %s8123_s0 }
   0x3   :  { %8160 = sst [smem:[#allocation4_spill]] %s8124_s4 }
   0x4   :  { %8161 = sst [smem:[#allocation5_spill]] %s8125_s5 }
   0x5   :  { %8162 = sst [smem:[#allocation6_spill]] %s8126_s1 }
   0x6   :  { %8163 = sst [smem:[#allocation7_spill]] %s8127_s6 }
   0x7   :  { %8164 = sst [smem:[#allocation8_spill]] %s8128_s7 }
   0x8   :  { %8165 = sst [smem:[#allocation9_spill]] %s8129_s8 }
   0x9   :  { %8166 = sst [smem:[#allocation10_spill]] %s8130_s9 }
   0xa   :  { %8167 = sst [smem:[#allocation11_spill]] %s8131_s10 }
   0xb   :  { %8168 = sst [smem:[#allocation12_spill]] %s8132_s11 }
   0xc   :  { %8169 = sst [smem:[#allocation13_spill]] %s8133_s2 }
   0xd   :  { %s8170_s9 = sld [smem:[#allocation2_spill]] }
   0xe   :  { %s8171_s7 = sld [smem:[#allocation3_spill]] }
   0xf   :  { %s8172_s30 = sld [smem:[#allocation4_spill]] }
  0x10   :  { %s8173_s10 = sld [smem:[#allocation5_spill]] }
  0x11   :  { %s8174_s28 = sld [smem:[#allocation6_spill]] }
  0x12   :  { %s8175_s29 = sld [smem:[#allocation8_spill]] }
  0x13   :  { %v5880_v0 = vld [vmem:[%s8170_s9 + $0x38] sm:$0xff]  ;;  %v5879_v3 = vld [vmem:[%s8170_s9 + $0x30] sm:$0xff]  ;;  %v5878_v6 = vld [vmem:[%s8170_s9 + $0x28] sm:$0xff]  ;;  %s8178_s5 = sld [smem:[#allocation9_spill]] }
  0x14   :  { %v5888_v1 = vld [vmem:[%s8170_s9 + $0x78] sm:$0xff]  ;;  %493 = vmatpush.bf16.msra.mxu0 %v5880_v0  ;;  %v5887_v4 = vld [vmem:[%s8170_s9 + $0x70] sm:$0xff]  ;;  %v5886_v7 = vld [vmem:[%s8170_s9 + $0x68] sm:$0xff]  ;;  %s8179_s1 = sld [smem:[#allocation12_spill]] }
  0x15   :  { %v5896_v2 = vld [vmem:[%s8170_s9 + $0xb8] sm:$0xff]  ;;  %577 = vmatpush.bf16.msra.mxu1 %v5888_v1  ;;  %v5895_v5 = vld [vmem:[%s8170_s9 + $0xb0] sm:$0xff]  ;;  %v5894_v8 = vld [vmem:[%s8170_s9 + $0xa8] sm:$0xff]  ;;  %s8180_s8 = sld [smem:[#allocation11_spill]] }
  0x16   :  { %661 = vmatpush.bf16.msra.mxu2 %v5896_v2  ;;  %v5877_v9 = vld [vmem:[%s8170_s9 + $0x20] sm:$0xff]  ;;  %v5876_v12 = vld [vmem:[%s8170_s9 + $0x18] sm:$0xff]  ;;  %v5875_v15 = vld [vmem:[%s8170_s9 + $0x10] sm:$0xff] }
  0x17   :  { %v5885_v10 = vld [vmem:[%s8170_s9 + $0x60] sm:$0xff]  ;;  %v5884_v13 = vld [vmem:[%s8170_s9 + $0x58] sm:$0xff]  ;;  %v5883_v16 = vld [vmem:[%s8170_s9 + $0x50] sm:$0xff] }
  0x18   :  { %494 = vmatpush.bf16.msra.mxu0 %v5879_v3  ;;  %v5893_v11 = vld [vmem:[%s8170_s9 + $0xa0] sm:$0xff]  ;;  %v5892_v14 = vld [vmem:[%s8170_s9 + $0x98] sm:$0xff]  ;;  %v5891_v17 = vld [vmem:[%s8170_s9 + $0x90] sm:$0xff] }
  0x19   :  { %578 = vmatpush.bf16.msra.mxu1 %v5887_v4  ;;  %v87_v18 = vld [vmem:[%s8171_s7] sm:$0xff]  ;;  %v88_v19 = vld [vmem:[%s8171_s7 + $0x8] sm:$0xff]  ;;  %v90_v20 = vld [vmem:[%s8171_s7 + $0x18] sm:$0xff] }
  0x1a   :  { %662 = vmatpush.bf16.msra.mxu2 %v5895_v5  ;;  %v91_v21 = vld [vmem:[%s8171_s7 + $0x20] sm:$0xff]  ;;  %v93_v22 = vld [vmem:[%s8171_s7 + $0x30] sm:$0xff]  ;;  %v94_v23 = vld [vmem:[%s8171_s7 + $0x38] sm:$0xff]  ;;  %v123_v24 = vpack.c.bf16 %v87_v18, %v87_v18  ;;  %v124_v25 = vpack.c.bf16 %v88_v19, %v88_v19  ;;  %v126_v26 = vpack.c.bf16 %v90_v20, %v90_v20 }
  0x1b   :  { %v127_v27 = vpack.c.bf16 %v91_v21, %v91_v21  ;;  %v5874_v28 = vld [vmem:[%s8170_s9 + $0x8] sm:$0xff]  ;;  %v129_v30 = vpack.c.bf16 %v93_v22, %v93_v22  ;;  %v130_v31 = vpack.c.bf16 %v94_v23, %v94_v23  ;;  %v5873_v37 = vld [vmem:[%s8170_s9] sm:$0xff]  ;;  %v89_v45 = vld [vmem:[%s8171_s7 + $0x10] sm:$0xff] }
  0x1c   :  { %495 = vmatpush.bf16.msra.mxu0 %v5878_v6  ;;  %v5882_v29 = vld [vmem:[%s8170_s9 + $0x48] sm:$0xff]  ;;  %v189_v33 = vunpack.c.l.b16 %v123_v24  ;;  %v190_v34 = vunpack.c.l.b16 %v124_v25  ;;  %v192_v35 = vunpack.c.l.b16 %v126_v26  ;;  %v5881_v38 = vld [vmem:[%s8170_s9 + $0x40] sm:$0xff]  ;;  %v125_v49 = vpack.c.bf16 %v89_v45, %v89_v45  ;;  %v97_v60 = vld [vmem:[%s8171_s7 + $0x50] sm:$0xff] }
  0x1d   :  { %579 = vmatpush.bf16.msra.mxu1 %v5886_v7  ;;  %v5890_v32 = vld [vmem:[%s8170_s9 + $0x88] sm:$0xff]  ;;  %v193_v36 = vunpack.c.l.b16 %v127_v27  ;;  %v195_v39 = vunpack.c.l.b16 %v129_v30  ;;  %v196_v40 = vunpack.c.l.b16 %v130_v31  ;;  %v5889_v41 = vld [vmem:[%s8170_s9 + $0x80] sm:$0xff]  ;;  %v98_v61 = vld [vmem:[%s8171_s7 + $0x58] sm:$0xff]  ;;  %v133_v62 = vpack.c.bf16 %v97_v60, %v97_v60 }
  0x1e   :  { %663 = vmatpush.bf16.msra.mxu2 %v5894_v8  ;;  %v219_v42 = vpack.c.b16 %v190_v34, %v189_v33  ;;  %v92_v46 = vld [vmem:[%s8171_s7 + $0x28] sm:$0xff]  ;;  %v95_v47 = vld [vmem:[%s8171_s7 + $0x40] sm:$0xff]  ;;  %v191_v53 = vunpack.c.l.b16 %v125_v49  ;;  %v134_v63 = vpack.c.bf16 %v98_v61, %v98_v61  ;;  %v106_v30 = vld [vmem:[%s8171_s7 + $0x98] sm:$0xff] }
  0x1f   :  { %v255_v43 = vpack.c.b16 %v193_v36, %v192_v35  ;;  %v222_v44 = vpack.c.b16 %v196_v40, %v195_v39  ;;  %v96_v48 = vld [vmem:[%s8171_s7 + $0x48] sm:$0xff]  ;;  %v128_v50 = vpack.c.bf16 %v92_v46, %v92_v46  ;;  %v131_v51 = vpack.c.bf16 %v95_v47, %v95_v47  ;;  %v99_v5 = vld [vmem:[%s8171_s7 + $0x60] sm:$0xff]  ;;  %v109_v45 = vld [vmem:[%s8171_s7 + $0xb0] sm:$0xff] }
  0x20   :  { %496 = vmatpush.bf16.msra.mxu0 %v5877_v9  ;;  %v132_v52 = vpack.c.bf16 %v96_v48, %v96_v48  ;;  %v220_v57 = vpack.c.b16 %v192_v35, %v191_v53  ;;  %v199_v0 = vunpack.c.l.b16 %v133_v62  ;;  %v200_v1 = vunpack.c.l.b16 %v134_v63  ;;  %v100_v6 = vld [vmem:[%s8171_s7 + $0x68] sm:$0xff]  ;;  %v103_v21 = vld [vmem:[%s8171_s7 + $0x80] sm:$0xff]  ;;  %v110_v46 = vld [vmem:[%s8171_s7 + $0xb8] sm:$0xff] }
  0x21   :  { %580 = vmatpush.bf16.msra.mxu1 %v5885_v10  ;;  %v194_v54 = vunpack.c.l.b16 %v128_v50  ;;  %v197_v55 = vunpack.c.l.b16 %v131_v51  ;;  %v135_v7 = vpack.c.bf16 %v99_v5, %v99_v5  ;;  %v136_v8 = vpack.c.bf16 %v100_v6, %v100_v6  ;;  %v104_v22 = vld [vmem:[%s8171_s7 + $0x88] sm:$0xff]  ;;  %v6455_v51 = vld [vmem:[%s8172_s30] ss:$0 sm:$0xff]  ;;  %s8177_s30 = sld [smem:[#allocation10_spill]] }
  0x22   :  { %664 = vmatpush.bf16.msra.mxu2 %v5893_v11  ;;  %v198_v56 = vunpack.c.l.b16 %v132_v52  ;;  %v224_v4 = vpack.c.b16 %v200_v1, %v199_v0  ;;  %v139_v23 = vpack.c.bf16 %v103_v21, %v103_v21  ;;  %v140_v24 = vpack.c.bf16 %v104_v22, %v104_v22 }
  0x23   :  { %v256_v58 = vpack.c.b16 %v195_v39, %v194_v54  ;;  %v221_v2 = vpack.c.b16 %v194_v54, %v193_v36  ;;  %v257_v3 = vpack.c.b16 %v197_v55, %v196_v40  ;;  %v201_v9 = vunpack.c.l.b16 %v135_v7 }
  0x24   :  { %497 = vmatpush.bf16.msra.mxu0 %v5876_v12  ;;  %v223_v59 = vpack.c.b16 %v198_v56, %v197_v55  ;;  %v202_v10 = vunpack.c.l.b16 %v136_v8  ;;  %v258_v11 = vpack.c.b16 %v199_v0, %v198_v56  ;;  %v205_v25 = vunpack.c.l.b16 %v139_v23 }
  0x25   :  { %581 = vmatpush.bf16.msra.mxu1 %v5884_v13  ;;  %v101_v13 = vld [vmem:[%s8171_s7 + $0x70] sm:$0xff]  ;;  %v259_v19 = vpack.c.b16 %v201_v9, %v200_v1  ;;  %v206_v26 = vunpack.c.l.b16 %v140_v24  ;;  %v145_v47 = vpack.c.bf16 %v109_v45, %v109_v45  ;;  %v146_v48 = vpack.c.bf16 %v110_v46, %v110_v46  ;;  %v115_v46 = vld [vmem:[%s8171_s7 + $0xe0] sm:$0xff] }
  0x26   :  { %665 = vmatpush.bf16.msra.mxu2 %v5892_v14  ;;  %v225_v12 = vpack.c.b16 %v202_v10, %v201_v9  ;;  %v102_v14 = vld [vmem:[%s8171_s7 + $0x78] sm:$0xff] }
  0x27   :  { %v211_v49 = vunpack.c.l.b16 %v145_v47  ;;  %v6450_v50 = vunpack.c.l.b16 %v146_v48  ;;  %v116_v47 = vld [vmem:[%s8171_s7 + $0xe8] sm:$0xff] }
  0x28   :  { %498 = vmatpush.bf16.msra.mxu0 %v5875_v15  ;;  %v137_v15 = vpack.c.bf16 %v101_v13, %v101_v13 }
  0x29   :  { %582 = vmatpush.bf16.msra.mxu1 %v5883_v16  ;;  %v138_v16 = vpack.c.bf16 %v102_v14, %v102_v14  ;;  %v6458_v55 = vpack.c.b16 %v6450_v50, %v211_v49 }
  0x2a   :  { %666 = vmatpush.bf16.msra.mxu2 %v5891_v17  ;;  %v203_v17 = vunpack.c.l.b16 %v137_v15 }
  0x2b   :  { %v204_v18 = vunpack.c.l.b16 %v138_v16 }
  0x2c   :  { %499 = vmatpush.bf16.msra.mxu0 %v5874_v28  ;;  %v260_v27 = vpack.c.b16 %v203_v17, %v202_v10  ;;  %v227_v28 = vpack.c.b16 %v206_v26, %v205_v25 }
  0x2d   :  { %583 = vmatpush.bf16.msra.mxu1 %v5882_v29  ;;  %v226_v20 = vpack.c.b16 %v204_v18, %v203_v17  ;;  %v105_v29 = vld [vmem:[%s8171_s7 + $0x90] sm:$0xff]  ;;  %v261_v35 = vpack.c.b16 %v205_v25, %v204_v18 }
  0x2e   :  { %667 = vmatpush.bf16.msra.mxu2 %v5890_v32  ;;  %v141_v31 = vpack.c.bf16 %v105_v29, %v105_v29  ;;  %v142_v32 = vpack.c.bf16 %v106_v30, %v106_v30  ;;  %v113_v18 = vld [vmem:[%s8171_s7 + $0xd0] sm:$0xff] }
  0x30   :  { %500 = vmatpush.bf16.msra.mxu0 %v5873_v37  ;;  %v207_v33 = vunpack.c.l.b16 %v141_v31  ;;  %v208_v34 = vunpack.c.l.b16 %v142_v32  ;;  %v107_v37 = vld [vmem:[%s8171_s7 + $0xa0] sm:$0xff] }
  0x31   :  { %584 = vmatpush.bf16.msra.mxu1 %v5881_v38  ;;  %v108_v38 = vld [vmem:[%s8171_s7 + $0xa8] sm:$0xff]  ;;  %v143_v39 = vpack.c.bf16 %v107_v37, %v107_v37 }
  0x32   :  { %668 = vmatpush.bf16.msra.mxu2 %v5889_v41  ;;  %v228_v36 = vpack.c.b16 %v208_v34, %v207_v33  ;;  %v144_v40 = vpack.c.bf16 %v108_v38, %v108_v38 }
  0x33   :  { %501 = vmatmul.bf16.vlgmr.msra.gmra.mxu0 %v219_v42  ;;  %v209_v41 = vunpack.c.l.b16 %v143_v39 }
  0x34   :  { %585 = vmatmul.bf16.vlgmr.msra.gmra.mxu1 %v255_v43  ;;  %v210_v42 = vunpack.c.l.b16 %v144_v40  ;;  %v262_v43 = vpack.c.b16 %v207_v33, %v206_v26 }
  0x35   :  { %669 = vmatmul.bf16.vlgmr.msra.gmra.mxu2 %v222_v44  ;;  %v263_v52 = vpack.c.b16 %v209_v41, %v208_v34 }
  0x36   :  { %v264_v8 = vpack.c.b16 %v211_v49, %v210_v42 }
  0x43   :  { %506 = vmatmul.bf16.gmra.mxu0 %v220_v57 }
  0x44   :  { %590 = vmatmul.bf16.gmra.mxu1 %v256_v58  ;;  %v111_v58 = vld [vmem:[%s8171_s7 + $0xc0] sm:$0xff] }
  0x45   :  { %674 = vmatmul.bf16.gmra.mxu2 %v223_v59  ;;  %v147_v0 = vpack.c.bf16 %v111_v58, %v111_v58 }
  0x53   :  { %511 = vmatmul.bf16.gmra.mxu0 %v221_v2 }
  0x54   :  { %595 = vmatmul.bf16.gmra.mxu1 %v257_v3 }
  0x55   :  { %679 = vmatmul.bf16.gmra.mxu2 %v224_v4 }
  0x63   :  { %516 = vmatmul.bf16.gmra.mxu0 %v222_v44  ;;  %v6441_v44 = vpack.c.b16 %v210_v42, %v209_v41 }
  0x64   :  { %600 = vmatmul.bf16.gmra.mxu1 %v258_v11 }
  0x65   :  { %684 = vmatmul.bf16.gmra.mxu2 %v225_v12 }
  0x73   :  { %521 = vmatmul.bf16.gmra.mxu0 %v223_v59  ;;  %v112_v59 = vld [vmem:[%s8171_s7 + $0xc8] sm:$0xff] }
  0x74   :  { %605 = vmatmul.bf16.gmra.mxu1 %v259_v19  ;;  %v148_v1 = vpack.c.bf16 %v112_v59, %v112_v59  ;;  %v114_v19 = vld [vmem:[%s8171_s7 + $0xd8] sm:$0xff] }
  0x75   :  { %689 = vmatmul.bf16.gmra.mxu2 %v226_v20 }
  0x76   :  { %v6469_v5 = vunpack.c.l.b16 %v148_v1 }
  0x83   :  { %526 = vmatmul.bf16.gmra.mxu0 %v224_v4  ;;  %v213_v4 = vunpack.c.l.b16 %v147_v0 }
  0x84   :  { %610 = vmatmul.bf16.gmra.mxu1 %v260_v27  ;;  %v149_v27 = vpack.c.bf16 %v113_v18, %v113_v18 }
  0x85   :  { %694 = vmatmul.bf16.gmra.mxu2 %v227_v28 }
  0x86   :  { %v215_v31 = vunpack.c.l.b16 %v149_v27 }
  0x88   :  { %v266_v0 = vpack.c.b16 %v215_v31, %v6469_v5 }
  0x93   :  { %531 = vmatmul.bf16.gmra.mxu0 %v225_v12  ;;  %v6472_v12 = vpack.c.b16 %v6469_v5, %v213_v4  ;;  %v117_v5 = vld [vmem:[%s8171_s7 + $0xf0] sm:$0xff] }
  0x94   :  { %615 = vmatmul.bf16.gmra.mxu1 %v261_v35  ;;  %v265_v35 = vpack.c.b16 %v213_v4, %v6450_v50 }
  0x95   :  { %699 = vmatmul.bf16.gmra.mxu2 %v228_v36 }
  0xa3   :  { %536 = vmatmul.bf16.gmra.mxu0 %v226_v20 }
  0xa4   :  { %620 = vmatmul.bf16.gmra.mxu1 %v262_v43 }
  0xa5   :  { %704 = vmatmul.bf16.gmra.mxu2 %v6441_v44 }
  0xb0   :  { %v502_v53 = vpop.f32.mrf.mxu0 }
  0xb1   :  { %v586_v54 = vpop.f32.mrf.mxu1  ;;  %v503_v56 = vadd.f32 %v6455_v51, %v502_v53 }
  0xb3   :  { %v587_v57 = vadd.f32 %v586_v54, %v503_v56  ;;  %541 = vmatmul.bf16.gmra.mxu0 %v227_v28  ;;  %v150_v28 = vpack.c.bf16 %v114_v19, %v114_v19  ;;  %v151_v56 = vpack.c.bf16 %v115_v46, %v115_v46  ;;  %v120_v46 = vld [vmem:[%s8171_s7 + $0x108] sm:$0xff] }
  0xb4   :  { %625 = vmatmul.bf16.gmra.mxu1 %v263_v52 }
  0xb5   :  { %709 = vmatmul.bf16.gmra.mxu2 %v6458_v55  ;;  %v6485_v32 = vunpack.c.l.b16 %v150_v28 }
  0xb7   :  { %v6489_v39 = vpack.c.b16 %v6485_v32, %v215_v31 }
  0xb8   :  { %v670_v60 = vpop.f32.mrf.mxu2  ;;  %v504_v62 = vpop.f32.mrf.mxu0 }
  0xb9   :  { %v671_v61 = vadd.f32 %v670_v60, %v587_v57  ;;  %v588_v63 = vpop.f32.mrf.mxu1  ;;  %v505_v2 = vadd.f32 %v6455_v51, %v504_v62  ;;  %v217_v60 = vunpack.c.l.b16 %v151_v56  ;;  %v156_v56 = vpack.c.bf16 %v120_v46, %v120_v46 }
  0xbb   :  { %v589_v3 = vadd.f32 %v588_v63, %v505_v2  ;;  %v745_v6 = vmax.f32 %v671_v61, 0.0  ;;  %v267_v31 = vpack.c.b16 %v217_v60, %v6485_v32  ;;  %v5938_v32 = vld [vmem:[%s8173_s10 + $0x58] sm:$0xff] }
  0xbd   :  { %v775_v14 = vpack.c.bf16 %v745_v6, %v745_v6 }
  0xbf   :  { %v1000_v20 = vunpack.c.l.b16 %v775_v14 }
  0xc0   :  { %v672_v7 = vpop.f32.mrf.mxu2  ;;  %v507_v10 = vpop.f32.mrf.mxu0 }
  0xc1   :  { %v673_v9 = vadd.f32 %v672_v7, %v589_v3  ;;  %v591_v11 = vpop.f32.mrf.mxu1  ;;  %v508_v13 = vadd.f32 %v6455_v51, %v507_v10  ;;  %v5942_v10 = vld [vmem:[%s8173_s10 + $0x78] sm:$0xff] }
  0xc2   :  { %1610 = vmatpush.bf16.msrb.mxu2 %v5942_v10 }
  0xc3   :  { %v746_v15 = vmax.f32 %v673_v9, 0.0  ;;  %v592_v16 = vadd.f32 %v591_v11, %v508_v13  ;;  %546 = vmatmul.bf16.gmra.mxu0 %v228_v36  ;;  %v118_v13 = vld [vmem:[%s8171_s7 + $0xf8] sm:$0xff] }
  0xc4   :  { %630 = vmatmul.bf16.gmra.mxu1 %v264_v8 }
  0xc5   :  { %v776_v17 = vpack.c.bf16 %v746_v15, %v746_v15  ;;  %714 = vmatmul.bf16.gmra.mxu2 %v6472_v12 }
  0xc7   :  { %v1001_v21 = vunpack.c.l.b16 %v776_v17 }
  0xc8   :  { %v675_v22 = vpop.f32.mrf.mxu2  ;;  %v509_v25 = vpop.f32.mrf.mxu0 }
  0xc9   :  { %v6482_v23 = vpack.c.b16 %v1001_v21, %v1000_v20  ;;  %v676_v24 = vadd.f32 %v675_v22, %v592_v16  ;;  %v593_v26 = vpop.f32.mrf.mxu1  ;;  %v510_v29 = vadd.f32 %v6455_v51, %v509_v25  ;;  %v5941_v16 = vld [vmem:[%s8173_s10 + $0x70] sm:$0xff]  ;;  %v153_v20 = vpack.c.bf16 %v117_v5, %v117_v5  ;;  %v5940_v25 = vld [vmem:[%s8173_s10 + $0x68] sm:$0xff] }
  0xca   :  { %v154_v21 = vpack.c.bf16 %v118_v13, %v118_v13  ;;  %1611 = vmatpush.bf16.msrb.mxu2 %v5941_v16 }
  0xcb   :  { %v594_v30 = vadd.f32 %v593_v26, %v510_v29  ;;  %v747_v33 = vmax.f32 %v676_v24, 0.0  ;;  %v252_v26 = vunpack.c.l.b16 %v153_v20 }
  0xcc   :  { %v6530_v27 = vunpack.c.l.b16 %v154_v21 }
  0xcd   :  { %v777_v41 = vpack.c.bf16 %v747_v33, %v747_v33  ;;  %v5939_v33 = vld [vmem:[%s8173_s10 + $0x60] sm:$0xff] }
  0xce   :  { %1612 = vmatpush.bf16.msrb.mxu2 %v5940_v25 }
  0xcf   :  { %v1002_v48 = vunpack.c.l.b16 %v777_v41 }
  0xd0   :  { %v677_v34 = vpop.f32.mrf.mxu2  ;;  %v512_v37 = vpop.f32.mrf.mxu0 }
  0xd1   :  { %v678_v36 = vadd.f32 %v677_v34, %v594_v30  ;;  %v596_v38 = vpop.f32.mrf.mxu1  ;;  %v513_v40 = vadd.f32 %v6455_v51, %v512_v37  ;;  %v291_v37 = vpack.c.b16 %v6530_v27, %v252_v26 }
  0xd2   :  { %1613 = vmatpush.bf16.msrb.mxu2 %v5939_v33 }
  0xd3   :  { %v748_v42 = vmax.f32 %v678_v36, 0.0  ;;  %v597_v43 = vadd.f32 %v596_v38, %v513_v40  ;;  %551 = vmatmul.bf16.gmra.mxu0 %v6441_v44  ;;  %v152_v44 = vpack.c.bf16 %v116_v47, %v116_v47 }
  0xd4   :  { %635 = vmatmul.bf16.gmra.mxu1 %v265_v35 }
  0xd5   :  { %v778_v45 = vpack.c.bf16 %v748_v42, %v748_v42  ;;  %719 = vmatmul.bf16.gmra.mxu2 %v6489_v39  ;;  %v6503_v61 = vunpack.c.l.b16 %v152_v44 }
  0xd6   :  { %1614 = vmatpush.bf16.msrb.mxu2 %v5938_v32 }
  0xd7   :  { %v1003_v49 = vunpack.c.l.b16 %v778_v45  ;;  %v6507_v4 = vpack.c.b16 %v6503_v61, %v217_v60  ;;  %v119_v45 = vld [vmem:[%s8171_s7 + $0x100] sm:$0xff]  ;;  %v288_v60 = vunpack.c.l.b16 %v156_v56 }
  0xd8   :  { %v680_v50 = vpop.f32.mrf.mxu2  ;;  %v514_v53 = vpop.f32.mrf.mxu0 }
  0xd9   :  { %v681_v52 = vadd.f32 %v680_v50, %v597_v43  ;;  %v598_v54 = vpop.f32.mrf.mxu1  ;;  %v6500_v57 = vpack.c.b16 %v1003_v49, %v1002_v48  ;;  %v515_v58 = vadd.f32 %v6455_v51, %v514_v53 }
  0xdb   :  { %v599_v59 = vadd.f32 %v598_v54, %v515_v58  ;;  %v749_v62 = vmax.f32 %v681_v52, 0.0  ;;  %v155_v54 = vpack.c.bf16 %v119_v45, %v119_v45  ;;  %v5936_v58 = vld [vmem:[%s8173_s10 + $0x48] sm:$0xff] }
  0xdd   :  { %v779_v7 = vpack.c.bf16 %v749_v62, %v749_v62 }
  0xdf   :  { %v1004_v14 = vunpack.c.l.b16 %v779_v7 }
  0xe0   :  { %v682_v63 = vpop.f32.mrf.mxu2  ;;  %v517_v2 = vpop.f32.mrf.mxu0 }
  0xe1   :  { %v683_v1 = vadd.f32 %v682_v63, %v599_v59  ;;  %v601_v3 = vpop.f32.mrf.mxu1  ;;  %v518_v6 = vadd.f32 %v6455_v51, %v517_v2  ;;  %v254_v59 = vunpack.c.l.b16 %v155_v54  ;;  %v268_v63 = vpack.c.b16 %v252_v26, %v6503_v61  ;;  %v122_v61 = vld [vmem:[%s8171_s7 + $0x118] sm:$0xff] }
  0xe3   :  { %v750_v8 = vmax.f32 %v683_v1, 0.0  ;;  %v602_v9 = vadd.f32 %v601_v3, %v518_v6  ;;  %556 = vmatmul.bf16.gmra.mxu0 %v6458_v55  ;;  %v292_v3 = vpack.c.b16 %v288_v60, %v254_v59  ;;  %v121_v6 = vld [vmem:[%s8171_s7 + $0x110] sm:$0xff]  ;;  %s8181_s7 = sld [smem:[#allocation13_spill]] }
  0xe4   :  { %640 = vmatmul.bf16.gmra.mxu1 %v266_v0  ;;  %v5935_v0 = vld [vmem:[%s8173_s10 + $0x40] sm:$0xff]  ;;  %v157_v10 = vpack.c.bf16 %v121_v6, %v121_v6 }
  0xe5   :  { %v780_v11 = vpack.c.bf16 %v750_v8, %v750_v8  ;;  %724 = vmatmul.bf16.gmra.mxu2 %v6507_v4 }
  0xe6   :  { %v289_v5 = vunpack.c.l.b16 %v157_v10 }
  0xe7   :  { %v1005_v15 = vunpack.c.l.b16 %v780_v11  ;;  %v158_v11 = vpack.c.bf16 %v122_v61, %v122_v61 }
  0xe8   :  { %v685_v55 = vpop.f32.mrf.mxu2  ;;  %v519_v18 = vpop.f32.mrf.mxu0 }
  0xe9   :  { %v686_v17 = vadd.f32 %v685_v55, %v602_v9  ;;  %v603_v19 = vpop.f32.mrf.mxu1  ;;  %v6524_v22 = vpack.c.b16 %v1005_v15, %v1004_v14  ;;  %v520_v24 = vadd.f32 %v6455_v51, %v519_v18  ;;  %v290_v13 = vunpack.c.l.b16 %v158_v11 }
  0xeb   :  { %v751_v28 = vmax.f32 %v686_v17, 0.0  ;;  %v604_v29 = vadd.f32 %v603_v19, %v520_v24  ;;  %v293_v16 = vpack.c.b16 %v290_v13, %v289_v5 }
  0xed   :  { %v781_v40 = vpack.c.bf16 %v751_v28, %v751_v28 }
  0xef   :  { %v1006_v47 = vunpack.c.l.b16 %v781_v40 }
  0xf0   :  { %v687_v30 = vpop.f32.mrf.mxu2  ;;  %v522_v35 = vpop.f32.mrf.mxu0 }
  0xf1   :  { %v688_v34 = vadd.f32 %v687_v30, %v604_v29  ;;  %v606_v36 = vpop.f32.mrf.mxu1  ;;  %v523_v38 = vadd.f32 %v6455_v51, %v522_v35 }
  0xf3   :  { %v752_v41 = vmax.f32 %v688_v34, 0.0  ;;  %v607_v42 = vadd.f32 %v606_v36, %v523_v38  ;;  %561 = vmatmul.bf16.gmra.mxu0 %v6472_v12  ;;  %v5937_v12 = vld [vmem:[%s8173_s10 + $0x50] sm:$0xff] }
  0xf4   :  { %645 = vmatmul.bf16.gmra.mxu1 %v267_v31  ;;  %1615 = vmatpush.bf16.msrb.mxu2 %v5937_v12 }
  0xf5   :  { %v782_v43 = vpack.c.bf16 %v752_v41, %v752_v41  ;;  %729 = vmatmul.bf16.gmra.mxu2 %v291_v37 }
  0xf7   :  { %v1007_v48 = vunpack.c.l.b16 %v782_v43 }
  0xf8   :  { %v690_v49 = vpop.f32.mrf.mxu2  ;;  %v524_v52 = vpop.f32.mrf.mxu0  ;;  %1616 = vmatpush.bf16.msrb.mxu2 %v5936_v58 }
  0xf9   :  { %v6551_v50 = vadd.f32 %v690_v49, %v607_v42  ;;  %v6553_v53 = vpop.f32.mrf.mxu1  ;;  %v6555_v44 = vpack.c.b16 %v1007_v48, %v1006_v47  ;;  %v525_v40 = vadd.f32 %v6455_v51, %v524_v52 }
  0xfb   :  { %v609_v56 = vadd.f32 %v6553_v53, %v525_v40 }
  0xfc   :  { %1617 = vmatpush.bf16.msrb.mxu2 %v5935_v0 }
 0x100   :  { %v6560_v62 = vpop.f32.mrf.mxu2  ;;  %v527_v1 = vpop.f32.mrf.mxu0 }
 0x101   :  { %v611_v2 = vpop.f32.mrf.mxu1  ;;  %v528_v31 = vadd.f32 %v6455_v51, %v527_v1  ;;  %v693_v52 = vadd.f32 %v6560_v62, %v609_v56  ;;  %v753_v62 = vmax.f32 %v6551_v50, 0.0 }
 0x103   :  { %566 = vmatmul.bf16.gmra.mxu0 %v6489_v39  ;;  %v269_v39 = vpack.c.b16 %v254_v59, %v6530_v27  ;;  %v612_v41 = vadd.f32 %v611_v2, %v528_v31  ;;  %v754_v11 = vmax.f32 %v693_v52, 0.0 }
 0x104   :  { %650 = vmatmul.bf16.gmra.mxu1 %v268_v63 }
 0x105   :  { %734 = vmatmul.bf16.gmra.mxu2 %v292_v3 }
 0x108   :  { %v695_v7 = vpop.f32.mrf.mxu2  ;;  %v529_v8 = vpop.f32.mrf.mxu0 }
 0x109   :  { %v613_v9 = vpop.f32.mrf.mxu1  ;;  %v530_v33 = vadd.f32 %v6455_v51, %v529_v8  ;;  %v696_v59 = vadd.f32 %v695_v7, %v612_v41 }
 0x10b   :  { %v614_v42 = vadd.f32 %v613_v9, %v530_v33  ;;  %v755_v61 = vmax.f32 %v696_v59, 0.0 }
 0x110   :  { %v697_v14 = vpop.f32.mrf.mxu2  ;;  %v532_v15 = vpop.f32.mrf.mxu0 }
 0x111   :  { %v616_v55 = vpop.f32.mrf.mxu1  ;;  %v533_v26 = vadd.f32 %v6455_v51, %v532_v15  ;;  %v698_v47 = vadd.f32 %v697_v14, %v614_v42 }
 0x113   :  { %571 = vmatmul.bf16.gmra.mxu0 %v6507_v4  ;;  %v617_v34 = vadd.f32 %v616_v55, %v533_v26  ;;  %v756_v2 = vmax.f32 %v698_v47, 0.0  ;;  %v785_v55 = vpack.c.bf16 %v755_v61, %v755_v61 }
 0x114   :  { %655 = vmatmul.bf16.gmra.mxu1 %v269_v39 }
 0x115   :  { %739 = vmatmul.bf16.gmra.mxu2 %v293_v16  ;;  %v786_v5 = vpack.c.bf16 %v756_v2, %v756_v2 }
 0x118   :  { %v700_v17 = vpop.f32.mrf.mxu2  ;;  %v534_v18 = vpop.f32.mrf.mxu0 }
 0x119   :  { %v618_v19 = vpop.f32.mrf.mxu1  ;;  %v535_v27 = vadd.f32 %v6455_v51, %v534_v18  ;;  %v701_v32 = vadd.f32 %v700_v17, %v617_v34  ;;  %v784_v18 = vpack.c.bf16 %v754_v11, %v754_v11 }
 0x11b   :  { %v619_v35 = vadd.f32 %v618_v19, %v535_v27  ;;  %v757_v60 = vmax.f32 %v701_v32, 0.0  ;;  %v1011_v19 = vunpack.c.l.b16 %v786_v5 }
 0x11d   :  { %v787_v8 = vpack.c.bf16 %v757_v60, %v757_v60 }
 0x11f   :  { %v1012_v16 = vunpack.c.l.b16 %v787_v8 }
 0x120   :  { %v702_v20 = vpop.f32.mrf.mxu2  ;;  %v537_v21 = vpop.f32.mrf.mxu0 }
 0x121   :  { %v621_v24 = vpop.f32.mrf.mxu1  ;;  %v538_v25 = vadd.f32 %v6455_v51, %v537_v21  ;;  %v703_v38 = vadd.f32 %v702_v20, %v619_v35  ;;  %v783_v21 = vpack.c.bf16 %v753_v62, %v753_v62 }
 0x123   :  { %v622_v28 = vadd.f32 %v621_v24, %v538_v25  ;;  %v758_v48 = vmax.f32 %v703_v38, 0.0  ;;  %v1010_v24 = vunpack.c.l.b16 %v785_v55  ;;  %v1008_v33 = vunpack.c.l.b16 %v783_v21 }
 0x125   :  { %1618 = vmatmul.bf16.vlgmr.msrb.gmra.mxu2 %v6482_v23  ;;  %v788_v3 = vpack.c.bf16 %v758_v48, %v758_v48 }
 0x127   :  { %v1013_v13 = vunpack.c.l.b16 %v788_v3 }
 0x128   :  { %v705_v29 = vpop.f32.mrf.mxu2  ;;  %v539_v30 = vpop.f32.mrf.mxu0 }
 0x129   :  { %v623_v4 = vpop.f32.mrf.mxu1  ;;  %v706_v36 = vadd.f32 %v705_v29, %v622_v28  ;;  %v540_v37 = vadd.f32 %v6455_v51, %v539_v30  ;;  %v6592_v20 = vpack.c.b16 %v1013_v13, %v1012_v16  ;;  %v1009_v28 = vunpack.c.l.b16 %v784_v18 }
 0x12b   :  { %v759_v43 = vmax.f32 %v706_v36, 0.0  ;;  %v624_v45 = vadd.f32 %v623_v4, %v540_v37  ;;  %v6595_v4 = vpack.c.b16 %v1011_v19, %v1010_v24  ;;  %v1034_v38 = vpack.c.b16 %v1009_v28, %v1008_v33 }
 0x12d   :  { %v789_v63 = vpack.c.bf16 %v759_v43, %v759_v43 }
 0x12f   :  { %v1014_v9 = vunpack.c.l.b16 %v789_v63 }
 0x130   :  { %v707_v46 = vpop.f32.mrf.mxu2  ;;  %v542_v12 = vpop.f32.mrf.mxu0 }
 0x131   :  { %v708_v49 = vadd.f32 %v707_v46, %v624_v45  ;;  %v626_v54 = vpop.f32.mrf.mxu1  ;;  %v543_v58 = vadd.f32 %v6455_v51, %v542_v12 }
 0x133   :  { %v760_v0 = vmax.f32 %v708_v49, 0.0  ;;  %v627_v1 = vadd.f32 %v626_v54, %v543_v58 }
 0x135   :  { %v790_v6 = vpack.c.bf16 %v760_v0, %v760_v0  ;;  %1623 = vmatmul.bf16.gmra.mxu2 %v6500_v57 }
 0x137   :  { %v1015_v10 = vunpack.c.l.b16 %v790_v6 }
 0x138   :  { %v710_v53 = vpop.f32.mrf.mxu2  ;;  %v544_v14 = vpop.f32.mrf.mxu0 }
 0x139   :  { %v711_v7 = vadd.f32 %v710_v53, %v627_v1  ;;  %v628_v39 = vpop.f32.mrf.mxu1  ;;  %v6587_v15 = vpack.c.b16 %v1015_v10, %v1014_v9  ;;  %v545_v17 = vadd.f32 %v6455_v51, %v544_v14 }
 0x13b   :  { %1106 = vmatpush.bf16.msra.mxu3 %v6587_v15  ;;  %v761_v25 = vmax.f32 %v711_v7, 0.0  ;;  %v629_v26 = vadd.f32 %v628_v39, %v545_v17 }
 0x13d   :  { %v791_v34 = vpack.c.bf16 %v761_v25, %v761_v25 }
 0x13f   :  { %1107 = vmatpush.bf16.msra.mxu3 %v6592_v20  ;;  %v1016_v40 = vunpack.c.l.b16 %v791_v34 }
 0x140   :  { %v712_v27 = vpop.f32.mrf.mxu2  ;;  %v547_v50 = vpop.f32.mrf.mxu0 }
 0x141   :  { %v713_v29 = vadd.f32 %v712_v27, %v629_v26  ;;  %v631_v30 = vpop.f32.mrf.mxu1  ;;  %v548_v31 = vadd.f32 %v6455_v51, %v547_v50 }
 0x143   :  { %v762_v35 = vmax.f32 %v713_v29, 0.0  ;;  %1108 = vmatpush.bf16.msra.mxu3 %v6595_v4  ;;  %v632_v36 = vadd.f32 %v631_v30, %v548_v31 }
 0x145   :  { %v792_v37 = vpack.c.bf16 %v762_v35, %v762_v35  ;;  %1628 = vmatmul.bf16.gmra.mxu2 %v6524_v22 }
 0x147   :  { %v1017_v41 = vunpack.c.l.b16 %v792_v37  ;;  %1109 = vmatpush.bf16.msra.mxu3 %v1034_v38 }
 0x148   :  { %v715_v42 = vpop.f32.mrf.mxu2  ;;  %v549_v43 = vpop.f32.mrf.mxu0 }
 0x149   :  { %v716_v32 = vadd.f32 %v715_v42, %v632_v36  ;;  %v633_v45 = vpop.f32.mrf.mxu1  ;;  %v6600_v46 = vpack.c.b16 %v1017_v41, %v1016_v40  ;;  %v550_v47 = vadd.f32 %v6455_v51, %v549_v43  ;;  %v5898_v41 = vld [vmem:[%s8174_s28 + $0x4] sm:$0xf0] }
 0x14b   :  { %1110 = vmatpush.bf16.msra.mxu3 %v6555_v44  ;;  %v763_v48 = vmax.f32 %v716_v32, 0.0  ;;  %v634_v49 = vadd.f32 %v633_v45, %v550_v47 }
 0x14d   :  { %v793_v60 = vpack.c.bf16 %v763_v48, %v763_v48 }
 0x14f   :  { %1111 = vmatpush.bf16.msra.mxu3 %v6524_v22  ;;  %v1018_v1 = vunpack.c.l.b16 %v793_v60 }
 0x150   :  { %v717_v12 = vpop.f32.mrf.mxu2  ;;  %v552_v56 = vpop.f32.mrf.mxu0 }
 0x151   :  { %v718_v54 = vadd.f32 %v717_v12, %v634_v49  ;;  %v636_v58 = vpop.f32.mrf.mxu1  ;;  %v553_v59 = vadd.f32 %v6455_v51, %v552_v56 }
 0x153   :  { %v764_v63 = vmax.f32 %v718_v54, 0.0  ;;  %1112 = vmatpush.bf16.msra.mxu3 %v6500_v57  ;;  %v637_v0 = vadd.f32 %v636_v58, %v553_v59 }
 0x155   :  { %v794_v52 = vpack.c.bf16 %v764_v63, %v764_v63  ;;  %1633 = vmatmul.bf16.gmra.mxu2 %v6555_v44 }
 0x157   :  { %v1019_v2 = vunpack.c.l.b16 %v794_v52  ;;  %1113 = vmatpush.bf16.msra.mxu3 %v6482_v23 }
 0x158   :  { %v720_v3 = vpop.f32.mrf.mxu2  ;;  %v554_v6 = vpop.f32.mrf.mxu0 }
 0x159   :  { %v721_v22 = vadd.f32 %v720_v3, %v637_v0  ;;  %v638_v61 = vpop.f32.mrf.mxu1  ;;  %v6609_v8 = vpack.c.b16 %v1019_v2, %v1018_v1  ;;  %v555_v9 = vadd.f32 %v6455_v51, %v554_v6 }
 0x15b   :  { %v765_v10 = vmax.f32 %v721_v22, 0.0  ;;  %v639_v11 = vadd.f32 %v638_v61, %v555_v9 }
 0x15d   :  { %v795_v7 = vpack.c.bf16 %v765_v10, %v765_v10 }
 0x15f   :  { %v1020_v62 = vunpack.c.l.b16 %v795_v7 }
 0x160   :  { %v722_v53 = vpop.f32.mrf.mxu2  ;;  %v557_v5 = vpop.f32.mrf.mxu0 }
 0x161   :  { %v723_v57 = vadd.f32 %v722_v53, %v639_v11  ;;  %v641_v13 = vpop.f32.mrf.mxu1  ;;  %v558_v44 = vadd.f32 %v6455_v51, %v557_v5 }
 0x163   :  { %v766_v14 = vmax.f32 %v723_v57, 0.0  ;;  %v642_v39 = vadd.f32 %v641_v13, %v558_v44 }
 0x165   :  { %v796_v23 = vpack.c.bf16 %v766_v14, %v766_v14  ;;  %1638 = vmatmul.bf16.gmra.mxu2 %v1034_v38  ;;  %v5900_v14 = vld [vmem:[%s8174_s28 + $0x14] sm:$0xf0] }
 0x167   :  { %v1021_v55 = vunpack.c.l.b16 %v796_v23 }
 0x168   :  { %v725_v16 = vpop.f32.mrf.mxu2  ;;  %v559_v18 = vpop.f32.mrf.mxu0 }
 0x169   :  { %v6613_v17 = vadd.f32 %v725_v16, %v642_v39  ;;  %v643_v19 = vpop.f32.mrf.mxu1  ;;  %v6615_v21 = vpack.c.b16 %v1021_v55, %v1020_v62  ;;  %v560_v59 = vadd.f32 %v6455_v51, %v559_v18 }
 0x16b   :  { %v644_v9 = vadd.f32 %v643_v19, %v560_v59  ;;  %v5908_v59 = vld [vmem:[%s8174_s28 + $0x54] sm:$0xf0] }
 0x170   :  { %v727_v24 = vpop.f32.mrf.mxu2  ;;  %v562_v25 = vpop.f32.mrf.mxu0 }
 0x171   :  { %v646_v26 = vpop.f32.mrf.mxu1  ;;  %v563_v48 = vadd.f32 %v6455_v51, %v562_v25  ;;  %v728_v5 = vadd.f32 %v727_v24, %v644_v9  ;;  %v5905_v9 = vld [vmem:[%s8174_s28 + $0x44] sm:$0xf] }
 0x173   :  { %v647_v60 = vadd.f32 %v646_v26, %v563_v48  ;;  %v768_v18 = vmax.f32 %v728_v5, 0.0  ;;  %v767_v26 = vmax.f32 %v6613_v17, 0.0  ;;  %v4928_v17 = vld [vmem:[%s8174_s28 + $0x20] sm:$0xf]  ;;  %v5906_v48 = vld [vmem:[%s8174_s28 + $0x44] sm:$0xf0] }
 0x174   :  { %v5912_v5 = vld [vmem:[%s8174_s28 + $0x74] sm:$0xf0] }
 0x175   :  { %1643 = vmatmul.bf16.gmra.mxu2 %v6595_v4  ;;  %v4912_v4 = vld [vmem:[%s8174_s28] sm:$0xf] }
 0x176   :  { %v4913_v42 = vor.u32 %v5898_v41, %v4912_v4  ;;  %v5897_v4 = vld [vmem:[%s8174_s28 + $0x4] sm:$0xf]  ;;  %v4914_v41 = vld [vmem:[%s8174_s28 + $0x8] sm:$0xf0] }
 0x178   :  { %v730_v27 = vpop.f32.mrf.mxu2  ;;  %v564_v28 = vpop.f32.mrf.mxu0  ;;  %1114 = vmatmul.bf16.vlgmr.msra.gmra.mxu3 %v4913_v42  ;;  %v4917_v42 = vor.u32 %v5897_v4, %v4914_v41  ;;  %v5918_v4 = vld [vmem:[%s8174_s28 + $0xa4] sm:$0xf0] }
 0x179   :  { %v648_v29 = vpop.f32.mrf.mxu1  ;;  %v731_v10 = vadd.f32 %v730_v27, %v647_v60 }
 0x17b   :  { %v769_v23 = vmax.f32 %v731_v10, 0.0  ;;  %v4946_v10 = vld [vmem:[%s8174_s28 + $0x48] sm:$0xf0] }
 0x17d   :  { %v799_v27 = vpack.c.bf16 %v769_v23, %v769_v23  ;;  %v5914_v23 = vld [vmem:[%s8174_s28 + $0x84] sm:$0xf0] }
 0x180   :  { %v732_v50 = vpop.f32.mrf.mxu2  ;;  %v567_v30 = vpop.f32.mrf.mxu0 }
 0x181   :  { %v651_v31 = vpop.f32.mrf.mxu1 }
 0x185   :  { %1648 = vmatmul.bf16.gmra.mxu2 %v6592_v20  ;;  %v568_v20 = vadd.f32 %v6455_v51, %v567_v30 }
 0x187   :  { %v652_v49 = vadd.f32 %v651_v31, %v568_v20  ;;  %v797_v31 = vpack.c.bf16 %v767_v26, %v767_v26  ;;  %v4936_v20 = vld [vmem:[%s8174_s28 + $0x30] sm:$0xf] }
 0x188   :  { %v735_v33 = vpop.f32.mrf.mxu2  ;;  %v569_v34 = vpop.f32.mrf.mxu0 }
 0x189   :  { %v653_v35 = vpop.f32.mrf.mxu1  ;;  %v570_v32 = vadd.f32 %v6455_v51, %v569_v34  ;;  %v736_v52 = vadd.f32 %v735_v33, %v652_v49  ;;  %v1024_v33 = vunpack.c.l.b16 %v799_v27  ;;  %v5930_v27 = vld [vmem:[%s8173_s10 + $0x18] sm:$0xff] }
 0x18b   :  { %v654_v12 = vadd.f32 %v653_v35, %v570_v32  ;;  %v771_v11 = vmax.f32 %v736_v52, 0.0  ;;  %v4938_v52 = vld [vmem:[%s8174_s28 + $0x38] sm:$0xf0] }
 0x18d   :  { %v801_v62 = vpack.c.bf16 %v771_v11, %v771_v11  ;;  %v4949_v11 = vor.u32 %v5905_v9, %v4946_v10 }
 0x190   :  { %v737_v36 = vpop.f32.mrf.mxu2  ;;  %v572_v37 = vpop.f32.mrf.mxu0 }
 0x191   :  { %v573_v38 = vadd.f32 %v6455_v51, %v572_v37  ;;  %v656_v40 = vpop.f32.mrf.mxu1  ;;  %v738_v58 = vadd.f32 %v737_v36, %v654_v12  ;;  %v1022_v36 = vunpack.c.l.b16 %v797_v31  ;;  %v5901_v12 = vld [vmem:[%s8174_s28 + $0x24] sm:$0xf]  ;;  %v5929_v31 = vld [vmem:[%s8173_s10 + $0x10] sm:$0xff] }
 0x193   :  { %v657_v43 = vadd.f32 %v656_v40, %v573_v38  ;;  %v772_v6 = vmax.f32 %v738_v58, 0.0  ;;  %v5902_v38 = vld [vmem:[%s8174_s28 + $0x24] sm:$0xf0]  ;;  %v4952_v58 = vld [vmem:[%s8174_s28 + $0x50] sm:$0xf] }
 0x194   :  { %v4929_v40 = vor.u32 %v5902_v38, %v4928_v17  ;;  %v4953_v60 = vor.u32 %v5908_v59, %v4952_v58 }
 0x195   :  { %1653 = vmatmul.bf16.gmra.mxu2 %v6587_v15  ;;  %v565_v15 = vadd.f32 %v6455_v51, %v564_v28  ;;  %v802_v44 = vpack.c.bf16 %v772_v6, %v772_v6  ;;  %v1026_v28 = vunpack.c.l.b16 %v801_v62 }
 0x197   :  { %v649_v0 = vadd.f32 %v648_v29, %v565_v15  ;;  %v1027_v24 = vunpack.c.l.b16 %v802_v44  ;;  %v798_v29 = vpack.c.bf16 %v768_v18, %v768_v18  ;;  %v5907_v44 = vld [vmem:[%s8174_s28 + $0x54] sm:$0xf] }
 0x198   :  { %v740_v45 = vpop.f32.mrf.mxu2  ;;  %v574_v47 = vpop.f32.mrf.mxu0 }
 0x199   :  { %v741_v54 = vadd.f32 %v740_v45, %v657_v43  ;;  %v575_v56 = vadd.f32 %v6455_v51, %v574_v47  ;;  %v658_v63 = vpop.f32.mrf.mxu1  ;;  %v733_v22 = vadd.f32 %v732_v50, %v649_v0  ;;  %v4920_v51 = vld [vmem:[%s8174_s28 + $0x10] sm:$0xf]  ;;  %v1043_v30 = vpack.c.b16 %v1027_v24, %v1026_v28  ;;  %v5899_v43 = vld [vmem:[%s8174_s28 + $0x14] sm:$0xf]  ;;  %v4944_v47 = vld [vmem:[%s8174_s28 + $0x40] sm:$0xf] }
 0x19a   :  { %v4921_v39 = vor.u32 %v5900_v14, %v4920_v51  ;;  %v1023_v34 = vunpack.c.l.b16 %v798_v29  ;;  %v4945_v15 = vor.u32 %v5906_v48, %v4944_v47  ;;  %v5903_v0 = vld [vmem:[%s8174_s28 + $0x34] sm:$0xf]  ;;  %v5934_v51 = vld [vmem:[%s8173_s10 + $0x38] sm:$0xff]  ;;  %v4962_v24 = vld [vmem:[%s8174_s28 + $0x68] sm:$0xf0] }
 0x19b   :  { %v773_v1 = vmax.f32 %v741_v54, 0.0  ;;  %v659_v2 = vadd.f32 %v658_v63, %v575_v56  ;;  %v770_v13 = vmax.f32 %v733_v22, 0.0  ;;  %v4930_v54 = vld [vmem:[%s8174_s28 + $0x28] sm:$0xf0]  ;;  %v5910_v22 = vld [vmem:[%s8174_s28 + $0x64] sm:$0xf0]  ;;  %1526 = vmatpush.bf16.msrb.mxu1 %v5934_v51 }
 0x19c   :  { %1119 = vmatmul.bf16.gmra.mxu3 %v4921_v39  ;;  %v1041_v37 = vpack.c.b16 %v1023_v34, %v1022_v36  ;;  %v4933_v56 = vor.u32 %v5901_v12, %v4930_v54  ;;  %v4976_v39 = vld [vmem:[%s8174_s28 + $0x80] sm:$0xf]  ;;  %v4984_v29 = vld [vmem:[%s8174_s28 + $0x90] sm:$0xf]  ;;  %v4970_v36 = vld [vmem:[%s8174_s28 + $0x78] sm:$0xf0] }
 0x19d   :  { %v803_v53 = vpack.c.bf16 %v773_v1, %v773_v1  ;;  %v800_v19 = vpack.c.bf16 %v770_v13, %v770_v13  ;;  %v4977_v62 = vor.u32 %v5914_v23, %v4976_v39  ;;  %v5920_v47 = vld [vmem:[%s8174_s28 + $0xb4] sm:$0xf0]  ;;  %v5917_v39 = vld [vmem:[%s8174_s28 + $0xa4] sm:$0xf]  ;;  %v4994_v23 = vld [vmem:[%s8174_s28 + $0xa8] sm:$0xf0] }
 0x19f   :  { %v1028_v55 = vunpack.c.l.b16 %v803_v53  ;;  %v1025_v50 = vunpack.c.l.b16 %v800_v19  ;;  %v5909_v19 = vld [vmem:[%s8174_s28 + $0x64] sm:$0xf] }
 0x1a0   :  { %v742_v3 = vpop.f32.mrf.mxu2  ;;  %v4965_v26 = vor.u32 %v5909_v19, %v4962_v24 }
 0x1a1   :  { %v743_v61 = vadd.f32 %v742_v3, %v659_v2  ;;  %v1042_v35 = vpack.c.b16 %v1025_v50, %v1024_v33  ;;  %v4941_v2 = vor.u32 %v5903_v0, %v4938_v52  ;;  %v4960_v3 = vld [vmem:[%s8174_s28 + $0x60] sm:$0xf]  ;;  %v5916_v50 = vld [vmem:[%s8174_s28 + $0x94] sm:$0xf0]  ;;  %v5928_v33 = vld [vmem:[%s8173_s10 + $0x8] sm:$0xff] }
 0x1a2   :  { %v4961_v6 = vor.u32 %v5910_v22, %v4960_v3  ;;  %v4986_v0 = vld [vmem:[%s8174_s28 + $0x98] sm:$0xf0] }
 0x1a3   :  { %v774_v57 = vmax.f32 %v743_v61, 0.0 }
 0x1a5   :  { %v804_v7 = vpack.c.bf16 %v774_v57, %v774_v57  ;;  %1658 = vmatmul.bf16.gmra.mxu2 %v6600_v46  ;;  %v4968_v57 = vld [vmem:[%s8174_s28 + $0x70] sm:$0xf] }
 0x1a6   :  { %v4969_v13 = vor.u32 %v5912_v5, %v4968_v57 }
 0x1a7   :  { %v1029_v16 = vunpack.c.l.b16 %v804_v7  ;;  %v4954_v7 = vld [vmem:[%s8174_s28 + $0x58] sm:$0xf0] }
 0x1a8   :  { %v6674_v45 = vpop.f32.mrf.mxu2  ;;  %v4957_v14 = vor.u32 %v5907_v44, %v4954_v7  ;;  %v5008_v44 = vld [vmem:[%s8174_s28 + $0xc0] sm:$0xf]  ;;  %v5922_v7 = vld [vmem:[%s8174_s28 + $0xc4] sm:$0xf0] }
 0x1a9   :  { %v6640_v25 = vpack.c.b16 %v1029_v16, %v1028_v55  ;;  %v5933_v55 = vld [vmem:[%s8173_s10 + $0x30] sm:$0xff]  ;;  %v5932_v16 = vld [vmem:[%s8173_s10 + $0x28] sm:$0xff] }
 0x1aa   :  { %1527 = vmatpush.bf16.msrb.mxu1 %v5933_v55 }
 0x1ab   :  { %1191 = vmatpush.bf16.msrb.mxu0 %v6640_v25 }
 0x1ac   :  { %1124 = vmatmul.bf16.gmra.mxu3 %v4929_v40  ;;  %v4992_v40 = vld [vmem:[%s8174_s28 + $0xa0] sm:$0xf] }
 0x1ad   :  { %v4993_v41 = vor.u32 %v5918_v4, %v4992_v40 }
 0x1ae   :  { %1528 = vmatpush.bf16.msrb.mxu1 %v5932_v16 }
 0x1af   :  { %1192 = vmatpush.bf16.msrb.mxu0 %v1043_v30 }
 0x1b0   :  { %v6683_v49 = vpop.f32.mrf.mxu2 }
 0x1b3   :  { %1193 = vmatpush.bf16.msrb.mxu0 %v1042_v35 }
 0x1b5   :  { %1663 = vmatmul.bf16.gmra.mxu2 %v6609_v8 }
 0x1b7   :  { %1194 = vmatpush.bf16.msrb.mxu0 %v1041_v37 }
 0x1b8   :  { %v6698_v63 = vpop.f32.mrf.mxu2 }
 0x1bb   :  { %1195 = vmatpush.bf16.msrb.mxu0 %v6615_v21 }
 0x1bf   :  { %1196 = vmatpush.bf16.msrb.mxu0 %v6609_v8  ;;  %v5904_v8 = vld [vmem:[%s8174_s28 + $0x34] sm:$0xf0] }
 0x1c0   :  { %v4937_v32 = vor.u32 %v5904_v8, %v4936_v20  ;;  %v6706_v1 = vpop.f32.mrf.mxu2  ;;  %v5913_v20 = vld [vmem:[%s8174_s28 + $0x84] sm:$0xf]  ;;  %v4978_v8 = vld [vmem:[%s8174_s28 + $0x88] sm:$0xf0] }
 0x1c2   :  { %1129 = vmatmul.bf16.gmra.mxu3 %v4937_v32  ;;  %v4981_v32 = vor.u32 %v5913_v20, %v4978_v8 }
 0x1c3   :  { %1197 = vmatpush.bf16.msrb.mxu0 %v6600_v46  ;;  %v4922_v46 = vld [vmem:[%s8174_s28 + $0x18] sm:$0xf0] }
 0x1c5   :  { %1668 = vmatmul.bf16.gmra.mxu2 %v6615_v21  ;;  %v4925_v21 = vor.u32 %v5899_v43, %v4922_v46 }
 0x1c6   :  { %5030 = vmatmul.msk.bf16.vlgmr.msrb.gmra.mxu0 %vm1060_vm0, %v4917_v42 }
 0x1c8   :  { %v6715_v61 = vpop.f32.mrf.mxu2 }
 0x1d0   :  { %v6723_v53 = vpop.f32.mrf.mxu2 }
 0x1d2   :  { %1134 = vmatmul.bf16.gmra.mxu3 %v4945_v15 }
 0x1d5   :  { %1673 = vmatmul.bf16.gmra.mxu2 %v1041_v37  ;;  %v5927_v37 = vld [vmem:[%s8173_s10] sm:$0xff] }
 0x1d6   :  { %5031 = vmatmul.msk.bf16.gmra.mxu0 %vm1060_vm0, %v4925_v21  ;;  %v5000_v21 = vld [vmem:[%s8174_s28 + $0xb0] sm:$0xf] }
 0x1d7   :  { %v5001_v48 = vor.u32 %v5920_v47, %v5000_v21  ;;  %v5921_v47 = vld [vmem:[%s8174_s28 + $0xc4] sm:$0xf] }
 0x1e2   :  { %1139 = vmatmul.bf16.gmra.mxu3 %v4953_v60  ;;  %v5915_v60 = vld [vmem:[%s8174_s28 + $0x94] sm:$0xf] }
 0x1e3   :  { %v4989_v22 = vor.u32 %v5915_v60, %v4986_v0 }
 0x1e5   :  { %1678 = vmatmul.bf16.gmra.mxu2 %v1042_v35  ;;  %v5911_v35 = vld [vmem:[%s8174_s28 + $0x74] sm:$0xf] }
 0x1e6   :  { %5032 = vmatmul.msk.bf16.gmra.mxu0 %vm1060_vm0, %v4933_v56  ;;  %v4973_v17 = vor.u32 %v5911_v35, %v4970_v36  ;;  %v5002_v35 = vld [vmem:[%s8174_s28 + $0xb8] sm:$0xf0] }
 0x1f2   :  { %1144 = vmatmul.bf16.gmra.mxu3 %v4961_v6 }
 0x1f5   :  { %1683 = vmatmul.bf16.gmra.mxu2 %v1043_v30  ;;  %v4985_v30 = vor.u32 %v5916_v50, %v4984_v29  ;;  %v5016_v29 = vld [vmem:[%s8174_s28 + $0xd0] sm:$0xf]  ;;  %v5924_v50 = vld [vmem:[%s8174_s28 + $0xd4] sm:$0xf0] }
 0x1f6   :  { %5033 = vmatmul.msk.bf16.gmra.mxu0 %vm1060_vm0, %v4941_v2 }
 0x1fb   :  { %v1115_v18 = vpop.f32.mrf.mxu3 }
 0x202   :  { %1149 = vmatmul.bf16.gmra.mxu3 %v4969_v13 }
 0x203   :  { %v1117_v28 = vpop.f32.mrf.mxu3 }
 0x205   :  { %1688 = vmatmul.bf16.gmra.mxu2 %v6640_v25  ;;  %v5931_v25 = vld [vmem:[%s8173_s10 + $0x20] sm:$0xff] }
 0x206   :  { %5034 = vmatmul.msk.bf16.gmra.mxu0 %vm1060_vm0, %v4949_v11  ;;  %1529 = vmatpush.bf16.msrb.mxu1 %v5931_v25 }
 0x20a   :  { %1530 = vmatpush.bf16.msrb.mxu1 %v5930_v27 }
 0x20e   :  { %1531 = vmatpush.bf16.msrb.mxu1 %v5929_v31 }
 0x212   :  { %1154 = vmatmul.bf16.gmra.mxu3 %v4977_v62  ;;  %1532 = vmatpush.bf16.msrb.mxu1 %v5928_v33  ;;  %v5017_v33 = vor.u32 %v5924_v50, %v5016_v29  ;;  %v5949_v50 = vld [vmem:[%s8175_s29 + $0x30] sm:$0xff] }
 0x216   :  { %5035 = vmatmul.msk.bf16.gmra.mxu0 %vm1060_vm0, %v4957_v14  ;;  %1533 = vmatpush.bf16.msrb.mxu1 %v5927_v37  ;;  %v5009_v14 = vor.u32 %v5922_v7, %v5008_v44 }
 0x21f   :  { %v1120_v34 = vpop.f32.mrf.mxu3 }
 0x222   :  { %1159 = vmatmul.bf16.gmra.mxu3 %v4985_v30 }
 0x226   :  { %5036 = vmatmul.msk.bf16.gmra.mxu0 %vm1060_vm0, %v4965_v26 }
 0x227   :  { %v1122_v38 = vpop.f32.mrf.mxu3 }
 0x22f   :  { %v1125_v42 = vpop.f32.mrf.mxu3 }
 0x232   :  { %1164 = vmatmul.bf16.gmra.mxu3 %v4993_v41 }
 0x236   :  { %5037 = vmatmul.msk.bf16.gmra.mxu0 %vm1060_vm0, %v4973_v17 }
 0x237   :  { %v1127_v46 = vpop.f32.mrf.mxu3 }
 0x242   :  { %1169 = vmatmul.bf16.gmra.mxu3 %v5001_v48  ;;  %v5010_v48 = vld [vmem:[%s8174_s28 + $0xc8] sm:$0xf0] }
 0x243   :  { %v1199_v43 = vpop.f32.mrf.mxu0 }
 0x244   :  { %v1200_v15 = vadd.f32 %v1199_v43, %v1115_v18  ;;  %v4997_v18 = vor.u32 %v5917_v39, %v4994_v23  ;;  %v5926_v43 = vld [vmem:[%s8174_s28 + $0xe4] sm:$0xf0] }
 0x245   :  { %v1130_v54 = vpop.f32.mrf.mxu3 }
 0x246   :  { %5038 = vmatmul.msk.bf16.gmra.mxu0 %vm1060_vm0, %v4981_v32  ;;  %v1274_v56 = vpack.c.bf16 %v1200_v15, %v1200_v15  ;;  %v5024_v32 = vld [vmem:[%s8174_s28 + $0xe0] sm:$0xf] }
 0x247   :  { %v5025_v21 = vor.u32 %v5926_v43, %v5024_v32 }
 0x248   :  { %v1334_v52 = vunpack.c.l.b16 %v1274_v56 }
 0x24b   :  { %v1201_v12 = vpop.f32.mrf.mxu0 }
 0x24c   :  { %v1202_v58 = vadd.f32 %v1201_v12, %v1117_v28 }
 0x24d   :  { %v1132_v9 = vpop.f32.mrf.mxu3 }
 0x24e   :  { %v1275_v59 = vpack.c.bf16 %v1202_v58, %v1202_v58  ;;  %v5013_v58 = vor.u32 %v5921_v47, %v5010_v48 }
 0x250   :  { %v1335_v2 = vunpack.c.l.b16 %v1275_v59 }
 0x252   :  { %v1364_v3 = vpack.c.b16 %v1335_v2, %v1334_v52  ;;  %1174 = vmatmul.bf16.gmra.mxu3 %v5009_v14 }
 0x253   :  { %v1204_v6 = vpop.f32.mrf.mxu0 }
 0x254   :  { %1534 = vmatmul.bf16.vlgmr.msrb.gmra.mxu1 %v1364_v3  ;;  %v1205_v10 = vadd.f32 %v1204_v6, %v1120_v34  ;;  %v5919_v34 = vld [vmem:[%s8174_s28 + $0xb4] sm:$0xf] }
 0x255   :  { %v1135_v57 = vpop.f32.mrf.mxu3  ;;  %v5923_v6 = vld [vmem:[%s8174_s28 + $0xd4] sm:$0xf] }
 0x256   :  { %5039 = vmatmul.msk.bf16.gmra.mxu0 %vm1060_vm0, %v4989_v22  ;;  %v1276_v5 = vpack.c.bf16 %v1205_v10, %v1205_v10 }
 0x258   :  { %v1336_v62 = vunpack.c.l.b16 %v1276_v5 }
 0x25b   :  { %v1206_v11 = vpop.f32.mrf.mxu0 }
 0x25c   :  { %v1207_v13 = vadd.f32 %v1206_v11, %v1122_v38  ;;  %v5005_v38 = vor.u32 %v5919_v34, %v5002_v35  ;;  %v5948_v34 = vld [vmem:[%s8175_s29 + $0x28] sm:$0xff] }
 0x25d   :  { %v1137_v24 = vpop.f32.mrf.mxu3 }
 0x25e   :  { %v1277_v51 = vpack.c.bf16 %v1207_v13, %v1207_v13 }
 0x260   :  { %v1337_v55 = vunpack.c.l.b16 %v1277_v51 }
 0x262   :  { %v1365_v16 = vpack.c.b16 %v1337_v55, %v1336_v62  ;;  %1179 = vmatmul.bf16.gmra.mxu3 %v5017_v33  ;;  %v5925_v62 = vld [vmem:[%s8174_s28 + $0xe4] sm:$0xf]  ;;  %v5026_v55 = vld [vmem:[%s8174_s28 + $0xe8] sm:$0xf0] }
 0x263   :  { %v1209_v19 = vpop.f32.mrf.mxu0 }
 0x264   :  { %1539 = vmatmul.bf16.gmra.mxu1 %v1365_v16  ;;  %v1210_v25 = vadd.f32 %v1209_v19, %v1125_v42 }
 0x265   :  { %v1140_v30 = vpop.f32.mrf.mxu3 }
 0x266   :  { %5040 = vmatmul.msk.bf16.gmra.mxu0 %vm1060_vm0, %v4997_v18  ;;  %v1278_v27 = vpack.c.bf16 %v1210_v25, %v1210_v25  ;;  %v5029_v25 = vor.u32 %v5925_v62, %v5026_v55 }
 0x268   :  { %v1338_v36 = vunpack.c.l.b16 %v1278_v27  ;;  %v5950_v27 = vld [vmem:[%s8175_s29 + $0x38] sm:$0xff] }
 0x269   :  { %2064 = vmatpush.bf16.msrb.mxu3 %v5950_v27 }
 0x26b   :  { %v1211_v26 = vpop.f32.mrf.mxu0 }
 0x26c   :  { %v1212_v28 = vadd.f32 %v1211_v26, %v1127_v46 }
 0x26d   :  { %v1142_v4 = vpop.f32.mrf.mxu3  ;;  %2065 = vmatpush.bf16.msrb.mxu3 %v5949_v50 }
 0x26e   :  { %v1279_v31 = vpack.c.bf16 %v1212_v28, %v1212_v28 }
 0x270   :  { %v1339_v37 = vunpack.c.l.b16 %v1279_v31 }
 0x271   :  { %2066 = vmatpush.bf16.msrb.mxu3 %v5948_v34 }
 0x272   :  { %v1366_v17 = vpack.c.b16 %v1339_v37, %v1338_v36  ;;  %1184 = vmatmul.bf16.gmra.mxu3 %v5025_v21  ;;  %v5944_v21 = vld [vmem:[%s8175_s29 + $0x8] sm:$0xff] }
 0x273   :  { %v1214_v40 = vpop.f32.mrf.mxu0 }
 0x274   :  { %1544 = vmatmul.bf16.gmra.mxu1 %v1366_v17  ;;  %v1215_v41 = vadd.f32 %v1214_v40, %v1130_v54  ;;  %v5947_v17 = vld [vmem:[%s8175_s29 + $0x20] sm:$0xff] }
 0x275   :  { %v1145_v54 = vpop.f32.mrf.mxu3  ;;  %2067 = vmatpush.bf16.msrb.mxu3 %v5947_v17 }
 0x276   :  { %5041 = vmatmul.msk.bf16.gmra.mxu0 %vm1060_vm0, %v5005_v38  ;;  %v1280_v20 = vpack.c.bf16 %v1215_v41, %v1215_v41  ;;  %v5946_v41 = vld [vmem:[%s8175_s29 + $0x18] sm:$0xff] }
 0x278   :  { %v1340_v15 = vunpack.c.l.b16 %v1280_v20  ;;  %v5945_v20 = vld [vmem:[%s8175_s29 + $0x10] sm:$0xff] }
 0x279   :  { %2068 = vmatpush.bf16.msrb.mxu3 %v5946_v41 }
 0x27b   :  { %v1216_v42 = vpop.f32.mrf.mxu0 }
 0x27c   :  { %v1217_v8 = vadd.f32 %v1216_v42, %v1132_v9  ;;  %v5018_v9 = vld [vmem:[%s8174_s28 + $0xd8] sm:$0xf0]  ;;  %s8176_s28 = sld [smem:[#allocation7_spill]] }
 0x27d   :  { %v1147_v52 = vpop.f32.mrf.mxu3  ;;  %v5021_v13 = vor.u32 %v5923_v6, %v5018_v9  ;;  %2069 = vmatpush.bf16.msrb.mxu3 %v5945_v20 }
 0x27e   :  { %v1281_v46 = vpack.c.bf16 %v1217_v8, %v1217_v8 }
 0x280   :  { %v1341_v12 = vunpack.c.l.b16 %v1281_v46 }
 0x281   :  { %2070 = vmatpush.bf16.msrb.mxu3 %v5944_v21 }
 0x282   :  { %v1367_v56 = vpack.c.b16 %v1341_v12, %v1340_v15  ;;  %v5943_v12 = vld [vmem:[%s8175_s29] sm:$0xff] }
 0x283   :  { %v1219_v59 = vpop.f32.mrf.mxu0 }
 0x284   :  { %1549 = vmatmul.bf16.gmra.mxu1 %v1367_v56  ;;  %v1220_v60 = vadd.f32 %v1219_v59, %v1135_v57 }
 0x285   :  { %v1150_v57 = vpop.f32.mrf.mxu3  ;;  %2071 = vmatpush.bf16.msrb.mxu3 %v5943_v12 }
 0x286   :  { %5042 = vmatmul.msk.bf16.gmra.mxu0 %vm1060_vm0, %v5013_v58  ;;  %v1282_v2 = vpack.c.bf16 %v1220_v60, %v1220_v60 }
 0x288   :  { %v1342_v10 = vunpack.c.l.b16 %v1282_v2 }
 0x28b   :  { %v1221_v0 = vpop.f32.mrf.mxu0 }
 0x28c   :  { %v1222_v3 = vadd.f32 %v1221_v0, %v1137_v24 }
 0x28d   :  { %v1152_v16 = vpop.f32.mrf.mxu3 }
 0x28e   :  { %v1283_v22 = vpack.c.bf16 %v1222_v3, %v1222_v3  ;;  %v6896_v3 = vld [vmem:[%s8176_s28] ss:$0 sm:$0xff] }
 0x290   :  { %v1343_v11 = vunpack.c.l.b16 %v1283_v22 }
 0x292   :  { %v1368_v5 = vpack.c.b16 %v1343_v11, %v1342_v10 }
 0x293   :  { %v1224_v44 = vpop.f32.mrf.mxu0 }
 0x294   :  { %1554 = vmatmul.bf16.gmra.mxu1 %v1368_v5  ;;  %v1225_v7 = vadd.f32 %v1224_v44, %v1140_v30  ;;  %v6899_v44 = vpop.f32.mrf.mxu2 }
 0x295   :  { %v1155_v29 = vpop.f32.mrf.mxu3 }
 0x296   :  { %5043 = vmatmul.msk.bf16.gmra.mxu0 %vm1060_vm0, %v5021_v13  ;;  %v1284_v14 = vpack.c.bf16 %v1225_v7, %v1225_v7 }
 0x298   :  { %v1344_v18 = vunpack.c.l.b16 %v1284_v14 }
 0x29b   :  { %v1226_v51 = vpop.f32.mrf.mxu0 }
 0x29c   :  { %v1227_v39 = vadd.f32 %v1226_v51, %v1142_v4 }
 0x29d   :  { %v1157_v4 = vpop.f32.mrf.mxu3 }
 0x29e   :  { %v1285_v23 = vpack.c.bf16 %v1227_v39, %v1227_v39  ;;  %v5965_v39 = vld [vmem:[%s8175_s29 + $0xb0] sm:$0xff] }
 0x2a0   :  { %v1345_v19 = vunpack.c.l.b16 %v1285_v23 }
 0x2a2   :  { %v1369_v24 = vpack.c.b16 %v1345_v19, %v1344_v18 }
 0x2a3   :  { %v1229_v26 = vpop.f32.mrf.mxu0 }
 0x2a4   :  { %1559 = vmatmul.bf16.gmra.mxu1 %v1369_v24  ;;  %v1230_v28 = vadd.f32 %v1229_v26, %v1145_v54 }
 0x2a5   :  { %v1160_v46 = vpop.f32.mrf.mxu3 }
 0x2a6   :  { %5044 = vmatmul.msk.bf16.gmra.mxu0 %vm1060_vm0, %v5029_v25  ;;  %v1286_v31 = vpack.c.bf16 %v1230_v28, %v1230_v28  ;;  %v6913_v25 = vpop.f32.mrf.mxu2 }
 0x2a8   :  { %v1346_v36 = vunpack.c.l.b16 %v1286_v31 }
 0x2ab   :  { %v1231_v30 = vpop.f32.mrf.mxu0 }
 0x2ac   :  { %v1232_v33 = vadd.f32 %v1231_v30, %v1147_v52 }
 0x2ad   :  { %v1162_v58 = vpop.f32.mrf.mxu3 }
 0x2ae   :  { %v1287_v35 = vpack.c.bf16 %v1232_v33, %v1232_v33  ;;  %v5963_v33 = vld [vmem:[%s8175_s29 + $0xa0] sm:$0xff]  ;;  %v6923_v41 = vpop.f32.mrf.mxu2 }
 0x2b0   :  { %v1347_v37 = vunpack.c.l.b16 %v1287_v35 }
 0x2b2   :  { %v1370_v38 = vpack.c.b16 %v1347_v37, %v1346_v36 }
 0x2b3   :  { %v1234_v40 = vpop.f32.mrf.mxu0 }
 0x2b4   :  { %1564 = vmatmul.bf16.gmra.mxu1 %v1370_v38  ;;  %v1235_v42 = vadd.f32 %v1234_v40, %v1150_v57  ;;  %v5966_v57 = vld [vmem:[%s8175_s29 + $0xb8] sm:$0xff] }
 0x2b5   :  { %v1165_v10 = vpop.f32.mrf.mxu3  ;;  %2202 = vmatpush.bf16.msra.mxu0 %v5966_v57  ;;  %v5962_v40 = vld [vmem:[%s8175_s29 + $0x98] sm:$0xff] }
 0x2b6   :  { %v1288_v32 = vpack.c.bf16 %v1235_v42, %v1235_v42 }
 0x2b8   :  { %v1348_v48 = vunpack.c.l.b16 %v1288_v32 }
 0x2b9   :  { %2203 = vmatpush.bf16.msra.mxu0 %v5965_v39 }
 0x2bb   :  { %v1236_v8 = vpop.f32.mrf.mxu0 }
 0x2bc   :  { %v1237_v43 = vadd.f32 %v1236_v8, %v1152_v16  ;;  %v5961_v8 = vld [vmem:[%s8175_s29 + $0x90] sm:$0xff] }
 0x2bd   :  { %v1167_v16 = vpop.f32.mrf.mxu3 }
 0x2be   :  { %v1289_v47 = vpack.c.bf16 %v1237_v43, %v1237_v43 }
 0x2c0   :  { %v1349_v15 = vunpack.c.l.b16 %v1289_v47 }
 0x2c2   :  { %v1371_v54 = vpack.c.b16 %v1349_v15, %v1348_v48 }
 0x2c3   :  { %v1239_v56 = vpop.f32.mrf.mxu0 }
 0x2c4   :  { %1569 = vmatmul.bf16.gmra.mxu1 %v1371_v54  ;;  %v1240_v59 = vadd.f32 %v1239_v56, %v1155_v29 }
 0x2c5   :  { %v1170_v38 = vpop.f32.mrf.mxu3 }
 0x2c6   :  { %v1290_v0 = vpack.c.bf16 %v1240_v59, %v1240_v59 }
 0x2c8   :  { %v1350_v22 = vunpack.c.l.b16 %v1290_v0 }
 0x2cb   :  { %v1241_v60 = vpop.f32.mrf.mxu0 }
 0x2cc   :  { %v1242_v52 = vadd.f32 %v1241_v60, %v1157_v4 }
 0x2cd   :  { %v1172_v56 = vpop.f32.mrf.mxu3 }
 0x2ce   :  { %v1291_v2 = vpack.c.bf16 %v1242_v52, %v1242_v52  ;;  %v5959_v52 = vld [vmem:[%s8175_s29 + $0x80] sm:$0xff] }
 0x2d0   :  { %v1351_v6 = vunpack.c.l.b16 %v1291_v2  ;;  %v6936_v2 = vpop.f32.mrf.mxu2 }
 0x2d1   :  { %v1535_v9 = vpop.f32.mrf.mxu1 }
 0x2d2   :  { %v1536_v11 = vadd.f32 %v6896_v3, %v1535_v9  ;;  %v1372_v5 = vpack.c.b16 %v1351_v6, %v1350_v22 }
 0x2d3   :  { %v1244_v13 = vpop.f32.mrf.mxu0 }
 0x2d4   :  { %1574 = vmatmul.bf16.gmra.mxu1 %v1372_v5  ;;  %v1620_v7 = vadd.f32 %v6674_v45, %v1536_v11  ;;  %v1245_v51 = vadd.f32 %v1244_v13, %v1160_v46  ;;  %v5964_v45 = vld [vmem:[%s8175_s29 + $0xa8] sm:$0xff] }
 0x2d5   :  { %2204 = vmatpush.bf16.msra.mxu0 %v5964_v45  ;;  %v1175_v57 = vpop.f32.mrf.mxu3 }
 0x2d6   :  { %v1694_v23 = vmax.f32 %v1620_v7, 0.0  ;;  %v1292_v18 = vpack.c.bf16 %v1245_v51, %v1245_v51 }
 0x2d8   :  { %v1724_v26 = vpack.c.bf16 %v1694_v23, %v1694_v23  ;;  %v1352_v29 = vunpack.c.l.b16 %v1292_v18 }
 0x2d9   :  { %v1537_v14 = vpop.f32.mrf.mxu1  ;;  %2205 = vmatpush.bf16.msra.mxu0 %v5963_v33 }
 0x2da   :  { %v1538_v62 = vadd.f32 %v6896_v3, %v1537_v14 }
 0x2db   :  { %v1246_v55 = vpop.f32.mrf.mxu0 }
 0x2dc   :  { %v1622_v19 = vadd.f32 %v6683_v49, %v1538_v62  ;;  %v1247_v24 = vadd.f32 %v1246_v55, %v1162_v58  ;;  %v1778_v49 = vunpack.c.l.b16 %v1724_v26  ;;  %v6941_v55 = vpop.f32.mrf.mxu2 }
 0x2dd   :  { %2206 = vmatpush.bf16.msra.mxu0 %v5962_v40 }
 0x2de   :  { %v1695_v27 = vmax.f32 %v1622_v19, 0.0  ;;  %v1293_v28 = vpack.c.bf16 %v1247_v24, %v1247_v24 }
 0x2e0   :  { %v1725_v50 = vpack.c.bf16 %v1695_v27, %v1695_v27  ;;  %v1353_v30 = vunpack.c.l.b16 %v1293_v28 }
 0x2e1   :  { %v1540_v31 = vpop.f32.mrf.mxu1  ;;  %2207 = vmatpush.bf16.msra.mxu0 %v5961_v8 }
 0x2e2   :  { %v1779_v34 = vunpack.c.l.b16 %v1725_v50  ;;  %v1541_v35 = vadd.f32 %v6896_v3, %v1540_v31  ;;  %v1373_v36 = vpack.c.b16 %v1353_v30, %v1352_v29  ;;  %v1177_v50 = vpop.f32.mrf.mxu3 }
 0x2e3   :  { %v1249_v37 = vpop.f32.mrf.mxu0 }
 0x2e4   :  { %v1802_v17 = vpack.c.b16 %v1779_v34, %v1778_v49  ;;  %1579 = vmatmul.bf16.gmra.mxu1 %v1373_v36  ;;  %v1625_v4 = vadd.f32 %v6698_v63, %v1541_v35  ;;  %v1250_v42 = vadd.f32 %v1249_v37, %v1165_v10  ;;  %v5960_v63 = vld [vmem:[%s8175_s29 + $0x88] sm:$0xff]  ;;  %v6948_v36 = vpop.f32.mrf.mxu2 }
 0x2e5   :  { %2208 = vmatpush.bf16.msra.mxu0 %v5960_v63 }
 0x2e6   :  { %2072 = vmatmul.bf16.vlgmr.msrb.gmra.mxu3 %v1802_v17  ;;  %v1696_v32 = vmax.f32 %v1625_v4, 0.0  ;;  %v1294_v21 = vpack.c.bf16 %v1250_v42, %v1250_v42 }
 0x2e8   :  { %v1726_v15 = vpack.c.bf16 %v1696_v32, %v1696_v32  ;;  %v1354_v58 = vunpack.c.l.b16 %v1294_v21 }
 0x2e9   :  { %v1542_v20 = vpop.f32.mrf.mxu1  ;;  %2209 = vmatpush.bf16.msra.mxu0 %v5959_v52 }
 0x2ea   :  { %v1543_v43 = vadd.f32 %v6896_v3, %v1542_v20  ;;  %v1180_v8 = vpop.f32.mrf.mxu3 }
 0x2eb   :  { %v1251_v46 = vpop.f32.mrf.mxu0 }
 0x2ec   :  { %v1627_v47 = vadd.f32 %v6706_v1, %v1543_v43  ;;  %v1252_v48 = vadd.f32 %v1251_v46, %v1167_v16  ;;  %v1780_v1 = vunpack.c.l.b16 %v1726_v15 }
 0x2ee   :  { %v1697_v12 = vmax.f32 %v1627_v47, 0.0  ;;  %v1295_v54 = vpack.c.bf16 %v1252_v48, %v1252_v48  ;;  %v6954_v48 = vpop.f32.mrf.mxu2 }
 0x2f0   :  { %v1727_v59 = vpack.c.bf16 %v1697_v12, %v1697_v12  ;;  %v1355_v60 = vunpack.c.l.b16 %v1295_v54 }
 0x2f1   :  { %v1545_v0 = vpop.f32.mrf.mxu1 }
 0x2f2   :  { %v1781_v22 = vunpack.c.l.b16 %v1727_v59  ;;  %v1546_v6 = vadd.f32 %v6896_v3, %v1545_v0  ;;  %v1374_v9 = vpack.c.b16 %v1355_v60, %v1354_v58  ;;  %v1182_v0 = vpop.f32.mrf.mxu3 }
 0x2f3   :  { %v1254_v10 = vpop.f32.mrf.mxu0 }
 0x2f4   :  { %v1630_v11 = vadd.f32 %v6715_v61, %v1546_v6  ;;  %1584 = vmatmul.bf16.gmra.mxu1 %v1374_v9  ;;  %v1803_v5 = vpack.c.b16 %v1781_v22, %v1780_v1  ;;  %v1255_v51 = vadd.f32 %v1254_v10, %v1170_v38 }
 0x2f6   :  { %v1698_v13 = vmax.f32 %v1630_v11, 0.0  ;;  %2077 = vmatmul.bf16.gmra.mxu3 %v1803_v5  ;;  %v1296_v18 = vpack.c.bf16 %v1255_v51, %v1255_v51  ;;  %v1651_v9 = vpop.f32.mrf.mxu2 }
 0x2f8   :  { %v1728_v7 = vpack.c.bf16 %v1698_v13, %v1698_v13  ;;  %v1356_v26 = vunpack.c.l.b16 %v1296_v18 }
 0x2f9   :  { %v1547_v14 = vpop.f32.mrf.mxu1 }
 0x2fa   :  { %v1782_v39 = vunpack.c.l.b16 %v1728_v7  ;;  %v1548_v23 = vadd.f32 %v6896_v3, %v1547_v14 }
 0x2fb   :  { %v1256_v62 = vpop.f32.mrf.mxu0 }
 0x2fc   :  { %v6943_v16 = vpack.c.b16 %v1782_v39, %v1781_v22  ;;  %v1632_v19 = vadd.f32 %v6723_v53, %v1548_v23  ;;  %v1257_v61 = vadd.f32 %v1256_v62, %v1172_v56  ;;  %v1185_v23 = vpop.f32.mrf.mxu3 }
 0x2fe   :  { %v1699_v24 = vmax.f32 %v1632_v19, 0.0  ;;  %v1297_v45 = vpack.c.bf16 %v1257_v61, %v1257_v61 }
 0x300   :  { %v1729_v27 = vpack.c.bf16 %v1699_v24, %v1699_v24  ;;  %v1357_v28 = vunpack.c.l.b16 %v1297_v45 }
 0x301   :  { %v1550_v29 = vpop.f32.mrf.mxu1 }
 0x302   :  { %v1783_v30 = vunpack.c.l.b16 %v1729_v27  ;;  %v1551_v31 = vadd.f32 %v6896_v3, %v1550_v29  ;;  %v1375_v33 = vpack.c.b16 %v1357_v28, %v1356_v26  ;;  %v1654_v27 = vpop.f32.mrf.mxu2 }
 0x303   :  { %v1259_v49 = vpop.f32.mrf.mxu0 }
 0x304   :  { %v1635_v34 = vadd.f32 %v6899_v44, %v1551_v31  ;;  %1589 = vmatmul.bf16.gmra.mxu1 %v1375_v33  ;;  %v1804_v35 = vpack.c.b16 %v1783_v30, %v1782_v39  ;;  %v1260_v37 = vadd.f32 %v1259_v49, %v1175_v57  ;;  %v1187_v33 = vpop.f32.mrf.mxu3 }
 0x306   :  { %v1700_v53 = vmax.f32 %v1635_v34, 0.0  ;;  %2082 = vmatmul.bf16.gmra.mxu3 %v1804_v35  ;;  %v1298_v4 = vpack.c.bf16 %v1260_v37, %v1260_v37 }
 0x308   :  { %v1730_v17 = vpack.c.bf16 %v1700_v53, %v1700_v53  ;;  %v1358_v44 = vunpack.c.l.b16 %v1298_v4 }
 0x309   :  { %v1552_v38 = vpop.f32.mrf.mxu1 }
 0x30a   :  { %v1784_v40 = vunpack.c.l.b16 %v1730_v17  ;;  %v1553_v42 = vadd.f32 %v6896_v3, %v1552_v38 }
 0x30b   :  { %v1261_v20 = vpop.f32.mrf.mxu0 }
 0x30c   :  { %v1637_v32 = vadd.f32 %v6913_v25, %v1553_v42  ;;  %v1262_v43 = vadd.f32 %v1261_v20, %v1177_v50  ;;  %v6952_v46 = vpack.c.b16 %v1784_v40, %v1783_v30 }
 0x30e   :  { %v1701_v21 = vmax.f32 %v1637_v32, 0.0  ;;  %v1299_v47 = vpack.c.bf16 %v1262_v43, %v1262_v43 }
 0x310   :  { %v1731_v63 = vpack.c.bf16 %v1701_v21, %v1701_v21  ;;  %v1359_v15 = vunpack.c.l.b16 %v1299_v47 }
 0x311   :  { %v1555_v12 = vpop.f32.mrf.mxu1 }
 0x312   :  { %v1785_v54 = vunpack.c.l.b16 %v1731_v63  ;;  %v1556_v56 = vadd.f32 %v6896_v3, %v1555_v12  ;;  %v1376_v58 = vpack.c.b16 %v1359_v15, %v1358_v44 }
 0x313   :  { %v1264_v59 = vpop.f32.mrf.mxu0 }
 0x314   :  { %v1640_v60 = vadd.f32 %v6923_v41, %v1556_v56  ;;  %1594 = vmatmul.bf16.gmra.mxu1 %v1376_v58  ;;  %v1805_v25 = vpack.c.b16 %v1785_v54, %v1784_v40  ;;  %v1265_v1 = vadd.f32 %v1264_v59, %v1180_v8 }
 0x316   :  { %v1702_v52 = vmax.f32 %v1640_v60, 0.0  ;;  %2087 = vmatmul.bf16.gmra.mxu3 %v1805_v25  ;;  %2210 = vmatmul.bf16.vlgmr.msra.gmra.mxu0 %v1805_v25  ;;  %v1300_v11 = vpack.c.bf16 %v1265_v1, %v1265_v1 }
 0x318   :  { %v1732_v22 = vpack.c.bf16 %v1702_v52, %v1702_v52  ;;  %v1360_v41 = vunpack.c.l.b16 %v1300_v11 }
 0x319   :  { %v1557_v6 = vpop.f32.mrf.mxu1 }
 0x31a   :  { %v1786_v10 = vunpack.c.l.b16 %v1732_v22  ;;  %v1558_v5 = vadd.f32 %v6896_v3, %v1557_v6 }
 0x31b   :  { %v1266_v13 = vpop.f32.mrf.mxu0 }
 0x31c   :  { %v1642_v57 = vadd.f32 %v6936_v2, %v1558_v5  ;;  %v1267_v7 = vadd.f32 %v1266_v13, %v1182_v0  ;;  %v6960_v51 = vpack.c.b16 %v1786_v10, %v1785_v54 }
 0x31e   :  { %v1703_v14 = vmax.f32 %v1642_v57, 0.0  ;;  %v1301_v39 = vpack.c.bf16 %v1267_v7, %v1267_v7 }
 0x320   :  { %v1733_v62 = vpack.c.bf16 %v1703_v14, %v1703_v14  ;;  %v1361_v18 = vunpack.c.l.b16 %v1301_v39 }
 0x321   :  { %v1560_v19 = vpop.f32.mrf.mxu1 }
 0x322   :  { %v1787_v61 = vunpack.c.l.b16 %v1733_v62  ;;  %v1561_v24 = vadd.f32 %v6896_v3, %v1560_v19  ;;  %v1377_v45 = vpack.c.b16 %v1361_v18, %v1360_v41 }
 0x323   :  { %v1269_v26 = vpop.f32.mrf.mxu0 }
 0x324   :  { %v1645_v28 = vadd.f32 %v6941_v55, %v1561_v24  ;;  %1599 = vmatmul.bf16.gmra.mxu1 %v1377_v45  ;;  %v1806_v2 = vpack.c.b16 %v1787_v61, %v1786_v10  ;;  %v1270_v50 = vadd.f32 %v1269_v26, %v1185_v23  ;;  %v1656_v55 = vpop.f32.mrf.mxu2 }
 0x326   :  { %v1704_v29 = vmax.f32 %v1645_v28, 0.0  ;;  %2092 = vmatmul.bf16.gmra.mxu3 %v1806_v2  ;;  %2215 = vmatmul.bf16.gmra.mxu0 %v1806_v2  ;;  %v1302_v34 = vpack.c.bf16 %v1270_v50, %v1270_v50 }
 0x328   :  { %v1734_v30 = vpack.c.bf16 %v1704_v29, %v1704_v29  ;;  %v1362_v40 = vunpack.c.l.b16 %v1302_v34 }
 0x329   :  { %v1562_v31 = vpop.f32.mrf.mxu1 }
 0x32a   :  { %v1788_v49 = vunpack.c.l.b16 %v1734_v30  ;;  %v1563_v35 = vadd.f32 %v6896_v3, %v1562_v31 }
 0x32b   :  { %v1271_v53 = vpop.f32.mrf.mxu0 }
 0x32c   :  { %v1647_v37 = vadd.f32 %v6948_v36, %v1563_v35  ;;  %v1272_v17 = vadd.f32 %v1271_v53, %v1187_v33  ;;  %v6966_v38 = vpack.c.b16 %v1788_v49, %v1787_v61  ;;  %v1659_v36 = vpop.f32.mrf.mxu2 }
 0x32e   :  { %v1705_v4 = vmax.f32 %v1647_v37, 0.0  ;;  %v1303_v42 = vpack.c.bf16 %v1272_v17, %v1272_v17 }
 0x330   :  { %v1735_v20 = vpack.c.bf16 %v1705_v4, %v1705_v4  ;;  %v1363_v8 = vunpack.c.l.b16 %v1303_v42 }
 0x331   :  { %v1565_v32 = vpop.f32.mrf.mxu1 }
 0x332   :  { %v1789_v43 = vunpack.c.l.b16 %v1735_v20  ;;  %v1566_v44 = vadd.f32 %v6896_v3, %v1565_v32  ;;  %v1378_v21 = vpack.c.b16 %v1363_v8, %v1362_v40  ;;  %v5957_v8 = vld [vmem:[%s8175_s29 + $0x70] sm:$0xff] }
 0x334   :  { %v1650_v47 = vadd.f32 %v6954_v48, %v1566_v44  ;;  %1604 = vmatmul.bf16.gmra.mxu1 %v1378_v21  ;;  %v1807_v63 = vpack.c.b16 %v1789_v43, %v1788_v49  ;;  %v1661_v1 = vpop.f32.mrf.mxu2 }
 0x336   :  { %v1706_v15 = vmax.f32 %v1650_v47, 0.0  ;;  %2097 = vmatmul.bf16.gmra.mxu3 %v1807_v63  ;;  %2220 = vmatmul.bf16.gmra.mxu0 %v1807_v63  ;;  %v5956_v63 = vld [vmem:[%s8175_s29 + $0x68] sm:$0xff] }
 0x338   :  { %v1736_v12 = vpack.c.bf16 %v1706_v15, %v1706_v15 }
 0x339   :  { %v1567_v54 = vpop.f32.mrf.mxu1 }
 0x33a   :  { %v1790_v56 = vunpack.c.l.b16 %v1736_v12  ;;  %v1568_v58 = vadd.f32 %v6896_v3, %v1567_v54 }
 0x33c   :  { %v1652_v59 = vadd.f32 %v1651_v9, %v1568_v58  ;;  %v6971_v60 = vpack.c.b16 %v1790_v56, %v1789_v43  ;;  %v1664_v9 = vpop.f32.mrf.mxu2 }
 0x33e   :  { %v1707_v25 = vmax.f32 %v1652_v59, 0.0 }
 0x340   :  { %v1737_v0 = vpack.c.bf16 %v1707_v25, %v1707_v25 }
 0x341   :  { %v1570_v52 = vpop.f32.mrf.mxu1 }
 0x342   :  { %v1791_v22 = vunpack.c.l.b16 %v1737_v0  ;;  %v1571_v48 = vadd.f32 %v6896_v3, %v1570_v52 }
 0x344   :  { %v1655_v6 = vadd.f32 %v1654_v27, %v1571_v48  ;;  %v1808_v10 = vpack.c.b16 %v1791_v22, %v1790_v56  ;;  %v1666_v45 = vpop.f32.mrf.mxu2  ;;  %v5955_v56 = vld [vmem:[%s8175_s29 + $0x60] sm:$0xff] }
 0x346   :  { %v1708_v11 = vmax.f32 %v1655_v6, 0.0  ;;  %2102 = vmatmul.bf16.gmra.mxu3 %v1808_v10  ;;  %2225 = vmatmul.bf16.gmra.mxu0 %v1808_v10 }
 0x348   :  { %v1738_v5 = vpack.c.bf16 %v1708_v11, %v1708_v11  ;;  %v5953_v11 = vld [vmem:[%s8175_s29 + $0x50] sm:$0xff] }
 0x349   :  { %v1572_v13 = vpop.f32.mrf.mxu1 }
 0x34a   :  { %v1792_v57 = vunpack.c.l.b16 %v1738_v5  ;;  %v1573_v7 = vadd.f32 %v6896_v3, %v1572_v13 }
 0x34c   :  { %v1657_v41 = vadd.f32 %v1656_v55, %v1573_v7  ;;  %v6975_v14 = vpack.c.b16 %v1792_v57, %v1791_v22  ;;  %v1669_v33 = vpop.f32.mrf.mxu2  ;;  %v5958_v55 = vld [vmem:[%s8175_s29 + $0x78] sm:$0xff] }
 0x34d   :  { %2133 = vmatpush.bf16.msra.mxu3 %v5958_v55 }
 0x34e   :  { %v1709_v39 = vmax.f32 %v1657_v41, 0.0 }
 0x350   :  { %v1739_v23 = vpack.c.bf16 %v1709_v39, %v1709_v39 }
 0x351   :  { %v1575_v62 = vpop.f32.mrf.mxu1  ;;  %2134 = vmatpush.bf16.msra.mxu3 %v5957_v8 }
 0x352   :  { %v1793_v18 = vunpack.c.l.b16 %v1739_v23  ;;  %v1576_v19 = vadd.f32 %v6896_v3, %v1575_v62 }
 0x354   :  { %v1660_v61 = vadd.f32 %v1659_v36, %v1576_v19  ;;  %v1809_v24 = vpack.c.b16 %v1793_v18, %v1792_v57  ;;  %v1671_v32 = vpop.f32.mrf.mxu2  ;;  %v5951_v19 = vld [vmem:[%s8175_s29 + $0x40] sm:$0xff] }
 0x355   :  { %2135 = vmatpush.bf16.msra.mxu3 %v5956_v63 }
 0x356   :  { %v1710_v26 = vmax.f32 %v1660_v61, 0.0  ;;  %2107 = vmatmul.bf16.gmra.mxu3 %v1809_v24  ;;  %2230 = vmatmul.bf16.gmra.mxu0 %v1809_v24 }
 0x358   :  { %v1740_v27 = vpack.c.bf16 %v1710_v26, %v1710_v26 }
 0x359   :  { %v1577_v28 = vpop.f32.mrf.mxu1  ;;  %2136 = vmatpush.bf16.msra.mxu3 %v5955_v56 }
 0x35a   :  { %v1794_v2 = vunpack.c.l.b16 %v1740_v27  ;;  %v1578_v29 = vadd.f32 %v6896_v3, %v1577_v28 }
 0x35c   :  { %v1662_v50 = vadd.f32 %v1661_v1, %v1578_v29  ;;  %v6979_v30 = vpack.c.b16 %v1794_v2, %v1793_v18  ;;  %v1674_v25 = vpop.f32.mrf.mxu2  ;;  %v5954_v1 = vld [vmem:[%s8175_s29 + $0x58] sm:$0xff] }
 0x35d   :  { %2137 = vmatpush.bf16.msra.mxu3 %v5954_v1 }
 0x35e   :  { %v1711_v31 = vmax.f32 %v1662_v50, 0.0 }
 0x360   :  { %v1741_v49 = vpack.c.bf16 %v1711_v31, %v1711_v31 }
 0x361   :  { %v1580_v34 = vpop.f32.mrf.mxu1  ;;  %2138 = vmatpush.bf16.msra.mxu3 %v5953_v11 }
 0x362   :  { %v1795_v35 = vunpack.c.l.b16 %v1741_v49  ;;  %v1581_v53 = vadd.f32 %v6896_v3, %v1580_v34 }
 0x364   :  { %v1665_v37 = vadd.f32 %v1664_v9, %v1581_v53  ;;  %v1810_v17 = vpack.c.b16 %v1795_v35, %v1794_v2  ;;  %v5952_v9 = vld [vmem:[%s8175_s29 + $0x48] sm:$0xff]  ;;  %v1676_v41 = vpop.f32.mrf.mxu2 }
 0x365   :  { %2139 = vmatpush.bf16.msra.mxu3 %v5952_v9 }
 0x366   :  { %v1712_v40 = vmax.f32 %v1665_v37, 0.0  ;;  %2112 = vmatmul.bf16.gmra.mxu3 %v1810_v17  ;;  %2235 = vmatmul.bf16.gmra.mxu0 %v1810_v17 }
 0x368   :  { %v1742_v4 = vpack.c.bf16 %v1712_v40, %v1712_v40 }
 0x369   :  { %v1582_v42 = vpop.f32.mrf.mxu1  ;;  %v6985_v20 = vpop.f32.mrf.mxu3  ;;  %2140 = vmatpush.bf16.msra.mxu3 %v5951_v19 }
 0x36a   :  { %v1796_v43 = vunpack.c.l.b16 %v1742_v4  ;;  %v1583_v44 = vadd.f32 %v6896_v3, %v1582_v42 }
 0x36c   :  { %v1667_v21 = vadd.f32 %v1666_v45, %v1583_v44  ;;  %v6991_v47 = vpack.c.b16 %v1796_v43, %v1795_v35  ;;  %v1679_v28 = vpop.f32.mrf.mxu2 }
 0x36e   :  { %v1713_v15 = vmax.f32 %v1667_v21, 0.0 }
 0x370   :  { %v1743_v36 = vpack.c.bf16 %v1713_v15, %v1713_v15 }
 0x371   :  { %v1585_v12 = vpop.f32.mrf.mxu1  ;;  %v6996_v54 = vpop.f32.mrf.mxu3 }
 0x372   :  { %v1797_v58 = vunpack.c.l.b16 %v1743_v36  ;;  %v1586_v59 = vadd.f32 %v6896_v3, %v1585_v12 }
 0x374   :  { %v1670_v0 = vadd.f32 %v1669_v33, %v1586_v59  ;;  %v1811_v52 = vpack.c.b16 %v1797_v58, %v1796_v43  ;;  %v1681_v55 = vpop.f32.mrf.mxu2 }
 0x376   :  { %v1714_v22 = vmax.f32 %v1670_v0, 0.0  ;;  %2117 = vmatmul.bf16.gmra.mxu3 %v1811_v52  ;;  %2240 = vmatmul.bf16.gmra.mxu0 %v1811_v52 }
 0x378   :  { %v1744_v48 = vpack.c.bf16 %v1714_v22, %v1714_v22 }
 0x379   :  { %v1587_v6 = vpop.f32.mrf.mxu1  ;;  %v7005_v10 = vpop.f32.mrf.mxu3 }
 0x37a   :  { %v1798_v5 = vunpack.c.l.b16 %v1744_v48  ;;  %v1588_v13 = vadd.f32 %v6896_v3, %v1587_v6 }
 0x37c   :  { %v1672_v57 = vadd.f32 %v1671_v32, %v1588_v13  ;;  %v7011_v7 = vpack.c.b16 %v1798_v5, %v1797_v58  ;;  %v1684_v36 = vpop.f32.mrf.mxu2 }
 0x37e   :  { %v1715_v39 = vmax.f32 %v1672_v57, 0.0 }
 0x380   :  { %v1745_v23 = vpack.c.bf16 %v1715_v39, %v1715_v39 }
 0x381   :  { %v1590_v62 = vpop.f32.mrf.mxu1  ;;  %v7016_v18 = vpop.f32.mrf.mxu3 }
 0x382   :  { %v1799_v61 = vunpack.c.l.b16 %v1745_v23  ;;  %v1591_v24 = vadd.f32 %v6896_v3, %v1590_v62 }
 0x384   :  { %v1675_v45 = vadd.f32 %v1674_v25, %v1591_v24  ;;  %v1812_v26 = vpack.c.b16 %v1799_v61, %v1798_v5  ;;  %v1686_v6 = vpop.f32.mrf.mxu2 }
 0x386   :  { %v1716_v27 = vmax.f32 %v1675_v45, 0.0  ;;  %2122 = vmatmul.bf16.gmra.mxu3 %v1812_v26  ;;  %2245 = vmatmul.bf16.gmra.mxu0 %v1812_v26 }
 0x388   :  { %v1746_v2 = vpack.c.bf16 %v1716_v27, %v1716_v27 }
 0x389   :  { %v1592_v29 = vpop.f32.mrf.mxu1  ;;  %v7022_v50 = vpop.f32.mrf.mxu3 }
 0x38a   :  { %v1800_v31 = vunpack.c.l.b16 %v1746_v2  ;;  %v1593_v33 = vadd.f32 %v6896_v3, %v1592_v29 }
 0x38c   :  { %v1677_v49 = vadd.f32 %v1676_v41, %v1593_v33  ;;  %v7025_v34 = vpack.c.b16 %v1800_v31, %v1799_v61  ;;  %v1689_v19 = vpop.f32.mrf.mxu2 }
 0x38e   :  { %v1717_v35 = vmax.f32 %v1677_v49, 0.0 }
 0x390   :  { %v1747_v53 = vpack.c.bf16 %v1717_v35, %v1717_v35 }
 0x391   :  { %v1595_v37 = vpop.f32.mrf.mxu1  ;;  %v7027_v17 = vpop.f32.mrf.mxu3 }
 0x392   :  { %v1801_v40 = vunpack.c.l.b16 %v1747_v53  ;;  %v1596_v4 = vadd.f32 %v6896_v3, %v1595_v37 }
 0x394   :  { %v1680_v42 = vadd.f32 %v1679_v28, %v1596_v4  ;;  %v1813_v8 = vpack.c.b16 %v1801_v40, %v1800_v31  ;;  %v1691_v49 = vpop.f32.mrf.mxu2 }
 0x396   :  { %v1718_v32 = vmax.f32 %v1680_v42, 0.0  ;;  %2127 = vmatmul.bf16.gmra.mxu3 %v1813_v8  ;;  %2250 = vmatmul.bf16.gmra.mxu0 %v1813_v8 }
 0x398   :  { %v1748_v43 = vpack.c.bf16 %v1718_v32, %v1718_v32 }
 0x399   :  { %v1597_v44 = vpop.f32.mrf.mxu1  ;;  %v7030_v21 = vpop.f32.mrf.mxu3 }
 0x39a   :  { %v1829_v63 = vunpack.c.l.b16 %v1748_v43  ;;  %v1598_v15 = vadd.f32 %v6896_v3, %v1597_v44 }
 0x39c   :  { %v1682_v12 = vadd.f32 %v1681_v55, %v1598_v15  ;;  %v7033_v56 = vpack.c.b16 %v1829_v63, %v1801_v40  ;;  %v5974_v15 = vld [vmem:[%s8177_s30 + $0x38] sm:$0xff] }
 0x39d   :  { %2605 = vmatpush.bf16.msra.mxu1 %v5974_v15 }
 0x39e   :  { %v1719_v58 = vmax.f32 %v1682_v12, 0.0  ;;  %v5972_v12 = vld [vmem:[%s8177_s30 + $0x28] sm:$0xff] }
 0x3a0   :  { %v1749_v59 = vpack.c.bf16 %v1719_v58, %v1719_v58 }
 0x3a1   :  { %v1600_v25 = vpop.f32.mrf.mxu1  ;;  %v7035_v0 = vpop.f32.mrf.mxu3 }
 0x3a2   :  { %v1830_v52 = vunpack.c.l.b16 %v1749_v59  ;;  %v1601_v1 = vadd.f32 %v6896_v3, %v1600_v25  ;;  %v5971_v59 = vld [vmem:[%s8177_s30 + $0x20] sm:$0xff]  ;;  %v5970_v25 = vld [vmem:[%s8177_s30 + $0x18] sm:$0xff] }
 0x3a4   :  { %v1685_v22 = vadd.f32 %v1684_v36, %v1601_v1  ;;  %v1862_v48 = vpack.c.b16 %v1830_v52, %v1829_v63  ;;  %v2211_v36 = vpop.f32.mrf.mxu0 }
 0x3a6   :  { %v1720_v11 = vmax.f32 %v1685_v22, 0.0  ;;  %2141 = vmatmul.bf16.vlgmr.msra.gmra.mxu3 %v6943_v16  ;;  %2255 = vmatmul.bf16.gmra.mxu0 %v1862_v48  ;;  %v5968_v22 = vld [vmem:[%s8177_s30 + $0x8] sm:$0xff]  ;;  %v5982_v48 = vld [vmem:[%s8177_s30 + $0x78] sm:$0xff] }
 0x3a7   :  { %2659 = vmatpush.bf16.msra.mxu2 %v5982_v48 }
 0x3a8   :  { %v1750_v5 = vpack.c.bf16 %v1720_v11, %v1720_v11  ;;  %v5967_v11 = vld [vmem:[%s8177_s30] sm:$0xff] }
 0x3a9   :  { %v1602_v13 = vpop.f32.mrf.mxu1  ;;  %v7039_v57 = vpop.f32.mrf.mxu3 }
 0x3aa   :  { %v1831_v9 = vunpack.c.l.b16 %v1750_v5  ;;  %v1603_v41 = vadd.f32 %v6896_v3, %v1602_v13  ;;  %v5981_v5 = vld [vmem:[%s8177_s30 + $0x70] sm:$0xff] }
 0x3ab   :  { %2660 = vmatpush.bf16.msra.mxu2 %v5981_v5 }
 0x3ac   :  { %v1687_v39 = vadd.f32 %v1686_v6, %v1603_v41  ;;  %v7042_v23 = vpack.c.b16 %v1831_v9, %v1830_v52  ;;  %v5979_v41 = vld [vmem:[%s8177_s30 + $0x60] sm:$0xff] }
 0x3ae   :  { %v1721_v62 = vmax.f32 %v1687_v39, 0.0  ;;  %v7122_v39 = vld [vmem:[%s8178_s5] ss:$0 sm:$0xff] }
 0x3b0   :  { %v1751_v61 = vpack.c.bf16 %v1721_v62, %v1721_v62 }
 0x3b1   :  { %v1605_v24 = vpop.f32.mrf.mxu1  ;;  %v7044_v45 = vpop.f32.mrf.mxu3 }
 0x3b2   :  { %v1859_v26 = vunpack.c.l.b16 %v1751_v61  ;;  %v1606_v16 = vadd.f32 %v6896_v3, %v1605_v24  ;;  %v2074_v61 = vadd.f32 %v7122_v39, %v6985_v20  ;;  %v5975_v20 = vld [vmem:[%s8177_s30 + $0x40] sm:$0xff] }
 0x3b4   :  { %v1863_v27 = vpack.c.b16 %v1859_v26, %v1831_v9  ;;  %v1690_v28 = vadd.f32 %v1689_v19, %v1606_v16  ;;  %v5980_v9 = vld [vmem:[%s8177_s30 + $0x68] sm:$0xff]  ;;  %v5978_v19 = vld [vmem:[%s8177_s30 + $0x58] sm:$0xff]  ;;  %v5977_v26 = vld [vmem:[%s8177_s30 + $0x50] sm:$0xff] }
 0x3b5   :  { %2661 = vmatpush.bf16.msra.mxu2 %v5980_v9 }
 0x3b6   :  { %2146 = vmatmul.bf16.gmra.mxu3 %v6952_v46  ;;  %2260 = vmatmul.bf16.gmra.mxu0 %v1863_v27  ;;  %v1722_v31 = vmax.f32 %v1690_v28, 0.0  ;;  %v5976_v27 = vld [vmem:[%s8177_s30 + $0x48] sm:$0xff] }
 0x3b8   :  { %v1752_v53 = vpack.c.bf16 %v1722_v31, %v1722_v31 }
 0x3b9   :  { %v1607_v2 = vpop.f32.mrf.mxu1  ;;  %v7048_v29 = vpop.f32.mrf.mxu3  ;;  %2662 = vmatpush.bf16.msra.mxu2 %v5979_v41 }
 0x3ba   :  { %v1608_v33 = vadd.f32 %v6896_v3, %v1607_v2  ;;  %v1860_v4 = vunpack.c.l.b16 %v1752_v53 }
 0x3bc   :  { %v1692_v35 = vadd.f32 %v1691_v49, %v1608_v33 }
 0x3bd   :  { %2663 = vmatpush.bf16.msra.mxu2 %v5978_v19 }
 0x3be   :  { %v1723_v37 = vmax.f32 %v1692_v35, 0.0 }
 0x3c0   :  { %v1753_v55 = vpack.c.bf16 %v1723_v37, %v1723_v37 }
 0x3c1   :  { %v7051_v40 = vpop.f32.mrf.mxu3  ;;  %2664 = vmatpush.bf16.msra.mxu2 %v5977_v26 }
 0x3c2   :  { %v1861_v42 = vunpack.c.l.b16 %v1753_v55  ;;  %v2079_v55 = vadd.f32 %v7122_v39, %v7005_v10  ;;  %v2084_v10 = vadd.f32 %v7122_v39, %v7022_v50 }
 0x3c4   :  { %v1864_v8 = vpack.c.b16 %v1861_v42, %v1860_v4 }
 0x3c5   :  { %2665 = vmatpush.bf16.msra.mxu2 %v5976_v27 }
 0x3c6   :  { %2151 = vmatmul.bf16.gmra.mxu3 %v6960_v51  ;;  %2265 = vmatmul.bf16.gmra.mxu0 %v1864_v8 }
 0x3c9   :  { %v7054_v46 = vpop.f32.mrf.mxu3  ;;  %2666 = vmatpush.bf16.msra.mxu2 %v5975_v20 }
 0x3d1   :  { %v7056_v32 = vpop.f32.mrf.mxu3 }
 0x3d6   :  { %2156 = vmatmul.bf16.gmra.mxu3 %v6966_v38 }
 0x3d9   :  { %v7059_v3 = vpop.f32.mrf.mxu3 }
 0x3e1   :  { %v7061_v43 = vpop.f32.mrf.mxu3 }
 0x3e6   :  { %2161 = vmatmul.bf16.gmra.mxu3 %v6971_v60  ;;  %v5973_v60 = vld [vmem:[%s8177_s30 + $0x30] sm:$0xff] }
 0x3e7   :  { %2606 = vmatpush.bf16.msra.mxu1 %v5973_v60 }
 0x3e9   :  { %v7064_v44 = vpop.f32.mrf.mxu3 }
 0x3eb   :  { %2607 = vmatpush.bf16.msra.mxu1 %v5972_v12 }
 0x3ef   :  { %2608 = vmatpush.bf16.msra.mxu1 %v5971_v59  ;;  %v2081_v59 = vadd.f32 %v7122_v39, %v7016_v18 }
 0x3f1   :  { %v7066_v63 = vpop.f32.mrf.mxu3 }
 0x3f3   :  { %2609 = vmatpush.bf16.msra.mxu1 %v5970_v25 }
 0x3f6   :  { %2166 = vmatmul.bf16.gmra.mxu3 %v6975_v14  ;;  %v2213_v14 = vpop.f32.mrf.mxu0 }
 0x3f9   :  { %v7069_v51 = vpop.f32.mrf.mxu3 }
 0x3fe   :  { %v2216_v52 = vpop.f32.mrf.mxu0 }
 0x401   :  { %v7074_v38 = vpop.f32.mrf.mxu3 }
 0x406   :  { %2171 = vmatmul.bf16.gmra.mxu3 %v6979_v30  ;;  %v5969_v30 = vld [vmem:[%s8177_s30 + $0x10] sm:$0xff]  ;;  %v2218_v13 = vpop.f32.mrf.mxu0 }
 0x407   :  { %2610 = vmatpush.bf16.msra.mxu1 %v5969_v30 }
 0x409   :  { %v7083_v58 = vpop.f32.mrf.mxu3 }
 0x40b   :  { %2611 = vmatpush.bf16.msra.mxu1 %v5968_v22 }
 0x40e   :  { %v2221_v62 = vpop.f32.mrf.mxu0 }
 0x40f   :  { %2612 = vmatpush.bf16.msra.mxu1 %v5967_v11 }
 0x411   :  { %v7091_v1 = vpop.f32.mrf.mxu3 }
 0x416   :  { %2176 = vmatmul.bf16.gmra.mxu3 %v6991_v47  ;;  %v2223_v2 = vpop.f32.mrf.mxu0 }
 0x419   :  { %v7103_v6 = vpop.f32.mrf.mxu3 }
 0x41e   :  { %v2226_v42 = vpop.f32.mrf.mxu0 }
 0x421   :  { %v7114_v47 = vpop.f32.mrf.mxu3 }
 0x426   :  { %2181 = vmatmul.bf16.gmra.mxu3 %v7011_v7  ;;  %v2076_v7 = vadd.f32 %v7122_v39, %v6996_v54  ;;  %v2228_v22 = vpop.f32.mrf.mxu0 }
 0x429   :  { %v2142_v24 = vpop.f32.mrf.mxu3 }
 0x42a   :  { %v2143_v16 = vadd.f32 %v2142_v24, %v2074_v61 }
 0x42c   :  { %v2212_v28 = vadd.f32 %v2211_v36, %v2143_v16 }
 0x42e   :  { %v2271_v33 = vmax.f32 %v2212_v28, 0.0  ;;  %v2231_v18 = vpop.f32.mrf.mxu0 }
 0x430   :  { %v2295_v53 = vpack.c.bf16 %v2271_v33, %v2271_v33 }
 0x431   :  { %v2144_v31 = vpop.f32.mrf.mxu3 }
 0x432   :  { %v2145_v49 = vadd.f32 %v2144_v31, %v2076_v7  ;;  %v2337_v54 = vunpack.c.l.b16 %v2295_v53 }
 0x434   :  { %v2214_v35 = vadd.f32 %v2213_v14, %v2145_v49 }
 0x436   :  { %v2272_v37 = vmax.f32 %v2214_v35, 0.0  ;;  %2186 = vmatmul.bf16.gmra.mxu3 %v7025_v34  ;;  %v2233_v20 = vpop.f32.mrf.mxu0 }
 0x438   :  { %v2296_v4 = vpack.c.bf16 %v2272_v37, %v2272_v37 }
 0x439   :  { %v2147_v8 = vpop.f32.mrf.mxu3 }
 0x43a   :  { %v2338_v15 = vunpack.c.l.b16 %v2296_v4  ;;  %v2148_v36 = vadd.f32 %v2147_v8, %v2079_v55  ;;  %v2091_v4 = vadd.f32 %v7122_v39, %v7035_v0 }
 0x43c   :  { %v2355_v60 = vpack.c.b16 %v2338_v15, %v2337_v54  ;;  %v2217_v12 = vadd.f32 %v2216_v52, %v2148_v36 }
 0x43e   :  { %2613 = vmatmul.bf16.vlgmr.msra.gmra.mxu1 %v2355_v60  ;;  %v2273_v25 = vmax.f32 %v2217_v12, 0.0  ;;  %v2236_v8 = vpop.f32.mrf.mxu0 }
 0x440   :  { %v2297_v48 = vpack.c.bf16 %v2273_v25, %v2273_v25 }
 0x441   :  { %v2149_v14 = vpop.f32.mrf.mxu3 }
 0x442   :  { %v2150_v30 = vadd.f32 %v2149_v14, %v2081_v59  ;;  %v2339_v41 = vunpack.c.l.b16 %v2297_v48 }
 0x444   :  { %v2219_v34 = vadd.f32 %v2218_v13, %v2150_v30  ;;  %v2086_v13 = vadd.f32 %v7122_v39, %v7027_v17 }
 0x446   :  { %v2274_v11 = vmax.f32 %v2219_v34, 0.0  ;;  %2191 = vmatmul.bf16.gmra.mxu3 %v7033_v56  ;;  %v2238_v30 = vpop.f32.mrf.mxu0 }
 0x448   :  { %v2298_v5 = vpack.c.bf16 %v2274_v11, %v2274_v11 }
 0x449   :  { %v2152_v9 = vpop.f32.mrf.mxu3 }
 0x44a   :  { %v2340_v52 = vunpack.c.l.b16 %v2298_v5  ;;  %v2153_v19 = vadd.f32 %v2152_v9, %v2084_v10 }
 0x44c   :  { %v2222_v61 = vadd.f32 %v2221_v62, %v2153_v19  ;;  %v2356_v24 = vpack.c.b16 %v2340_v52, %v2339_v41  ;;  %v2089_v62 = vadd.f32 %v7122_v39, %v7030_v21  ;;  %v2094_v21 = vadd.f32 %v7122_v39, %v7039_v57 }
 0x44e   :  { %v2275_v26 = vmax.f32 %v2222_v61, 0.0  ;;  %2618 = vmatmul.bf16.gmra.mxu1 %v2356_v24  ;;  %v2099_v61 = vadd.f32 %v7122_v39, %v7048_v29 }
 0x450   :  { %v2299_v16 = vpack.c.bf16 %v2275_v26, %v2275_v26 }
 0x451   :  { %v2154_v27 = vpop.f32.mrf.mxu3 }
 0x452   :  { %v2341_v28 = vunpack.c.l.b16 %v2299_v16  ;;  %v2155_v56 = vadd.f32 %v2154_v27, %v2086_v13 }
 0x454   :  { %v2379_v7 = vpack.c.b16 %v2341_v28, %v2340_v52  ;;  %v2224_v31 = vadd.f32 %v2223_v2, %v2155_v56  ;;  %v2241_v52 = vpop.f32.mrf.mxu0  ;;  %v2101_v56 = vadd.f32 %v7122_v39, %v7051_v40  ;;  %v5990_v40 = vld [vmem:[%s8177_s30 + $0xb8] sm:$0xff] }
 0x455   :  { %2713 = vmatpush.bf16.msrb.mxu1 %v5990_v40  ;;  %v2119_v40 = vadd.f32 %v7122_v39, %v7069_v51 }
 0x456   :  { %v2276_v50 = vmax.f32 %v2224_v31, 0.0  ;;  %2196 = vmatmul.bf16.gmra.mxu3 %v7042_v23  ;;  %2667 = vmatmul.bf16.vlgmr.msra.gmra.mxu2 %v2379_v7 }
 0x458   :  { %v2300_v33 = vpack.c.bf16 %v2276_v50, %v2276_v50 }
 0x459   :  { %v2157_v49 = vpop.f32.mrf.mxu3 }
 0x45a   :  { %v2342_v35 = vunpack.c.l.b16 %v2300_v33  ;;  %v2158_v53 = vadd.f32 %v2157_v49, %v2089_v62  ;;  %v2104_v49 = vadd.f32 %v7122_v39, %v7054_v46 }
 0x45c   :  { %v2227_v37 = vadd.f32 %v2226_v42, %v2158_v53  ;;  %v2357_v17 = vpack.c.b16 %v2342_v35, %v2341_v28  ;;  %v2243_v28 = vpop.f32.mrf.mxu0 }
 0x45e   :  { %v2277_v55 = vmax.f32 %v2227_v37, 0.0  ;;  %2623 = vmatmul.bf16.gmra.mxu1 %v2357_v17 }
 0x460   :  { %v2301_v2 = vpack.c.bf16 %v2277_v55, %v2277_v55 }
 0x461   :  { %v2159_v54 = vpop.f32.mrf.mxu3 }
 0x462   :  { %v2343_v23 = vunpack.c.l.b16 %v2301_v2  ;;  %v2160_v15 = vadd.f32 %v2159_v54, %v2091_v4  ;;  %v2106_v54 = vadd.f32 %v7122_v39, %v7056_v32  ;;  %v2109_v32 = vadd.f32 %v7122_v39, %v7059_v3 }
 0x463   :  { %v2111_v3 = vadd.f32 %v7122_v39, %v7061_v43  ;;  %v2114_v43 = vadd.f32 %v7122_v39, %v7064_v44 }
 0x464   :  { %v2229_v36 = vadd.f32 %v2228_v22, %v2160_v15  ;;  %v2380_v60 = vpack.c.b16 %v2343_v23, %v2342_v35  ;;  %v2096_v22 = vadd.f32 %v7122_v39, %v7044_v45  ;;  %v2246_v53 = vpop.f32.mrf.mxu0  ;;  %v5989_v15 = vld [vmem:[%s8177_s30 + $0xb0] sm:$0xff] }
 0x465   :  { %2714 = vmatpush.bf16.msrb.mxu1 %v5989_v15 }
 0x466   :  { %v2278_v12 = vmax.f32 %v2229_v36, 0.0  ;;  %2672 = vmatmul.bf16.gmra.mxu2 %v2380_v60 }
 0x468   :  { %v2302_v59 = vpack.c.bf16 %v2278_v12, %v2278_v12 }
 0x469   :  { %v2162_v42 = vpop.f32.mrf.mxu3 }
 0x46a   :  { %v2344_v14 = vunpack.c.l.b16 %v2302_v59  ;;  %v2163_v25 = vadd.f32 %v2162_v42, %v2094_v21  ;;  %v5988_v42 = vld [vmem:[%s8177_s30 + $0xa8] sm:$0xff] }
 0x46b   :  { %2715 = vmatpush.bf16.msrb.mxu1 %v5988_v42 }
 0x46c   :  { %v2232_v34 = vadd.f32 %v2231_v18, %v2163_v25  ;;  %v7158_v48 = vpack.c.b16 %v2344_v14, %v2343_v23  ;;  %v2248_v12 = vpop.f32.mrf.mxu0 }
 0x46e   :  { %v2279_v0 = vmax.f32 %v2232_v34, 0.0  ;;  %2628 = vmatmul.bf16.gmra.mxu1 %v7158_v48  ;;  %v5987_v34 = vld [vmem:[%s8177_s30 + $0xa0] sm:$0xff] }
 0x46f   :  { %2716 = vmatpush.bf16.msrb.mxu1 %v5987_v34 }
 0x470   :  { %v2303_v11 = vpack.c.bf16 %v2279_v0, %v2279_v0 }
 0x471   :  { %v2164_v10 = vpop.f32.mrf.mxu3 }
 0x472   :  { %v2345_v5 = vunpack.c.l.b16 %v2303_v11  ;;  %v2165_v9 = vadd.f32 %v2164_v10, %v2096_v22 }
 0x474   :  { %v2234_v41 = vadd.f32 %v2233_v20, %v2165_v9  ;;  %v2381_v57 = vpack.c.b16 %v2345_v5, %v2344_v14  ;;  %v5986_v9 = vld [vmem:[%s8177_s30 + $0x98] sm:$0xff] }
 0x475   :  { %2717 = vmatpush.bf16.msrb.mxu1 %v5986_v9 }
 0x476   :  { %v2280_v19 = vmax.f32 %v2234_v41, 0.0  ;;  %2677 = vmatmul.bf16.gmra.mxu2 %v2381_v57 }
 0x478   :  { %v2304_v24 = vpack.c.bf16 %v2280_v19, %v2280_v19  ;;  %v5985_v19 = vld [vmem:[%s8177_s30 + $0x90] sm:$0xff] }
 0x479   :  { %v2167_v18 = vpop.f32.mrf.mxu3  ;;  %2718 = vmatpush.bf16.msrb.mxu1 %v5985_v19 }
 0x47a   :  { %v2346_v26 = vunpack.c.l.b16 %v2304_v24  ;;  %v2168_v13 = vadd.f32 %v2167_v18, %v2099_v61 }
 0x47c   :  { %v2237_v16 = vadd.f32 %v2236_v8, %v2168_v13  ;;  %v7165_v27 = vpack.c.b16 %v2346_v26, %v2345_v5  ;;  %v2251_v5 = vpop.f32.mrf.mxu0  ;;  %v5984_v13 = vld [vmem:[%s8177_s30 + $0x88] sm:$0xff] }
 0x47d   :  { %2719 = vmatpush.bf16.msrb.mxu1 %v5984_v13 }
 0x47e   :  { %v2281_v45 = vmax.f32 %v2237_v16, 0.0  ;;  %2633 = vmatmul.bf16.gmra.mxu1 %v7165_v27 }
 0x480   :  { %v2305_v7 = vpack.c.bf16 %v2281_v45, %v2281_v45 }
 0x481   :  { %v2169_v31 = vpop.f32.mrf.mxu3 }
 0x482   :  { %v2347_v50 = vunpack.c.l.b16 %v2305_v7  ;;  %v2170_v20 = vadd.f32 %v2169_v31, %v2101_v56  ;;  %v5983_v7 = vld [vmem:[%s8177_s30 + $0x80] sm:$0xff] }
 0x483   :  { %2720 = vmatpush.bf16.msrb.mxu1 %v5983_v7 }
 0x484   :  { %v2239_v62 = vadd.f32 %v2238_v30, %v2170_v20  ;;  %v2382_v29 = vpack.c.b16 %v2347_v50, %v2346_v26  ;;  %v2253_v45 = vpop.f32.mrf.mxu0 }
 0x486   :  { %v2282_v33 = vmax.f32 %v2239_v62, 0.0  ;;  %2682 = vmatmul.bf16.gmra.mxu2 %v2382_v29 }
 0x488   :  { %v2306_v35 = vpack.c.bf16 %v2282_v33, %v2282_v33  ;;  %v2116_v33 = vadd.f32 %v7122_v39, %v7066_v63 }
 0x489   :  { %v2172_v37 = vpop.f32.mrf.mxu3 }
 0x48a   :  { %v2348_v17 = vunpack.c.l.b16 %v2306_v35  ;;  %v2173_v55 = vadd.f32 %v2172_v37, %v2104_v49 }
 0x48c   :  { %v2242_v4 = vadd.f32 %v2241_v52, %v2173_v55  ;;  %v7172_v2 = vpack.c.b16 %v2348_v17, %v2347_v50  ;;  %v2256_v44 = vpop.f32.mrf.mxu0 }
 0x48e   :  { %v2283_v8 = vmax.f32 %v2242_v4, 0.0  ;;  %2638 = vmatmul.bf16.gmra.mxu1 %v7172_v2 }
 0x490   :  { %v2307_v46 = vpack.c.bf16 %v2283_v8, %v2283_v8 }
 0x491   :  { %v2174_v23 = vpop.f32.mrf.mxu3 }
 0x492   :  { %v2349_v36 = vunpack.c.l.b16 %v2307_v46  ;;  %v2175_v60 = vadd.f32 %v2174_v23, %v2106_v54 }
 0x494   :  { %v2244_v21 = vadd.f32 %v2243_v28, %v2175_v60  ;;  %v2383_v59 = vpack.c.b16 %v2349_v36, %v2348_v17  ;;  %v2258_v15 = vpop.f32.mrf.mxu0 }
 0x496   :  { %v2284_v14 = vmax.f32 %v2244_v21, 0.0  ;;  %2687 = vmatmul.bf16.gmra.mxu2 %v2383_v59  ;;  %v2121_v21 = vadd.f32 %v7122_v39, %v7074_v38 }
 0x498   :  { %v2308_v25 = vpack.c.bf16 %v2284_v14, %v2284_v14 }
 0x499   :  { %v2177_v30 = vpop.f32.mrf.mxu3 }
 0x49a   :  { %v2350_v0 = vunpack.c.l.b16 %v2308_v25  ;;  %v2178_v22 = vadd.f32 %v2177_v30, %v2109_v32 }
 0x49c   :  { %v2247_v11 = vadd.f32 %v2246_v53, %v2178_v22  ;;  %v7191_v10 = vpack.c.b16 %v2350_v0, %v2349_v36  ;;  %v2261_v34 = vpop.f32.mrf.mxu0  ;;  %v2124_v22 = vadd.f32 %v7122_v39, %v7083_v58 }
 0x49e   :  { %v2285_v41 = vmax.f32 %v2247_v11, 0.0  ;;  %2643 = vmatmul.bf16.gmra.mxu1 %v7191_v10 }
 0x4a0   :  { %v2309_v57 = vpack.c.bf16 %v2285_v41, %v2285_v41 }
 0x4a1   :  { %v2179_v52 = vpop.f32.mrf.mxu3 }
 0x4a2   :  { %v2351_v61 = vunpack.c.l.b16 %v2309_v57  ;;  %v2180_v24 = vadd.f32 %v2179_v52, %v2111_v3 }
 0x4a4   :  { %v2249_v18 = vadd.f32 %v2248_v12, %v2180_v24  ;;  %v2384_v26 = vpack.c.b16 %v2351_v61, %v2350_v0  ;;  %v2263_v19 = vpop.f32.mrf.mxu0 }
 0x4a6   :  { %v2286_v16 = vmax.f32 %v2249_v18, 0.0  ;;  %2692 = vmatmul.bf16.gmra.mxu2 %v2384_v26 }
 0x4a8   :  { %v2310_v28 = vpack.c.bf16 %v2286_v16, %v2286_v16 }
 0x4a9   :  { %v2182_v56 = vpop.f32.mrf.mxu3 }
 0x4aa   :  { %v2352_v31 = vunpack.c.l.b16 %v2310_v28  ;;  %v2183_v50 = vadd.f32 %v2182_v56, %v2114_v43  ;;  %v2129_v28 = vadd.f32 %v7122_v39, %v7103_v6 }
 0x4ac   :  { %v2252_v20 = vadd.f32 %v2251_v5, %v2183_v50  ;;  %v7210_v62 = vpack.c.b16 %v2352_v31, %v2351_v61  ;;  %v2126_v61 = vadd.f32 %v7122_v39, %v7091_v1  ;;  %v2266_v7 = vpop.f32.mrf.mxu0 }
 0x4ae   :  { %v2287_v29 = vmax.f32 %v2252_v20, 0.0  ;;  %2648 = vmatmul.bf16.gmra.mxu1 %v7210_v62 }
 0x4b0   :  { %v2311_v49 = vpack.c.bf16 %v2287_v29, %v2287_v29 }
 0x4b1   :  { %v2184_v35 = vpop.f32.mrf.mxu3 }
 0x4b2   :  { %v2353_v53 = vunpack.c.l.b16 %v2311_v49  ;;  %v2185_v37 = vadd.f32 %v2184_v35, %v2116_v33  ;;  %v2131_v33 = vadd.f32 %v7122_v39, %v7114_v47 }
 0x4b4   :  { %v2254_v17 = vadd.f32 %v2253_v45, %v2185_v37  ;;  %v2385_v55 = vpack.c.b16 %v2353_v53, %v2352_v31 }
 0x4b6   :  { %v2288_v4 = vmax.f32 %v2254_v17, 0.0  ;;  %2697 = vmatmul.bf16.gmra.mxu2 %v2385_v55 }
 0x4b8   :  { %v2312_v8 = vpack.c.bf16 %v2288_v4, %v2288_v4 }
 0x4b9   :  { %v2187_v54 = vpop.f32.mrf.mxu3 }
 0x4ba   :  { %v2354_v46 = vunpack.c.l.b16 %v2312_v8  ;;  %v2188_v23 = vadd.f32 %v2187_v54, %v2119_v40 }
 0x4bb   :  { %v7217_v36 = vpop.f32.mrf.mxu1 }
 0x4bc   :  { %v2257_v63 = vadd.f32 %v2256_v44, %v2188_v23  ;;  %v7219_v60 = vpack.c.b16 %v2354_v46, %v2353_v53  ;;  %v2268_v53 = vpop.f32.mrf.mxu0 }
 0x4be   :  { %v2289_v12 = vmax.f32 %v2257_v63, 0.0  ;;  %2653 = vmatmul.bf16.gmra.mxu1 %v7219_v60 }
 0x4c0   :  { %v2313_v59 = vpack.c.bf16 %v2289_v12, %v2289_v12 }
 0x4c1   :  { %v2189_v42 = vpop.f32.mrf.mxu3 }
 0x4c2   :  { %v2376_v14 = vunpack.c.l.b16 %v2313_v59  ;;  %v2190_v51 = vadd.f32 %v2189_v42, %v2121_v21  ;;  %v6021_v59 = vld [vmem:[%s8179_s1 + $0x60] sm:$0xff] }
 0x4c3   :  { %v7224_v32 = vpop.f32.mrf.mxu1 }
 0x4c4   :  { %v2259_v25 = vadd.f32 %v2258_v15, %v2190_v51  ;;  %v2386_v30 = vpack.c.b16 %v2376_v14, %v2354_v46  ;;  %v6019_v51 = vld [vmem:[%s8179_s1 + $0x50] sm:$0xff] }
 0x4c6   :  { %v2290_v0 = vmax.f32 %v2259_v25, 0.0  ;;  %2702 = vmatmul.bf16.gmra.mxu2 %v2386_v30  ;;  %v6018_v30 = vld [vmem:[%s8179_s1 + $0x48] sm:$0xff] }
 0x4c8   :  { %v2314_v11 = vpack.c.bf16 %v2290_v0, %v2290_v0  ;;  %v6017_v0 = vld [vmem:[%s8179_s1 + $0x40] sm:$0xff] }
 0x4c9   :  { %v2192_v5 = vpop.f32.mrf.mxu3 }
 0x4ca   :  { %v2377_v9 = vunpack.c.l.b16 %v2314_v11  ;;  %v2193_v41 = vadd.f32 %v2192_v5, %v2124_v22 }
 0x4cb   :  { %v7228_v3 = vpop.f32.mrf.mxu1 }
 0x4cc   :  { %v2262_v38 = vadd.f32 %v2261_v34, %v2193_v41  ;;  %v2403_v57 = vpack.c.b16 %v2377_v9, %v2376_v14 }
 0x4ce   :  { %v2291_v52 = vmax.f32 %v2262_v38, 0.0  ;;  %2721 = vmatmul.bf16.vlgmr.msrb.gmra.mxu1 %v7158_v48 }
 0x4d0   :  { %v2315_v24 = vpack.c.bf16 %v2291_v52, %v2291_v52 }
 0x4d1   :  { %v2194_v18 = vpop.f32.mrf.mxu3 }
 0x4d2   :  { %v2378_v26 = vunpack.c.l.b16 %v2315_v24  ;;  %v2195_v13 = vadd.f32 %v2194_v18, %v2126_v61 }
 0x4d3   :  { %v7233_v58 = vpop.f32.mrf.mxu1 }
 0x4d4   :  { %v2264_v16 = vadd.f32 %v2263_v19, %v2195_v13  ;;  %v2387_v45 = vpack.c.b16 %v2378_v26, %v2377_v9  ;;  %v7299_v9 = vld [vmem:[%s8180_s8] ss:$0 sm:$0xff] }
 0x4d5   :  { %v2615_v41 = vadd.f32 %v7299_v9, %v7217_v36  ;;  %v2617_v61 = vadd.f32 %v7299_v9, %v7224_v32  ;;  %v2622_v32 = vadd.f32 %v7299_v9, %v7233_v58 }
 0x4d6   :  { %v2292_v43 = vmax.f32 %v2264_v16, 0.0  ;;  %2707 = vmatmul.bf16.gmra.mxu2 %v2387_v45 }
 0x4d8   :  { %v2316_v56 = vpack.c.bf16 %v2292_v43, %v2292_v43 }
 0x4d9   :  { %v2197_v48 = vpop.f32.mrf.mxu3  ;;  %v2668_v21 = vpop.f32.mrf.mxu2 }
 0x4da   :  { %v2400_v31 = vunpack.c.l.b16 %v2316_v56  ;;  %v2198_v50 = vadd.f32 %v2197_v48, %v2129_v28  ;;  %v2620_v56 = vadd.f32 %v7299_v9, %v7228_v3 }
 0x4db   :  { %v7237_v20 = vpop.f32.mrf.mxu1 }
 0x4dc   :  { %v2404_v1 = vpack.c.b16 %v2400_v31, %v2378_v26  ;;  %v2267_v29 = vadd.f32 %v2266_v7, %v2198_v50 }
 0x4de   :  { %2726 = vmatmul.bf16.gmra.mxu1 %v7165_v27  ;;  %v2293_v44 = vmax.f32 %v2267_v29, 0.0 }
 0x4e0   :  { %v2317_v17 = vpack.c.bf16 %v2293_v44, %v2293_v44 }
 0x4e1   :  { %v2199_v49 = vpop.f32.mrf.mxu3  ;;  %v2670_v14 = vpop.f32.mrf.mxu2 }
 0x4e2   :  { %v2200_v35 = vadd.f32 %v2199_v49, %v2131_v33  ;;  %v2401_v40 = vunpack.c.l.b16 %v2317_v17  ;;  %v2671_v24 = vadd.f32 %v2670_v14, %v2617_v61  ;;  %v2625_v17 = vadd.f32 %v7299_v9, %v7237_v20 }
 0x4e3   :  { %v7242_v37 = vpop.f32.mrf.mxu1 }
 0x4e4   :  { %v2269_v6 = vadd.f32 %v2268_v53, %v2200_v35  ;;  %v2627_v58 = vadd.f32 %v7299_v9, %v7242_v37 }
 0x4e6   :  { %v2294_v55 = vmax.f32 %v2269_v6, 0.0 }
 0x4e8   :  { %v2318_v4 = vpack.c.bf16 %v2294_v55, %v2294_v55 }
 0x4e9   :  { %v2673_v34 = vpop.f32.mrf.mxu2 }
 0x4ea   :  { %v2402_v8 = vunpack.c.l.b16 %v2318_v4  ;;  %v2674_v31 = vadd.f32 %v2673_v34, %v2620_v56 }
 0x4eb   :  { %v7244_v54 = vpop.f32.mrf.mxu1 }
 0x4ec   :  { %v2405_v46 = vpack.c.b16 %v2402_v8, %v2401_v40  ;;  %v2630_v34 = vadd.f32 %v7299_v9, %v7244_v54 }
 0x4ee   :  { %2731 = vmatmul.bf16.gmra.mxu1 %v7172_v2  ;;  %v6024_v2 = vld [vmem:[%s8179_s1 + $0x78] sm:$0xff] }
 0x4ef   :  { %3350 = vmatpush.bf16.msra.mxu1 %v6024_v2 }
 0x4f1   :  { %v2675_v11 = vpop.f32.mrf.mxu2 }
 0x4f2   :  { %v2676_v33 = vadd.f32 %v2675_v11, %v2622_v32 }
 0x4f3   :  { %v7247_v27 = vpop.f32.mrf.mxu1 }
 0x4f9   :  { %v2678_v52 = vpop.f32.mrf.mxu2 }
 0x4fb   :  { %v7249_v47 = vpop.f32.mrf.mxu1 }
 0x4fe   :  { %2736 = vmatmul.bf16.gmra.mxu1 %v7191_v10  ;;  %v6023_v10 = vld [vmem:[%s8179_s1 + $0x70] sm:$0xff] }
 0x4ff   :  { %3351 = vmatpush.bf16.msra.mxu1 %v6023_v10 }
 0x501   :  { %v2680_v43 = vpop.f32.mrf.mxu2 }
 0x503   :  { %v7252_v39 = vpop.f32.mrf.mxu1 }
 0x509   :  { %v2683_v29 = vpop.f32.mrf.mxu2 }
 0x50b   :  { %v7254_v23 = vpop.f32.mrf.mxu1 }
 0x50e   :  { %2741 = vmatmul.bf16.gmra.mxu1 %v7210_v62  ;;  %v6022_v62 = vld [vmem:[%s8179_s1 + $0x68] sm:$0xff] }
 0x50f   :  { %3352 = vmatpush.bf16.msra.mxu1 %v6022_v62  ;;  %v2681_v62 = vadd.f32 %v2680_v43, %v2627_v58  ;;  %v2635_v43 = vadd.f32 %v7299_v9, %v7249_v47 }
 0x511   :  { %v2685_v40 = vpop.f32.mrf.mxu2 }
 0x513   :  { %v7257_v15 = vpop.f32.mrf.mxu1  ;;  %3353 = vmatpush.bf16.msra.mxu1 %v6021_v59 }
 0x519   :  { %v2688_v14 = vpop.f32.mrf.mxu2 }
 0x51b   :  { %v7259_v63 = vpop.f32.mrf.mxu1 }
 0x51e   :  { %2746 = vmatmul.bf16.gmra.mxu1 %v7219_v60  ;;  %v6020_v60 = vld [vmem:[%s8179_s1 + $0x58] sm:$0xff] }
 0x51f   :  { %3354 = vmatpush.bf16.msra.mxu1 %v6020_v60 }
 0x521   :  { %v2690_v37 = vpop.f32.mrf.mxu2 }
 0x523   :  { %v7268_v12 = vpop.f32.mrf.mxu1  ;;  %3355 = vmatpush.bf16.msra.mxu1 %v6019_v51 }
 0x527   :  { %3356 = vmatpush.bf16.msra.mxu1 %v6018_v30 }
 0x52b   :  { %v7276_v42 = vpop.f32.mrf.mxu1  ;;  %3357 = vmatpush.bf16.msra.mxu1 %v6017_v0 }
 0x52e   :  { %2751 = vmatmul.bf16.gmra.mxu1 %v2403_v57  ;;  %v2669_v57 = vadd.f32 %v2668_v21, %v2615_v41 }
 0x533   :  { %v7284_v25 = vpop.f32.mrf.mxu1 }
 0x53b   :  { %v7292_v22 = vpop.f32.mrf.mxu1 }
 0x53e   :  { %2756 = vmatmul.bf16.gmra.mxu1 %v2404_v1 }
 0x543   :  { %v7294_v5 = vpop.f32.mrf.mxu1 }
 0x54b   :  { %v2722_v38 = vpop.f32.mrf.mxu1 }
 0x54c   :  { %v2723_v19 = vadd.f32 %v2722_v38, %v2669_v57  ;;  %v2684_v38 = vadd.f32 %v2683_v29, %v2630_v34 }
 0x54e   :  { %2761 = vmatmul.bf16.gmra.mxu1 %v2405_v46  ;;  %v2767_v18 = vmax.f32 %v2723_v19, 0.0  ;;  %v2679_v46 = vadd.f32 %v2678_v52, %v2625_v17  ;;  %v2632_v19 = vadd.f32 %v7299_v9, %v7247_v27  ;;  %v2637_v27 = vadd.f32 %v7299_v9, %v7252_v39 }
 0x54f   :  { %v2642_v39 = vadd.f32 %v7299_v9, %v7257_v15  ;;  %v2647_v15 = vadd.f32 %v7299_v9, %v7268_v12  ;;  %v2652_v12 = vadd.f32 %v7299_v9, %v7284_v25 }
 0x550   :  { %v2785_v16 = vpack.c.bf16 %v2767_v18, %v2767_v18  ;;  %v2686_v61 = vadd.f32 %v2685_v40, %v2632_v19 }
 0x552   :  { %v2920_v36 = vunpack.c.l.b16 %v2785_v16 }
 0x553   :  { %v2724_v26 = vpop.f32.mrf.mxu1 }
 0x554   :  { %v2725_v13 = vadd.f32 %v2724_v26, %v2671_v24 }
 0x556   :  { %v2768_v45 = vmax.f32 %v2725_v13, 0.0 }
 0x558   :  { %v2786_v28 = vpack.c.bf16 %v2768_v45, %v2768_v45  ;;  %v2693_v45 = vpop.f32.mrf.mxu2 }
 0x55a   :  { %v2921_v7 = vunpack.c.l.b16 %v2786_v28 }
 0x55b   :  { %v2727_v48 = vpop.f32.mrf.mxu1 }
 0x55c   :  { %v7307_v50 = vpack.c.b16 %v2921_v7, %v2920_v36  ;;  %v2728_v1 = vadd.f32 %v2727_v48, %v2674_v31  ;;  %v2689_v7 = vadd.f32 %v2688_v14, %v2635_v43  ;;  %v2645_v14 = vadd.f32 %v7299_v9, %v7259_v63 }
 0x55d   :  { %v2650_v63 = vadd.f32 %v7299_v9, %v7276_v42  ;;  %v2655_v42 = vadd.f32 %v7299_v9, %v7292_v22 }
 0x55e   :  { %3358 = vmatmul.bf16.vlgmr.msra.gmra.mxu1 %v7307_v50  ;;  %v2769_v49 = vmax.f32 %v2728_v1, 0.0  ;;  %v2691_v1 = vadd.f32 %v2690_v37, %v2637_v27 }
 0x560   :  { %v2787_v53 = vpack.c.bf16 %v2769_v49, %v2769_v49  ;;  %v2695_v29 = vpop.f32.mrf.mxu2 }
 0x562   :  { %v2922_v55 = vunpack.c.l.b16 %v2787_v53  ;;  %v2640_v53 = vadd.f32 %v7299_v9, %v7254_v23 }
 0x563   :  { %v2729_v44 = vpop.f32.mrf.mxu1 }
 0x564   :  { %v2730_v35 = vadd.f32 %v2729_v44, %v2676_v33 }
 0x566   :  { %v2770_v6 = vmax.f32 %v2730_v35, 0.0 }
 0x568   :  { %v2788_v3 = vpack.c.bf16 %v2770_v6, %v2770_v6  ;;  %v2698_v40 = vpop.f32.mrf.mxu2 }
 0x569   :  { %v2699_v34 = vadd.f32 %v2698_v40, %v2645_v14  ;;  %v5995_v14 = vld [vmem:[%s8181_s7 + $0x24] sm:$0xf] }
 0x56a   :  { %v2923_v4 = vunpack.c.l.b16 %v2788_v3 }
 0x56b   :  { %v2732_v8 = vpop.f32.mrf.mxu1 }
 0x56c   :  { %v7314_v2 = vpack.c.b16 %v2923_v4, %v2922_v55  ;;  %v2733_v10 = vadd.f32 %v2732_v8, %v2679_v46  ;;  %v2694_v55 = vadd.f32 %v2693_v45, %v2640_v53  ;;  %v2696_v46 = vadd.f32 %v2695_v29, %v2642_v39 }
 0x56e   :  { %3363 = vmatmul.bf16.gmra.mxu1 %v7314_v2  ;;  %v2771_v21 = vmax.f32 %v2733_v10, 0.0 }
 0x570   :  { %v2789_v51 = vpack.c.bf16 %v2771_v21, %v2771_v21  ;;  %v2700_v23 = vpop.f32.mrf.mxu2 }
 0x572   :  { %v2924_v0 = vunpack.c.l.b16 %v2789_v51 }
 0x573   :  { %v2734_v59 = vpop.f32.mrf.mxu1 }
 0x574   :  { %v2735_v60 = vadd.f32 %v2734_v59, %v2681_v62 }
 0x576   :  { %v2772_v20 = vmax.f32 %v2735_v60, 0.0 }
 0x578   :  { %v2790_v30 = vpack.c.bf16 %v2772_v20, %v2772_v20 }
 0x57a   :  { %v2925_v11 = vunpack.c.l.b16 %v2790_v30 }
 0x57b   :  { %v2737_v41 = vpop.f32.mrf.mxu1 }
 0x57c   :  { %v7321_v57 = vpack.c.b16 %v2925_v11, %v2924_v0  ;;  %v2738_v52 = vadd.f32 %v2737_v41, %v2684_v38  ;;  %v2703_v41 = vpop.f32.mrf.mxu2  ;;  %v2701_v38 = vadd.f32 %v2700_v23, %v2647_v15  ;;  %v5311_v23 = vld [vmem:[%s8181_s7 + $0x10] sm:$0xf]  ;;  %v5329_v15 = vld [vmem:[%s8181_s7 + $0x38] sm:$0xf0] }
 0x57d   :  { %v2704_v45 = vadd.f32 %v2703_v41, %v2650_v63  ;;  %v6000_v63 = vld [vmem:[%s8181_s7 + $0x44] sm:$0xf0] }
 0x57e   :  { %3368 = vmatmul.bf16.gmra.mxu1 %v7321_v57  ;;  %v2773_v24 = vmax.f32 %v2738_v52, 0.0 }
 0x580   :  { %v2791_v13 = vpack.c.bf16 %v2773_v24, %v2773_v24 }
 0x582   :  { %v2926_v28 = vunpack.c.l.b16 %v2791_v13 }
 0x583   :  { %v2739_v18 = vpop.f32.mrf.mxu1 }
 0x584   :  { %v2740_v26 = vadd.f32 %v2739_v18, %v2686_v61 }
 0x586   :  { %v2774_v16 = vmax.f32 %v2740_v26, 0.0 }
 0x588   :  { %v2792_v54 = vpack.c.bf16 %v2774_v16, %v2774_v16  ;;  %v2705_v16 = vpop.f32.mrf.mxu2 }
 0x58a   :  { %v2927_v56 = vunpack.c.l.b16 %v2792_v54 }
 0x58b   :  { %v2742_v36 = vpop.f32.mrf.mxu1 }
 0x58c   :  { %v7328_v48 = vpack.c.b16 %v2927_v56, %v2926_v28  ;;  %v2743_v31 = vadd.f32 %v2742_v36, %v2689_v7  ;;  %v2706_v56 = vadd.f32 %v2705_v16, %v2652_v12  ;;  %v5345_v16 = vld [vmem:[%s8181_s7 + $0x58] sm:$0xf0]  ;;  %v6003_v12 = vld [vmem:[%s8181_s7 + $0x64] sm:$0xf] }
 0x58e   :  { %3373 = vmatmul.bf16.gmra.mxu1 %v7328_v48  ;;  %v2775_v32 = vmax.f32 %v2743_v31, 0.0 }
 0x590   :  { %v2793_v44 = vpack.c.bf16 %v2775_v32, %v2775_v32  ;;  %v2708_v27 = vpop.f32.mrf.mxu2 }
 0x592   :  { %v2928_v6 = vunpack.c.l.b16 %v2793_v44 }
 0x593   :  { %v2744_v33 = vpop.f32.mrf.mxu1 }
 0x594   :  { %v2745_v49 = vadd.f32 %v2744_v33, %v2691_v1 }
 0x596   :  { %v2776_v35 = vmax.f32 %v2745_v49, 0.0 }
 0x598   :  { %v2794_v47 = vpack.c.bf16 %v2776_v35, %v2776_v35  ;;  %v2709_v35 = vadd.f32 %v2708_v27, %v2655_v42  ;;  %v2710_v25 = vpop.f32.mrf.mxu2  ;;  %v5351_v27 = vld [vmem:[%s8181_s7 + $0x60] sm:$0xf]  ;;  %v6005_v42 = vld [vmem:[%s8181_s7 + $0x74] sm:$0xf] }
 0x59a   :  { %v2929_v3 = vunpack.c.l.b16 %v2794_v47 }
 0x59b   :  { %v2747_v17 = vpop.f32.mrf.mxu1 }
 0x59c   :  { %v7335_v4 = vpack.c.b16 %v2929_v3, %v2928_v6  ;;  %v2748_v8 = vadd.f32 %v2747_v17, %v2694_v55  ;;  %v2657_v6 = vadd.f32 %v7299_v9, %v7294_v5  ;;  %v5305_v5 = vld [vmem:[%s8181_s7 + $0x8] sm:$0xf0] }
 0x59e   :  { %3378 = vmatmul.bf16.gmra.mxu1 %v7335_v4  ;;  %v2777_v10 = vmax.f32 %v2748_v8, 0.0  ;;  %v2711_v3 = vadd.f32 %v2710_v25, %v2657_v6  ;;  %v6006_v25 = vld [vmem:[%s8181_s7 + $0x74] sm:$0xf0] }
 0x5a0   :  { %v2795_v21 = vpack.c.bf16 %v2777_v10, %v2777_v10 }
 0x5a2   :  { %v2930_v51 = vunpack.c.l.b16 %v2795_v21  ;;  %v5992_v21 = vld [vmem:[%s8181_s7 + $0x4] sm:$0xf0] }
 0x5a3   :  { %v2749_v58 = vpop.f32.mrf.mxu1 }
 0x5a4   :  { %v2750_v62 = vadd.f32 %v2749_v58, %v2696_v46  ;;  %v5991_v58 = vld [vmem:[%s8181_s7 + $0x4] sm:$0xf] }
 0x5a6   :  { %v2778_v59 = vmax.f32 %v2750_v62, 0.0  ;;  %v5308_v62 = vor.u32 %v5991_v58, %v5305_v5 }
 0x5a8   :  { %v2796_v60 = vpack.c.bf16 %v2778_v59, %v2778_v59 }
 0x5aa   :  { %v2931_v20 = vunpack.c.l.b16 %v2796_v60 }
 0x5ab   :  { %v2752_v30 = vpop.f32.mrf.mxu1 }
 0x5ac   :  { %v2943_v0 = vpack.c.b16 %v2931_v20, %v2930_v51  ;;  %v2753_v11 = vadd.f32 %v2752_v30, %v2699_v34  ;;  %v5321_v51 = vld [vmem:[%s8181_s7 + $0x28] sm:$0xf0]  ;;  %v5319_v30 = vld [vmem:[%s8181_s7 + $0x20] sm:$0xf]  ;;  %v5996_v34 = vld [vmem:[%s8181_s7 + $0x24] sm:$0xf0] }
 0x5ad   :  { %v5324_v20 = vor.u32 %v5995_v14, %v5321_v51 }
 0x5ae   :  { %3383 = vmatmul.bf16.gmra.mxu1 %v2943_v0  ;;  %v2779_v52 = vmax.f32 %v2753_v11, 0.0  ;;  %v5997_v11 = vld [vmem:[%s8181_s7 + $0x34] sm:$0xf] }
 0x5af   :  { %v5332_v41 = vor.u32 %v5997_v11, %v5329_v15 }
 0x5b0   :  { %v2797_v61 = vpack.c.bf16 %v2779_v52, %v2779_v52  ;;  %v5998_v52 = vld [vmem:[%s8181_s7 + $0x34] sm:$0xf0] }
 0x5b2   :  { %v2932_v26 = vunpack.c.l.b16 %v2797_v61  ;;  %v5337_v61 = vld [vmem:[%s8181_s7 + $0x48] sm:$0xf0] }
 0x5b3   :  { %v2754_v37 = vpop.f32.mrf.mxu1 }
 0x5b4   :  { %v2755_v19 = vadd.f32 %v2754_v37, %v2701_v38  ;;  %v5327_v38 = vld [vmem:[%s8181_s7 + $0x30] sm:$0xf] }
 0x5b5   :  { %v5328_v37 = vor.u32 %v5998_v52, %v5327_v38 }
 0x5b6   :  { %v2780_v24 = vmax.f32 %v2755_v19, 0.0  ;;  %v5999_v19 = vld [vmem:[%s8181_s7 + $0x44] sm:$0xf] }
 0x5b8   :  { %v2798_v18 = vpack.c.bf16 %v2780_v24, %v2780_v24  ;;  %v5340_v24 = vor.u32 %v5999_v19, %v5337_v61 }
 0x5ba   :  { %v2933_v13 = vunpack.c.l.b16 %v2798_v18  ;;  %v5335_v18 = vld [vmem:[%s8181_s7 + $0x40] sm:$0xf] }
 0x5bb   :  { %v2757_v54 = vpop.f32.mrf.mxu1 }
 0x5bc   :  { %v2944_v43 = vpack.c.b16 %v2933_v13, %v2932_v26  ;;  %v2758_v28 = vadd.f32 %v2757_v54, %v2704_v45  ;;  %v5336_v26 = vor.u32 %v6000_v63, %v5335_v18  ;;  %v6001_v13 = vld [vmem:[%s8181_s7 + $0x54] sm:$0xf]  ;;  %v5343_v45 = vld [vmem:[%s8181_s7 + $0x50] sm:$0xf] }
 0x5bd   :  { %v5348_v54 = vor.u32 %v6001_v13, %v5345_v16 }
 0x5be   :  { %3388 = vmatmul.bf16.gmra.mxu1 %v2944_v43  ;;  %v2781_v36 = vmax.f32 %v2758_v28, 0.0 }
 0x5c0   :  { %v2799_v1 = vpack.c.bf16 %v2781_v36, %v2781_v36 }
 0x5c2   :  { %v2934_v33 = vunpack.c.l.b16 %v2799_v1  ;;  %v6004_v1 = vld [vmem:[%s8181_s7 + $0x64] sm:$0xf0] }
 0x5c3   :  { %v2759_v7 = vpop.f32.mrf.mxu1 }
 0x5c4   :  { %v2760_v31 = vadd.f32 %v2759_v7, %v2706_v56  ;;  %v5353_v56 = vld [vmem:[%s8181_s7 + $0x68] sm:$0xf0]  ;;  %v6016_v7 = vld [vmem:[%s8179_s1 + $0x38] sm:$0xff] }
 0x5c5   :  { %v5356_v36 = vor.u32 %v6003_v12, %v5353_v56  ;;  %3296 = vmatpush.bf16.msrb.mxu0 %v6016_v7 }
 0x5c6   :  { %v2782_v32 = vmax.f32 %v2760_v31, 0.0  ;;  %v6015_v31 = vld [vmem:[%s8179_s1 + $0x30] sm:$0xff] }
 0x5c8   :  { %v2800_v29 = vpack.c.bf16 %v2782_v32, %v2782_v32  ;;  %v6014_v32 = vld [vmem:[%s8179_s1 + $0x28] sm:$0xff] }
 0x5c9   :  { %3297 = vmatpush.bf16.msrb.mxu0 %v6015_v31 }
 0x5ca   :  { %v2935_v49 = vunpack.c.l.b16 %v2800_v29  ;;  %v5352_v29 = vor.u32 %v6004_v1, %v5351_v27 }
 0x5cb   :  { %v2762_v44 = vpop.f32.mrf.mxu1 }
 0x5cc   :  { %v2945_v47 = vpack.c.b16 %v2935_v49, %v2934_v33  ;;  %v2763_v53 = vadd.f32 %v2762_v44, %v2709_v35  ;;  %v5361_v33 = vld [vmem:[%s8181_s7 + $0x78] sm:$0xf0]  ;;  %v6013_v44 = vld [vmem:[%s8179_s1 + $0x20] sm:$0xff] }
 0x5cd   :  { %3298 = vmatpush.bf16.msrb.mxu0 %v6014_v32  ;;  %v5364_v49 = vor.u32 %v6005_v42, %v5361_v33  ;;  %v6012_v35 = vld [vmem:[%s8179_s1 + $0x18] sm:$0xff] }
 0x5ce   :  { %2984 = vmatpush.bf16.msrb.mxu2 %v2945_v47  ;;  %3393 = vmatmul.bf16.gmra.mxu1 %v2945_v47  ;;  %v2783_v17 = vmax.f32 %v2763_v53, 0.0  ;;  %v6011_v47 = vld [vmem:[%s8179_s1 + $0x10] sm:$0xff] }
 0x5cf   :  { %v5359_v53 = vld [vmem:[%s8181_s7 + $0x70] sm:$0xf] }
 0x5d0   :  { %v2801_v8 = vpack.c.bf16 %v2783_v17, %v2783_v17  ;;  %v5360_v6 = vor.u32 %v6006_v25, %v5359_v53  ;;  %v6007_v17 = vld [vmem:[%s8181_s7 + $0x84] sm:$0xf] }
 0x5d1   :  { %3299 = vmatpush.bf16.msrb.mxu0 %v6013_v44 }
 0x5d2   :  { %2985 = vmatpush.bf16.msrb.mxu2 %v2944_v43  ;;  %v2936_v46 = vunpack.c.l.b16 %v2801_v8  ;;  %v6002_v43 = vld [vmem:[%s8181_s7 + $0x54] sm:$0xf0]  ;;  %v6009_v8 = vld [vmem:[%s8179_s1] sm:$0xff] }
 0x5d3   :  { %v2764_v55 = vpop.f32.mrf.mxu1  ;;  %v5344_v28 = vor.u32 %v6002_v43, %v5343_v45 }
 0x5d4   :  { %v2765_v40 = vadd.f32 %v2764_v55, %v2711_v3  ;;  %v6010_v3 = vld [vmem:[%s8179_s1 + $0x8] sm:$0xff] }
 0x5d5   :  { %3300 = vmatpush.bf16.msrb.mxu0 %v6012_v35  ;;  %v5369_v55 = vld [vmem:[%s8181_s7 + $0x88] sm:$0xf0] }
 0x5d6   :  { %v2784_v39 = vmax.f32 %v2765_v40, 0.0  ;;  %2986 = vmatpush.bf16.msrb.mxu2 %v2943_v0  ;;  %v5320_v0 = vor.u32 %v5996_v34, %v5319_v30  ;;  %v5372_v40 = vor.u32 %v6007_v17, %v5369_v55 }
 0x5d8   :  { %v2802_v22 = vpack.c.bf16 %v2784_v39, %v2784_v39 }
 0x5d9   :  { %3301 = vmatpush.bf16.msrb.mxu0 %v6011_v47 }
 0x5da   :  { %v2937_v10 = vunpack.c.l.b16 %v2802_v22  ;;  %2987 = vmatpush.bf16.msrb.mxu2 %v7335_v4  ;;  %v5303_v4 = vld [vmem:[%s8181_s7] sm:$0xf] }
 0x5db   :  { %v5304_v59 = vor.u32 %v5992_v21, %v5303_v4  ;;  %v5367_v22 = vld [vmem:[%s8181_s7 + $0x80] sm:$0xf] }
 0x5dc   :  { %v2946_v9 = vpack.c.b16 %v2937_v10, %v2936_v46  ;;  %v6008_v46 = vld [vmem:[%s8181_s7 + $0x84] sm:$0xf0] }
 0x5dd   :  { %3302 = vmatpush.bf16.msrb.mxu0 %v6010_v3  ;;  %v5368_v10 = vor.u32 %v6008_v46, %v5367_v22 }
 0x5de   :  { %2988 = vmatpush.bf16.msrb.mxu2 %v7328_v48  ;;  %3045 = vmatpush.bf16.msrb.mxu3 %v2946_v9  ;;  %v5993_v48 = vld [vmem:[%s8181_s7 + $0x14] sm:$0xf] }
 0x5df   :  { %3398 = vmatmul.bf16.gmra.mxu1 %v2946_v9 }
 0x5e1   :  { %5373 = vmatmul.msk.bf16.vlgmr.msrb.gmra.mxu3 %vm2956_vm1, %v5308_v62  ;;  %3303 = vmatpush.bf16.msrb.mxu0 %v6009_v8 }
 0x5e2   :  { %2989 = vmatpush.bf16.msrb.mxu2 %v7321_v57  ;;  %v5313_v57 = vld [vmem:[%s8181_s7 + $0x18] sm:$0xf0] }
 0x5e6   :  { %2990 = vmatpush.bf16.msrb.mxu2 %v7314_v2  ;;  %v5316_v2 = vor.u32 %v5993_v48, %v5313_v57 }
 0x5ea   :  { %2991 = vmatpush.bf16.msrb.mxu2 %v7307_v50  ;;  %v5994_v50 = vld [vmem:[%s8181_s7 + $0x14] sm:$0xf0] }
 0x5eb   :  { %v5312_v60 = vor.u32 %v5994_v50, %v5311_v23 }
 0x5ed   :  { %2992 = vmatmul.bf16.vlgmr.msrb.gmra.mxu2 %v5304_v59 }
 0x5f1   :  { %5374 = vmatmul.msk.bf16.gmra.mxu3 %vm2956_vm1, %v5316_v2 }
 0x5fd   :  { %2997 = vmatmul.bf16.gmra.mxu2 %v5312_v60 }
 0x601   :  { %5375 = vmatmul.msk.bf16.gmra.mxu3 %vm2956_vm1, %v5324_v20 }
 0x60d   :  { %3002 = vmatmul.bf16.gmra.mxu2 %v5320_v0 }
 0x611   :  { %5376 = vmatmul.msk.bf16.gmra.mxu3 %vm2956_vm1, %v5332_v41 }
 0x61d   :  { %3007 = vmatmul.bf16.gmra.mxu2 %v5328_v37 }
 0x621   :  { %5377 = vmatmul.msk.bf16.gmra.mxu3 %vm2956_vm1, %v5340_v24 }
 0x62d   :  { %3012 = vmatmul.bf16.gmra.mxu2 %v5336_v26 }
 0x631   :  { %5378 = vmatmul.msk.bf16.gmra.mxu3 %vm2956_vm1, %v5348_v54 }
 0x63d   :  { %3017 = vmatmul.bf16.gmra.mxu2 %v5344_v28 }
 0x641   :  { %5379 = vmatmul.msk.bf16.gmra.mxu3 %vm2956_vm1, %v5356_v36 }
 0x64d   :  { %3022 = vmatmul.bf16.gmra.mxu2 %v5352_v29 }
 0x651   :  { %5380 = vmatmul.msk.bf16.gmra.mxu3 %vm2956_vm1, %v5364_v49 }
 0x65d   :  { %3027 = vmatmul.bf16.gmra.mxu2 %v5360_v6 }
 0x661   :  { %5381 = vmatmul.msk.bf16.gmra.mxu3 %vm2956_vm1, %v5372_v40 }
 0x664   :  { %v3047_v39 = vpop.f32.mrf.mxu3 }
 0x66c   :  { %v3049_v58 = vpop.f32.mrf.mxu3 }
 0x66d   :  { %3032 = vmatmul.bf16.gmra.mxu2 %v5368_v10 }
 0x670   :  { %v2993_v5 = vpop.f32.mrf.mxu2 }
 0x671   :  { %v3048_v62 = vadd.f32 %v3047_v39, %v2993_v5 }
 0x673   :  { %v3092_v21 = vpack.c.bf16 %v3048_v62, %v3048_v62 }
 0x674   :  { %v3052_v9 = vpop.f32.mrf.mxu3 }
 0x675   :  { %v3128_v2 = vunpack.c.l.b16 %v3092_v21 }
 0x678   :  { %v2995_v4 = vpop.f32.mrf.mxu2 }
 0x679   :  { %v3050_v59 = vadd.f32 %v3049_v58, %v2995_v4  ;;  %v6032_v4 = vld [vmem:[%s8135_s13 + $0x38] sm:$0xff] }
 0x67a   :  { %3702 = vmatpush.bf16.msra.mxu2 %v6032_v4 }
 0x67b   :  { %v3093_v48 = vpack.c.bf16 %v3050_v59, %v3050_v59  ;;  %v6031_v59 = vld [vmem:[%s8135_s13 + $0x30] sm:$0xff] }
 0x67c   :  { %v3054_v57 = vpop.f32.mrf.mxu3 }
 0x67d   :  { %v3129_v23 = vunpack.c.l.b16 %v3093_v48 }
 0x67e   :  { %3703 = vmatpush.bf16.msra.mxu2 %v6031_v59 }
 0x67f   :  { %v3146_v50 = vpack.c.b16 %v3129_v23, %v3128_v2 }
 0x680   :  { %v2998_v60 = vpop.f32.mrf.mxu2 }
 0x681   :  { %3304 = vmatmul.bf16.vlgmr.msrb.gmra.mxu0 %v3146_v50  ;;  %v3053_v51 = vadd.f32 %v3052_v9, %v2998_v60  ;;  %v6030_v60 = vld [vmem:[%s8135_s13 + $0x28] sm:$0xff] }
 0x682   :  { %3704 = vmatpush.bf16.msra.mxu2 %v6030_v60 }
 0x683   :  { %v3094_v30 = vpack.c.bf16 %v3053_v51, %v3053_v51 }
 0x684   :  { %v3057_v14 = vpop.f32.mrf.mxu3 }
 0x685   :  { %v3130_v15 = vunpack.c.l.b16 %v3094_v30 }
 0x688   :  { %v3000_v20 = vpop.f32.mrf.mxu2 }
 0x689   :  { %v3055_v34 = vadd.f32 %v3054_v57, %v3000_v20  ;;  %v3359_v20 = vpop.f32.mrf.mxu1 }
 0x68b   :  { %v3095_v0 = vpack.c.bf16 %v3055_v34, %v3055_v34  ;;  %v6029_v34 = vld [vmem:[%s8135_s13 + $0x20] sm:$0xff] }
 0x68c   :  { %v3059_v11 = vpop.f32.mrf.mxu3  ;;  %3705 = vmatpush.bf16.msra.mxu2 %v6029_v34  ;;  %v6043_v34 = vld [vmem:[%s8135_s13 + $0x90] sm:$0xff] }
 0x68d   :  { %v3131_v41 = vunpack.c.l.b16 %v3095_v0 }
 0x68f   :  { %v3147_v38 = vpack.c.b16 %v3131_v41, %v3130_v15 }
 0x690   :  { %v3003_v52 = vpop.f32.mrf.mxu2 }
 0x691   :  { %3309 = vmatmul.bf16.gmra.mxu0 %v3147_v38  ;;  %v3058_v19 = vadd.f32 %v3057_v14, %v3003_v52  ;;  %v6027_v38 = vld [vmem:[%s8135_s13 + $0x10] sm:$0xff]  ;;  %v3361_v52 = vpop.f32.mrf.mxu1 }
 0x693   :  { %v3096_v24 = vpack.c.bf16 %v3058_v19, %v3058_v19 }
 0x694   :  { %v3062_v37 = vpop.f32.mrf.mxu3 }
 0x695   :  { %v3132_v13 = vunpack.c.l.b16 %v3096_v24 }
 0x698   :  { %v3005_v61 = vpop.f32.mrf.mxu2 }
 0x699   :  { %v3060_v18 = vadd.f32 %v3059_v11, %v3005_v61  ;;  %v6028_v11 = vld [vmem:[%s8135_s13 + $0x18] sm:$0xff] }
 0x69a   :  { %3706 = vmatpush.bf16.msra.mxu2 %v6028_v11 }
 0x69b   :  { %v3097_v63 = vpack.c.bf16 %v3060_v18, %v3060_v18  ;;  %v6026_v18 = vld [vmem:[%s8135_s13 + $0x8] sm:$0xff] }
 0x69c   :  { %v3064_v26 = vpop.f32.mrf.mxu3 }
 0x69d   :  { %v3133_v16 = vunpack.c.l.b16 %v3097_v63  ;;  %v6040_v63 = vld [vmem:[%s8135_s13 + $0x78] sm:$0xff] }
 0x69e   :  { %3707 = vmatpush.bf16.msra.mxu2 %v6027_v38  ;;  %3741 = vmatpush.bf16.msra.mxu3 %v6040_v63  ;;  %v6042_v38 = vld [vmem:[%s8135_s13 + $0x88] sm:$0xff] }
 0x69f   :  { %v3148_v54 = vpack.c.b16 %v3133_v16, %v3132_v13 }
 0x6a0   :  { %v3008_v45 = vpop.f32.mrf.mxu2 }
 0x6a1   :  { %3314 = vmatmul.bf16.gmra.mxu0 %v3148_v54  ;;  %v3063_v28 = vadd.f32 %v3062_v37, %v3008_v45  ;;  %v6025_v45 = vld [vmem:[%s8135_s13] sm:$0xff] }
 0x6a2   :  { %3708 = vmatpush.bf16.msra.mxu2 %v6026_v18  ;;  %v6041_v18 = vld [vmem:[%s8135_s13 + $0x80] sm:$0xff] }
 0x6a3   :  { %v3098_v56 = vpack.c.bf16 %v3063_v28, %v3063_v28 }
 0x6a4   :  { %v3067_v43 = vpop.f32.mrf.mxu3 }
 0x6a5   :  { %v3134_v27 = vunpack.c.l.b16 %v3098_v56  ;;  %v6038_v56 = vld [vmem:[%s8135_s13 + $0x68] sm:$0xff] }
 0x6a6   :  { %3709 = vmatpush.bf16.msra.mxu2 %v6025_v45 }
 0x6a8   :  { %v3010_v12 = vpop.f32.mrf.mxu2 }
 0x6a9   :  { %v3065_v36 = vadd.f32 %v3064_v26, %v3010_v12  ;;  %v3364_v12 = vpop.f32.mrf.mxu1 }
 0x6ab   :  { %v3099_v7 = vpack.c.bf16 %v3065_v36, %v3065_v36 }
 0x6ac   :  { %v3069_v31 = vpop.f32.mrf.mxu3 }
 0x6ad   :  { %v3135_v1 = vunpack.c.l.b16 %v3099_v7  ;;  %v6037_v7 = vld [vmem:[%s8135_s13 + $0x60] sm:$0xff] }
 0x6af   :  { %v3149_v32 = vpack.c.b16 %v3135_v1, %v3134_v27 }
 0x6b0   :  { %v3013_v29 = vpop.f32.mrf.mxu2 }
 0x6b1   :  { %3319 = vmatmul.bf16.gmra.mxu0 %v3149_v32  ;;  %v3068_v33 = vadd.f32 %v3067_v43, %v3013_v29  ;;  %v6039_v43 = vld [vmem:[%s8135_s13 + $0x70] sm:$0xff] }
 0x6b2   :  { %3742 = vmatpush.bf16.msra.mxu3 %v6039_v43 }
 0x6b3   :  { %v3100_v44 = vpack.c.bf16 %v3068_v33, %v3068_v33  ;;  %v6036_v33 = vld [vmem:[%s8135_s13 + $0x58] sm:$0xff] }
 0x6b4   :  { %v3072_v42 = vpop.f32.mrf.mxu3 }
 0x6b5   :  { %v3136_v25 = vunpack.c.l.b16 %v3100_v44 }
 0x6b6   :  { %3743 = vmatpush.bf16.msra.mxu3 %v6038_v56 }
 0x6b8   :  { %v3015_v49 = vpop.f32.mrf.mxu2 }
 0x6b9   :  { %v3070_v35 = vadd.f32 %v3069_v31, %v3015_v49  ;;  %v3366_v49 = vpop.f32.mrf.mxu1 }
 0x6ba   :  { %3744 = vmatpush.bf16.msra.mxu3 %v6037_v7 }
 0x6bb   :  { %v3101_v47 = vpack.c.bf16 %v3070_v35, %v3070_v35 }
 0x6bc   :  { %v3074_v53 = vpop.f32.mrf.mxu3 }
 0x6bd   :  { %v3137_v6 = vunpack.c.l.b16 %v3101_v47 }
 0x6be   :  { %3745 = vmatpush.bf16.msra.mxu3 %v6036_v33 }
 0x6bf   :  { %v3150_v3 = vpack.c.b16 %v3137_v6, %v3136_v25  ;;  %v6035_v6 = vld [vmem:[%s8135_s13 + $0x50] sm:$0xff] }
 0x6c0   :  { %v3018_v17 = vpop.f32.mrf.mxu2 }
 0x6c1   :  { %3324 = vmatmul.bf16.gmra.mxu0 %v3150_v3  ;;  %v3073_v55 = vadd.f32 %v3072_v42, %v3018_v17  ;;  %v7537_v42 = vld [vmem:[%s8134_s12] ss:$0 sm:$0xff]  ;;  %v6034_v17 = vld [vmem:[%s8135_s13 + $0x48] sm:$0xff] }
 0x6c2   :  { %3746 = vmatpush.bf16.msra.mxu3 %v6035_v6 }
 0x6c3   :  { %v3102_v39 = vpack.c.bf16 %v3073_v55, %v3073_v55  ;;  %v6048_v55 = vld [vmem:[%s8135_s13 + $0xb8] sm:$0xff] }
 0x6c4   :  { %v3077_v40 = vpop.f32.mrf.mxu3  ;;  %3780 = vmatpush.bf16.msra.mxu0 %v6048_v55 }
 0x6c5   :  { %v3138_v10 = vunpack.c.l.b16 %v3102_v39 }
 0x6c6   :  { %3747 = vmatpush.bf16.msra.mxu3 %v6034_v17 }
 0x6c8   :  { %v3020_v8 = vpop.f32.mrf.mxu2 }
 0x6c9   :  { %v3075_v22 = vadd.f32 %v3074_v53, %v3020_v8 }
 0x6cb   :  { %v3103_v46 = vpack.c.bf16 %v3075_v22, %v3075_v22 }
 0x6cc   :  { %v3079_v62 = vpop.f32.mrf.mxu3 }
 0x6cd   :  { %v3139_v58 = vunpack.c.l.b16 %v3103_v46  ;;  %v6033_v46 = vld [vmem:[%s8135_s13 + $0x40] sm:$0xff] }
 0x6ce   :  { %3748 = vmatpush.bf16.msra.mxu3 %v6033_v46 }
 0x6cf   :  { %v3151_v5 = vpack.c.b16 %v3139_v58, %v3138_v10  ;;  %v6047_v10 = vld [vmem:[%s8135_s13 + $0xb0] sm:$0xff] }
 0x6d0   :  { %v3023_v9 = vpop.f32.mrf.mxu2  ;;  %3781 = vmatpush.bf16.msra.mxu0 %v6047_v10 }
 0x6d1   :  { %3329 = vmatmul.bf16.gmra.mxu0 %v3151_v5  ;;  %v3078_v21 = vadd.f32 %v3077_v40, %v3023_v9  ;;  %v3369_v40 = vpop.f32.mrf.mxu1 }
 0x6d3   :  { %v3104_v57 = vpack.c.bf16 %v3078_v21, %v3078_v21 }
 0x6d4   :  { %v3082_v23 = vpop.f32.mrf.mxu3 }
 0x6d5   :  { %v3140_v14 = vunpack.c.l.b16 %v3104_v57 }
 0x6d8   :  { %v3025_v48 = vpop.f32.mrf.mxu2 }
 0x6d9   :  { %v3080_v2 = vadd.f32 %v3079_v62, %v3025_v48  ;;  %v6046_v62 = vld [vmem:[%s8135_s13 + $0xa8] sm:$0xff] }
 0x6da   :  { %3782 = vmatpush.bf16.msra.mxu0 %v6046_v62 }
 0x6db   :  { %v3105_v50 = vpack.c.bf16 %v3080_v2, %v3080_v2  ;;  %v6045_v2 = vld [vmem:[%s8135_s13 + $0xa0] sm:$0xff] }
 0x6dc   :  { %v3084_v15 = vpop.f32.mrf.mxu3 }
 0x6dd   :  { %v3141_v51 = vunpack.c.l.b16 %v3105_v50 }
 0x6de   :  { %3783 = vmatpush.bf16.msra.mxu0 %v6045_v2 }
 0x6df   :  { %v3152_v30 = vpack.c.b16 %v3141_v51, %v3140_v14  ;;  %v6044_v14 = vld [vmem:[%s8135_s13 + $0x98] sm:$0xff] }
 0x6e0   :  { %v3028_v0 = vpop.f32.mrf.mxu2 }
 0x6e1   :  { %3334 = vmatmul.bf16.gmra.mxu0 %v3152_v30  ;;  %v3083_v41 = vadd.f32 %v3082_v23, %v3028_v0  ;;  %v3371_v23 = vpop.f32.mrf.mxu1 }
 0x6e2   :  { %3784 = vmatpush.bf16.msra.mxu0 %v6044_v14 }
 0x6e3   :  { %v3106_v19 = vpack.c.bf16 %v3083_v41, %v3083_v41 }
 0x6e4   :  { %v3087_v16 = vpop.f32.mrf.mxu3 }
 0x6e5   :  { %v3142_v26 = vunpack.c.l.b16 %v3106_v19 }
 0x6e6   :  { %3785 = vmatpush.bf16.msra.mxu0 %v6043_v34 }
 0x6e8   :  { %v3030_v37 = vpop.f32.mrf.mxu2 }
 0x6e9   :  { %v3085_v61 = vadd.f32 %v3084_v15, %v3030_v37  ;;  %v3374_v11 = vpop.f32.mrf.mxu1 }
 0x6ea   :  { %3786 = vmatpush.bf16.msra.mxu0 %v6042_v38 }
 0x6eb   :  { %v3107_v24 = vpack.c.bf16 %v3085_v61, %v3085_v61 }
 0x6ec   :  { %v3089_v27 = vpop.f32.mrf.mxu3 }
 0x6ed   :  { %v3143_v13 = vunpack.c.l.b16 %v3107_v24 }
 0x6ee   :  { %3787 = vmatpush.bf16.msra.mxu0 %v6041_v18 }
 0x6ef   :  { %v3153_v54 = vpack.c.b16 %v3143_v13, %v3142_v26 }
 0x6f0   :  { %v3033_v28 = vpop.f32.mrf.mxu2 }
 0x6f1   :  { %3339 = vmatmul.bf16.gmra.mxu0 %v3153_v54  ;;  %v3088_v36 = vadd.f32 %v3087_v16, %v3033_v28  ;;  %v3376_v16 = vpop.f32.mrf.mxu1 }
 0x6f3   :  { %v3108_v1 = vpack.c.bf16 %v3088_v36, %v3088_v36 }
 0x6f5   :  { %v3144_v44 = vunpack.c.l.b16 %v3108_v1 }
 0x6f8   :  { %v3035_v31 = vpop.f32.mrf.mxu2 }
 0x6f9   :  { %v3090_v32 = vadd.f32 %v3089_v27, %v3035_v31  ;;  %v3379_v31 = vpop.f32.mrf.mxu1 }
 0x6fb   :  { %v3109_v29 = vpack.c.bf16 %v3090_v32, %v3090_v32 }
 0x6fd   :  { %v3145_v35 = vunpack.c.l.b16 %v3109_v29 }
 0x6fe   :  { %v3305_v47 = vpop.f32.mrf.mxu0 }
 0x6ff   :  { %v3306_v53 = vadd.f32 %v7537_v42, %v3305_v47  ;;  %v3154_v25 = vpack.c.b16 %v3145_v35, %v3144_v44 }
 0x701   :  { %3344 = vmatmul.bf16.gmra.mxu0 %v3154_v25  ;;  %v3360_v3 = vadd.f32 %v3359_v20, %v3306_v53  ;;  %v3381_v25 = vpop.f32.mrf.mxu1 }
 0x703   :  { %v3404_v39 = vmax.f32 %v3360_v3, 0.0 }
 0x705   :  { %v3422_v5 = vpack.c.bf16 %v3404_v39, %v3404_v39 }
 0x706   :  { %v3307_v8 = vpop.f32.mrf.mxu0 }
 0x707   :  { %v3308_v22 = vadd.f32 %v7537_v42, %v3307_v8  ;;  %v3452_v59 = vunpack.c.l.b16 %v3422_v5 }
 0x709   :  { %v3362_v58 = vadd.f32 %v3361_v52, %v3308_v22  ;;  %v3384_v10 = vpop.f32.mrf.mxu1 }
 0x70b   :  { %v3405_v9 = vmax.f32 %v3362_v58, 0.0 }
 0x70d   :  { %v3423_v4 = vpack.c.bf16 %v3405_v9, %v3405_v9 }
 0x70e   :  { %v3310_v21 = vpop.f32.mrf.mxu0 }
 0x70f   :  { %v3453_v48 = vunpack.c.l.b16 %v3423_v4  ;;  %v3311_v57 = vadd.f32 %v7537_v42, %v3310_v21 }
 0x711   :  { %v3464_v50 = vpack.c.b16 %v3453_v48, %v3452_v59  ;;  %v3365_v60 = vadd.f32 %v3364_v12, %v3311_v57  ;;  %v3386_v57 = vpop.f32.mrf.mxu1 }
 0x713   :  { %3710 = vmatmul.bf16.vlgmr.msra.gmra.mxu2 %v3464_v50  ;;  %v3406_v20 = vmax.f32 %v3365_v60, 0.0 }
 0x715   :  { %v3424_v15 = vpack.c.bf16 %v3406_v20, %v3406_v20 }
 0x716   :  { %v3312_v51 = vpop.f32.mrf.mxu0 }
 0x717   :  { %v3313_v30 = vadd.f32 %v7537_v42, %v3312_v51  ;;  %v3454_v19 = vunpack.c.l.b16 %v3424_v15 }
 0x719   :  { %v3367_v0 = vadd.f32 %v3366_v49, %v3313_v30  ;;  %v3389_v34 = vpop.f32.mrf.mxu1 }
 0x71b   :  { %v3407_v41 = vmax.f32 %v3367_v0, 0.0 }
 0x71d   :  { %v3425_v52 = vpack.c.bf16 %v3407_v41, %v3407_v41 }
 0x71e   :  { %v3315_v37 = vpop.f32.mrf.mxu0 }
 0x71f   :  { %v3455_v61 = vunpack.c.l.b16 %v3425_v52  ;;  %v3316_v24 = vadd.f32 %v7537_v42, %v3315_v37 }
 0x721   :  { %v3370_v63 = vadd.f32 %v3369_v40, %v3316_v24  ;;  %v3465_v26 = vpack.c.b16 %v3455_v61, %v3454_v19  ;;  %v3391_v18 = vpop.f32.mrf.mxu1 }
 0x723   :  { %v3408_v13 = vmax.f32 %v3370_v63, 0.0  ;;  %3715 = vmatmul.bf16.gmra.mxu2 %v3465_v26 }
 0x725   :  { %v3426_v54 = vpack.c.bf16 %v3408_v13, %v3408_v13 }
 0x726   :  { %v3317_v45 = vpop.f32.mrf.mxu0 }
 0x727   :  { %v3456_v43 = vunpack.c.l.b16 %v3426_v54  ;;  %v3318_v28 = vadd.f32 %v7537_v42, %v3317_v45 }
 0x729   :  { %v3482_v12 = vpack.c.b16 %v3456_v43, %v3455_v61  ;;  %v3372_v56 = vadd.f32 %v3371_v23, %v3318_v28 }
 0x72b   :  { %v3409_v36 = vmax.f32 %v3372_v56, 0.0  ;;  %3749 = vmatmul.bf16.vlgmr.msra.gmra.mxu3 %v3482_v12  ;;  %v3394_v56 = vpop.f32.mrf.mxu1 }
 0x72d   :  { %v3427_v7 = vpack.c.bf16 %v3409_v36, %v3409_v36 }
 0x72e   :  { %v3320_v27 = vpop.f32.mrf.mxu0 }
 0x72f   :  { %v3457_v1 = vunpack.c.l.b16 %v3427_v7  ;;  %v3321_v32 = vadd.f32 %v7537_v42, %v3320_v27 }
 0x731   :  { %v3375_v29 = vadd.f32 %v3374_v11, %v3321_v32  ;;  %v3466_v33 = vpack.c.b16 %v3457_v1, %v3456_v43 }
 0x733   :  { %v3410_v49 = vmax.f32 %v3375_v29, 0.0  ;;  %3720 = vmatmul.bf16.gmra.mxu2 %v3466_v33 }
 0x735   :  { %v3428_v44 = vpack.c.bf16 %v3410_v49, %v3410_v49  ;;  %v3396_v49 = vpop.f32.mrf.mxu1 }
 0x736   :  { %v3322_v35 = vpop.f32.mrf.mxu0 }
 0x737   :  { %v3458_v47 = vunpack.c.l.b16 %v3428_v44  ;;  %v3323_v53 = vadd.f32 %v7537_v42, %v3322_v35 }
 0x739   :  { %v3377_v6 = vadd.f32 %v3376_v16, %v3323_v53  ;;  %v3483_v3 = vpack.c.b16 %v3458_v47, %v3457_v1 }
 0x73b   :  { %v3411_v17 = vmax.f32 %v3377_v6, 0.0  ;;  %3754 = vmatmul.bf16.gmra.mxu3 %v3483_v3 }
 0x73d   :  { %v3429_v55 = vpack.c.bf16 %v3411_v17, %v3411_v17 }
 0x73e   :  { %v3325_v40 = vpop.f32.mrf.mxu0 }
 0x73f   :  { %v3459_v8 = vunpack.c.l.b16 %v3429_v55  ;;  %v3326_v39 = vadd.f32 %v7537_v42, %v3325_v40  ;;  %v3399_v55 = vpop.f32.mrf.mxu1 }
 0x741   :  { %v3380_v22 = vadd.f32 %v3379_v31, %v3326_v39  ;;  %v3467_v46 = vpack.c.b16 %v3459_v8, %v3458_v47 }
 0x743   :  { %v3412_v58 = vmax.f32 %v3380_v22, 0.0  ;;  %3725 = vmatmul.bf16.gmra.mxu2 %v3467_v46  ;;  %3788 = vmatmul.bf16.vlgmr.msra.gmra.mxu0 %v3467_v46 }
 0x745   :  { %v3430_v5 = vpack.c.bf16 %v3412_v58, %v3412_v58 }
 0x746   :  { %v3327_v9 = vpop.f32.mrf.mxu0 }
 0x747   :  { %v3460_v62 = vunpack.c.l.b16 %v3430_v5  ;;  %v3328_v4 = vadd.f32 %v7537_v42, %v3327_v9  ;;  %v3401_v9 = vpop.f32.mrf.mxu1 }
 0x749   :  { %v3382_v21 = vadd.f32 %v3381_v25, %v3328_v4  ;;  %v3484_v59 = vpack.c.b16 %v3460_v62, %v3459_v8 }
 0x74b   :  { %v3413_v48 = vmax.f32 %v3382_v21, 0.0  ;;  %3759 = vmatmul.bf16.gmra.mxu3 %v3484_v59 }
 0x74d   :  { %v3431_v2 = vpack.c.bf16 %v3413_v48, %v3413_v48 }
 0x74e   :  { %v3330_v23 = vpop.f32.mrf.mxu0 }
 0x74f   :  { %v3461_v50 = vunpack.c.l.b16 %v3431_v2  ;;  %v3331_v60 = vadd.f32 %v7537_v42, %v3330_v23  ;;  %v5600_v2 = vld [vmem:[%s8137_s15 + $0x70] sm:$0xf]  ;;  %v6064_v23 = vld [vmem:[%s8137_s15 + $0x74] sm:$0xf0] }
 0x751   :  { %v3385_v14 = vadd.f32 %v3384_v10, %v3331_v60  ;;  %v3468_v51 = vpack.c.b16 %v3461_v50, %v3460_v62  ;;  %v5602_v60 = vld [vmem:[%s8137_s15 + $0x78] sm:$0xf0] }
 0x753   :  { %v3414_v20 = vmax.f32 %v3385_v14, 0.0  ;;  %3730 = vmatmul.bf16.gmra.mxu2 %v3468_v51  ;;  %3793 = vmatmul.bf16.gmra.mxu0 %v3468_v51 }
 0x755   :  { %v3432_v30 = vpack.c.bf16 %v3414_v20, %v3414_v20  ;;  %v5592_v20 = vld [vmem:[%s8137_s15 + $0x60] sm:$0xf] }
 0x756   :  { %v3332_v0 = vpop.f32.mrf.mxu0 }
 0x757   :  { %v3462_v11 = vunpack.c.l.b16 %v3432_v30  ;;  %v3333_v15 = vadd.f32 %v7537_v42, %v3332_v0  ;;  %v6062_v30 = vld [vmem:[%s8137_s15 + $0x64] sm:$0xf0] }
 0x758   :  { %v5593_v0 = vor.u32 %v6062_v30, %v5592_v20  ;;  %v5640_v20 = vld [vmem:[%s8137_s15 + $0xc0] sm:$0xf]  ;;  %v6074_v30 = vld [vmem:[%s8137_s15 + $0xc4] sm:$0xf0] }
 0x759   :  { %v3387_v41 = vadd.f32 %v3386_v57, %v3333_v15  ;;  %v3485_v38 = vpack.c.b16 %v3462_v11, %v3461_v50  ;;  %v6063_v50 = vld [vmem:[%s8137_s15 + $0x74] sm:$0xf]  ;;  %v5584_v15 = vld [vmem:[%s8137_s15 + $0x50] sm:$0xf] }
 0x75a   :  { %v5605_v51 = vor.u32 %v6063_v50, %v5602_v60  ;;  %v6075_v50 = vld [vmem:[%s8137_s15 + $0xd4] sm:$0xf]  ;;  %v5650_v60 = vld [vmem:[%s8137_s15 + $0xd8] sm:$0xf0] }
 0x75b   :  { %v3415_v52 = vmax.f32 %v3387_v41, 0.0  ;;  %3764 = vmatmul.bf16.gmra.mxu3 %v3485_v38  ;;  %v6060_v41 = vld [vmem:[%s8137_s15 + $0x54] sm:$0xf0] }
 0x75c   :  { %4345 = vmatpush.bf16.msrb.mxu0 %v5605_v51 }
 0x75d   :  { %v3433_v37 = vpack.c.bf16 %v3415_v52, %v3415_v52  ;;  %v6059_v52 = vld [vmem:[%s8137_s15 + $0x54] sm:$0xf] }
 0x75e   :  { %v3335_v19 = vpop.f32.mrf.mxu0 }
 0x75f   :  { %v3463_v61 = vunpack.c.l.b16 %v3433_v37  ;;  %v3336_v24 = vadd.f32 %v7537_v42, %v3335_v19  ;;  %v5586_v37 = vld [vmem:[%s8137_s15 + $0x58] sm:$0xf0]  ;;  %v5585_v19 = vor.u32 %v6060_v41, %v5584_v15 }
 0x761   :  { %v3390_v63 = vadd.f32 %v3389_v34, %v3336_v24  ;;  %v3469_v26 = vpack.c.b16 %v3463_v61, %v3462_v11  ;;  %v6061_v34 = vld [vmem:[%s8137_s15 + $0x64] sm:$0xf]  ;;  %v5594_v11 = vld [vmem:[%s8137_s15 + $0x68] sm:$0xf0]  ;;  %v5576_v24 = vld [vmem:[%s8137_s15 + $0x40] sm:$0xf] }
 0x762   :  { %v5597_v38 = vor.u32 %v6061_v34, %v5594_v11  ;;  %v6073_v34 = vld [vmem:[%s8137_s15 + $0xc4] sm:$0xf]  ;;  %v5642_v11 = vld [vmem:[%s8137_s15 + $0xc8] sm:$0xf0] }
 0x763   :  { %v3416_v13 = vmax.f32 %v3390_v63, 0.0  ;;  %3735 = vmatmul.bf16.gmra.mxu2 %v3469_v26  ;;  %3798 = vmatmul.bf16.gmra.mxu0 %v3469_v26  ;;  %v6057_v63 = vld [vmem:[%s8137_s15 + $0x44] sm:$0xf]  ;;  %v5645_v41 = vor.u32 %v6073_v34, %v5642_v11  ;;  %v5696_v11 = vld [vmem:[%s8137_s15 + $0x130] sm:$0xf] }
 0x764   :  { %4346 = vmatpush.bf16.msrb.mxu0 %v5597_v38  ;;  %v7746_v38 = vld [vmem:[%s8136_s14] ss:$0 sm:$0xff] }
 0x765   :  { %v3434_v16 = vpack.c.bf16 %v3416_v13, %v3416_v13  ;;  %v5578_v13 = vld [vmem:[%s8137_s15 + $0x48] sm:$0xf0] }
 0x766   :  { %v3337_v54 = vpop.f32.mrf.mxu0 }
 0x767   :  { %v3479_v45 = vunpack.c.l.b16 %v3434_v16  ;;  %v3338_v43 = vadd.f32 %v7537_v42, %v3337_v54  ;;  %v5581_v16 = vor.u32 %v6057_v63, %v5578_v13  ;;  %v5568_v54 = vld [vmem:[%s8137_s15 + $0x30] sm:$0xf]  ;;  %v5624_v13 = vld [vmem:[%s8137_s15 + $0xa0] sm:$0xf] }
 0x769   :  { %v3392_v28 = vadd.f32 %v3391_v18, %v3338_v43  ;;  %v3486_v12 = vpack.c.b16 %v3479_v45, %v3463_v61  ;;  %v5589_v61 = vor.u32 %v6059_v52, %v5586_v37  ;;  %v6058_v18 = vld [vmem:[%s8137_s15 + $0x44] sm:$0xf0]  ;;  %v6055_v43 = vld [vmem:[%s8137_s15 + $0x34] sm:$0xf]  ;;  %v5632_v52 = vld [vmem:[%s8137_s15 + $0xb0] sm:$0xf] }
 0x76a   :  { %v5577_v26 = vor.u32 %v6058_v18, %v5576_v24  ;;  %v6072_v37 = vld [vmem:[%s8137_s15 + $0xb4] sm:$0xf0]  ;;  %v5634_v24 = vld [vmem:[%s8137_s15 + $0xb8] sm:$0xf0] }
 0x76b   :  { %v3417_v36 = vmax.f32 %v3392_v28, 0.0  ;;  %3769 = vmatmul.bf16.gmra.mxu3 %v3486_v12  ;;  %4347 = vmatpush.bf16.msrb.mxu0 %v5589_v61  ;;  %v5570_v12 = vld [vmem:[%s8137_s15 + $0x38] sm:$0xf0]  ;;  %v5633_v61 = vor.u32 %v6072_v37, %v5632_v52 }
 0x76d   :  { %v3435_v7 = vpack.c.bf16 %v3417_v36, %v3417_v36  ;;  %v5573_v36 = vor.u32 %v6055_v43, %v5570_v12 }
 0x76e   :  { %v3340_v31 = vpop.f32.mrf.mxu0 }
 0x76f   :  { %v3480_v27 = vunpack.c.l.b16 %v3435_v7  ;;  %v3341_v1 = vadd.f32 %v7537_v42, %v3340_v31  ;;  %4348 = vmatpush.bf16.msrb.mxu0 %v5581_v16  ;;  %v5560_v7 = vld [vmem:[%s8137_s15 + $0x20] sm:$0xf]  ;;  %v6054_v31 = vld [vmem:[%s8137_s15 + $0x24] sm:$0xf0] }
 0x770   :  { %v6070_v16 = vld [vmem:[%s8137_s15 + $0xa4] sm:$0xf0] }
 0x771   :  { %v3395_v32 = vadd.f32 %v3394_v56, %v3341_v1  ;;  %v3500_v29 = vpack.c.b16 %v3480_v27, %v3479_v45  ;;  %v6056_v45 = vld [vmem:[%s8137_s15 + $0x34] sm:$0xf0]  ;;  %v5561_v1 = vor.u32 %v6054_v31, %v5560_v7  ;;  %v5625_v43 = vor.u32 %v6070_v16, %v5624_v13  ;;  %v5616_v31 = vld [vmem:[%s8137_s15 + $0x90] sm:$0xf] }
 0x772   :  { %v5569_v28 = vor.u32 %v6056_v45, %v5568_v54  ;;  %v6069_v54 = vld [vmem:[%s8137_s15 + $0xa4] sm:$0xf] }
 0x773   :  { %v3418_v33 = vmax.f32 %v3395_v32, 0.0  ;;  %3803 = vmatmul.bf16.gmra.mxu0 %v3500_v29  ;;  %v5562_v32 = vld [vmem:[%s8137_s15 + $0x28] sm:$0xf0] }
 0x774   :  { %4349 = vmatpush.bf16.msrb.mxu0 %v5573_v36 }
 0x775   :  { %v3436_v44 = vpack.c.bf16 %v3418_v33, %v3418_v33  ;;  %v5552_v33 = vld [vmem:[%s8137_s15 + $0x10] sm:$0xf] }
 0x776   :  { %v3342_v35 = vpop.f32.mrf.mxu0 }
 0x777   :  { %v3481_v47 = vunpack.c.l.b16 %v3436_v44  ;;  %v3343_v53 = vadd.f32 %v7537_v42, %v3342_v35  ;;  %v5664_v44 = vld [vmem:[%s8137_s15 + $0xf0] sm:$0xf] }
 0x779   :  { %v3397_v25 = vadd.f32 %v3396_v49, %v3343_v53  ;;  %v3487_v6 = vpack.c.b16 %v3481_v47, %v3480_v27  ;;  %v6053_v27 = vld [vmem:[%s8137_s15 + $0x24] sm:$0xf]  ;;  %v6052_v49 = vld [vmem:[%s8137_s15 + $0x14] sm:$0xf0]  ;;  %v6051_v53 = vld [vmem:[%s8137_s15 + $0x14] sm:$0xf] }
 0x77a   :  { %v5565_v29 = vor.u32 %v6053_v27, %v5562_v32  ;;  %v5553_v35 = vor.u32 %v6052_v49, %v5552_v33  ;;  %v6068_v27 = vld [vmem:[%s8137_s15 + $0x94] sm:$0xf0]  ;;  %v6067_v33 = vld [vmem:[%s8137_s15 + $0x94] sm:$0xf] }
 0x77b   :  { %v3419_v3 = vmax.f32 %v3397_v25, 0.0  ;;  %3774 = vmatmul.bf16.gmra.mxu3 %v3487_v6  ;;  %v5554_v25 = vld [vmem:[%s8137_s15 + $0x18] sm:$0xf0]  ;;  %v5617_v32 = vor.u32 %v6068_v27, %v5616_v31  ;;  %v5672_v27 = vld [vmem:[%s8137_s15 + $0x100] sm:$0xf] }
 0x77c   :  { %4350 = vmatpush.bf16.msrb.mxu0 %v5565_v29  ;;  %v6096_v29 = vld [vmem:[%s8137_s15 + $0x174] sm:$0xf0] }
 0x77d   :  { %v3437_v17 = vpack.c.bf16 %v3419_v3, %v3419_v3  ;;  %v5557_v3 = vor.u32 %v6051_v53, %v5554_v25 }
 0x77e   :  { %v3345_v40 = vpop.f32.mrf.mxu0 }
 0x77f   :  { %v3497_v8 = vunpack.c.l.b16 %v3437_v17  ;;  %v3346_v39 = vadd.f32 %v7537_v42, %v3345_v40  ;;  %v6079_v17 = vld [vmem:[%s8137_s15 + $0xf4] sm:$0xf] }
 0x780   :  { %4351 = vmatpush.bf16.msrb.mxu0 %v5557_v3  ;;  %v6066_v3 = vld [vmem:[%s8137_s15 + $0x84] sm:$0xf0] }
 0x781   :  { %v3501_v22 = vpack.c.b16 %v3497_v8, %v3481_v47  ;;  %v3400_v46 = vadd.f32 %v3399_v55, %v3346_v39  ;;  %v6080_v47 = vld [vmem:[%s8137_s15 + $0xf4] sm:$0xf0]  ;;  %v5666_v55 = vld [vmem:[%s8137_s15 + $0xf8] sm:$0xf0] }
 0x782   :  { %v5665_v6 = vor.u32 %v6080_v47, %v5664_v44  ;;  %v5669_v40 = vor.u32 %v6079_v17, %v5666_v55  ;;  %v5618_v44 = vld [vmem:[%s8137_s15 + $0x98] sm:$0xf0]  ;;  %v5720_v17 = vld [vmem:[%s8137_s15 + $0x160] sm:$0xf] }
 0x783   :  { %3808 = vmatmul.bf16.gmra.mxu0 %v3501_v22  ;;  %v3420_v58 = vmax.f32 %v3400_v46, 0.0  ;;  %v5544_v22 = vld [vmem:[%s8137_s15] sm:$0xf]  ;;  %v6050_v46 = vld [vmem:[%s8137_s15 + $0x4] sm:$0xf0]  ;;  %v5621_v53 = vor.u32 %v6067_v33, %v5618_v44 }
 0x784   :  { %4291 = vmatpush.bf16.msrb.mxu3 %v5665_v6  ;;  %4363 = vmatpush.bf16.msrb.mxu1 %v5669_v40  ;;  %v5608_v6 = vld [vmem:[%s8137_s15 + $0x80] sm:$0xf]  ;;  %v6110_v44 = vld [vmem:[%s8137_s15 + $0x1e4] sm:$0xf0] }
 0x785   :  { %v3438_v4 = vpack.c.bf16 %v3420_v58, %v3420_v58  ;;  %v5545_v58 = vor.u32 %v6050_v46, %v5544_v22  ;;  %v5609_v40 = vor.u32 %v6066_v3, %v5608_v6  ;;  %v5610_v22 = vld [vmem:[%s8137_s15 + $0x88] sm:$0xf0] }
 0x786   :  { %v3347_v10 = vpop.f32.mrf.mxu0 }
 0x787   :  { %v3348_v5 = vadd.f32 %v7537_v42, %v3347_v10  ;;  %v3498_v48 = vunpack.c.l.b16 %v3438_v4  ;;  %v5601_v42 = vor.u32 %v6064_v23, %v5600_v2  ;;  %v5656_v10 = vld [vmem:[%s8137_s15 + $0xe0] sm:$0xf]  ;;  %v5648_v2 = vld [vmem:[%s8137_s15 + $0xd0] sm:$0xf]  ;;  %v6076_v23 = vld [vmem:[%s8137_s15 + $0xd4] sm:$0xf0] }
 0x789   :  { %v3402_v62 = vadd.f32 %v3401_v9, %v3348_v5  ;;  %4273 = vmatpush.bf16.msrb.mxu2 %v5601_v42  ;;  %v6078_v5 = vld [vmem:[%s8137_s15 + $0xe4] sm:$0xf0]  ;;  %v6049_v9 = vld [vmem:[%s8137_s15 + $0x4] sm:$0xf]  ;;  %v5649_v42 = vor.u32 %v6076_v23, %v5648_v2 }
 0x78a   :  { %v5657_v4 = vor.u32 %v6078_v5, %v5656_v10 }
 0x78b   :  { %v3421_v21 = vmax.f32 %v3402_v62, 0.0  ;;  %v5546_v62 = vld [vmem:[%s8137_s15 + $0x8] sm:$0xf0] }
 0x78c   :  { %4292 = vmatpush.bf16.msrb.mxu3 %v5657_v4 }
 0x78d   :  { %v3439_v59 = vpack.c.bf16 %v3421_v21, %v3421_v21  ;;  %4274 = vmatpush.bf16.msrb.mxu2 %v5593_v0  ;;  %v5549_v21 = vor.u32 %v6049_v9, %v5546_v62  ;;  %v5641_v0 = vor.u32 %v6074_v30, %v5640_v20  ;;  %v5712_v9 = vld [vmem:[%s8137_s15 + $0x150] sm:$0xf]  ;;  %v6092_v62 = vld [vmem:[%s8137_s15 + $0x154] sm:$0xf0] }
 0x78f   :  { %v3499_v57 = vunpack.c.l.b16 %v3439_v59  ;;  %v6077_v59 = vld [vmem:[%s8137_s15 + $0xe4] sm:$0xf]  ;;  %4352 = vmatpush.bf16.msrb.mxu0 %v5549_v21 }
 0x790   :  { %4293 = vmatpush.bf16.msrb.mxu3 %v5649_v42  ;;  %v6090_v42 = vld [vmem:[%s8137_s15 + $0x144] sm:$0xf0] }
 0x791   :  { %v3502_v14 = vpack.c.b16 %v3499_v57, %v3498_v48  ;;  %4275 = vmatpush.bf16.msrb.mxu2 %v5585_v19  ;;  %v5658_v48 = vld [vmem:[%s8137_s15 + $0xe8] sm:$0xf0]  ;;  %v6071_v19 = vld [vmem:[%s8137_s15 + $0xb4] sm:$0xf] }
 0x792   :  { %v5661_v57 = vor.u32 %v6077_v59, %v5658_v48  ;;  %v5637_v18 = vor.u32 %v6071_v19, %v5634_v24  ;;  %v5713_v59 = vor.u32 %v6092_v62, %v5712_v9  ;;  %v5688_v19 = vld [vmem:[%s8137_s15 + $0x120] sm:$0xf]  ;;  %v6106_v62 = vld [vmem:[%s8137_s15 + $0x1c4] sm:$0xf0] }
 0x793   :  { %3813 = vmatmul.bf16.gmra.mxu0 %v3502_v14  ;;  %v5653_v14 = vor.u32 %v6075_v50, %v5650_v60  ;;  %v5704_v50 = vld [vmem:[%s8137_s15 + $0x140] sm:$0xf] }
 0x794   :  { %4364 = vmatpush.bf16.msrb.mxu1 %v5661_v57  ;;  %4294 = vmatpush.bf16.msrb.mxu3 %v5641_v0  ;;  %v5705_v20 = vor.u32 %v6090_v42, %v5704_v50  ;;  %v5768_v9 = vld [vmem:[%s8137_s15 + $0x1c0] sm:$0xf] }
 0x795   :  { %4276 = vmatpush.bf16.msrb.mxu2 %v5577_v26 }
 0x796   :  { %v7653_v56 = vpop.f32.mrf.mxu2 }
 0x797   :  { %v3712_v63 = vadd.f32 %v7746_v38, %v7653_v56 }
 0x798   :  { %4365 = vmatpush.bf16.msrb.mxu1 %v5653_v14  ;;  %4295 = vmatpush.bf16.msrb.mxu3 %v5633_v61  ;;  %v6086_v61 = vld [vmem:[%s8137_s15 + $0x124] sm:$0xf0] }
 0x799   :  { %4277 = vmatpush.bf16.msrb.mxu2 %v5569_v28  ;;  %v5626_v28 = vld [vmem:[%s8137_s15 + $0xa8] sm:$0xf0] }
 0x79a   :  { %v5629_v56 = vor.u32 %v6069_v54, %v5626_v28  ;;  %v5680_v54 = vld [vmem:[%s8137_s15 + $0x110] sm:$0xf] }
 0x79c   :  { %4366 = vmatpush.bf16.msrb.mxu1 %v5645_v41  ;;  %4296 = vmatpush.bf16.msrb.mxu3 %v5625_v43  ;;  %v5792_v43 = vld [vmem:[%s8137_s15 + $0x1f0] sm:$0xf] }
 0x79d   :  { %4278 = vmatpush.bf16.msrb.mxu2 %v5561_v1  ;;  %v5728_v1 = vld [vmem:[%s8137_s15 + $0x170] sm:$0xf] }
 0x79e   :  { %v7691_v8 = vpop.f32.mrf.mxu2  ;;  %v5729_v49 = vor.u32 %v6096_v29, %v5728_v1  ;;  %v6082_v1 = vld [vmem:[%s8137_s15 + $0x104] sm:$0xf0] }
 0x7a0   :  { %4367 = vmatpush.bf16.msrb.mxu1 %v5637_v18  ;;  %4297 = vmatpush.bf16.msrb.mxu3 %v5617_v32  ;;  %v5689_v18 = vor.u32 %v6086_v61, %v5688_v19  ;;  %v5784_v32 = vld [vmem:[%s8137_s15 + $0x1e0] sm:$0xf]  ;;  %v6089_v19 = vld [vmem:[%s8137_s15 + $0x144] sm:$0xf] }
 0x7a1   :  { %4279 = vmatpush.bf16.msrb.mxu2 %v5553_v35  ;;  %v3714_v35 = vadd.f32 %v7746_v38, %v7691_v8  ;;  %v6094_v8 = vld [vmem:[%s8137_s15 + $0x164] sm:$0xf0] }
 0x7a2   :  { %v5721_v10 = vor.u32 %v6094_v8, %v5720_v17  ;;  %v5776_v17 = vld [vmem:[%s8137_s15 + $0x1d0] sm:$0xf] }
 0x7a4   :  { %4368 = vmatpush.bf16.msrb.mxu1 %v5629_v56  ;;  %4298 = vmatpush.bf16.msrb.mxu3 %v5609_v40  ;;  %v6112_v56 = vld [vmem:[%s8137_s15 + $0x1f4] sm:$0xf0]  ;;  %v6095_v40 = vld [vmem:[%s8137_s15 + $0x174] sm:$0xf] }
 0x7a5   :  { %4280 = vmatpush.bf16.msrb.mxu2 %v5545_v58 }
 0x7a6   :  { %v7741_v15 = vpop.f32.mrf.mxu2 }
 0x7a7   :  { %v3717_v57 = vadd.f32 %v7746_v38, %v7741_v15  ;;  %v6088_v15 = vld [vmem:[%s8137_s15 + $0x134] sm:$0xf0] }
 0x7a8   :  { %4369 = vmatpush.bf16.msrb.mxu1 %v5621_v53  ;;  %v5697_v41 = vor.u32 %v6088_v15, %v5696_v11  ;;  %v5785_v53 = vor.u32 %v6110_v44, %v5784_v32  ;;  %v5736_v32 = vld [vmem:[%s8137_s15 + $0x180] sm:$0xf] }
 0x7a9   :  { %4309 = vmatpush.bf16.msra.mxu2 %v5729_v49  ;;  %v5673_v49 = vor.u32 %v6082_v1, %v5672_v27 }
 0x7ad   :  { %4310 = vmatpush.bf16.msra.mxu2 %v5721_v10 }
 0x7ae   :  { %v3750_v39 = vpop.f32.mrf.mxu3  ;;  %v7774_v7 = vpop.f32.mrf.mxu2 }
 0x7af   :  { %v3751_v45 = vadd.f32 %v3750_v39, %v3712_v63  ;;  %v6065_v39 = vld [vmem:[%s8137_s15 + $0x84] sm:$0xf]  ;;  %v3719_v24 = vadd.f32 %v7746_v38, %v7774_v7 }
 0x7b0   :  { %v5613_v58 = vor.u32 %v6065_v39, %v5610_v22 }
 0x7b1   :  { %4311 = vmatpush.bf16.msra.mxu2 %v5713_v59 }
 0x7b2   :  { %4370 = vmatpush.bf16.msrb.mxu1 %v5613_v58 }
 0x7b5   :  { %4312 = vmatpush.bf16.msra.mxu2 %v5705_v20  ;;  %v6104_v20 = vld [vmem:[%s8137_s15 + $0x1b4] sm:$0xf0] }
 0x7b6   :  { %v3752_v51 = vpop.f32.mrf.mxu3  ;;  %v3721_v48 = vpop.f32.mrf.mxu2 }
 0x7b7   :  { %v3753_v55 = vadd.f32 %v3752_v51, %v3714_v35  ;;  %v3722_v7 = vadd.f32 %v7746_v38, %v3721_v48 }
 0x7b9   :  { %4313 = vmatpush.bf16.msra.mxu2 %v5697_v41 }
 0x7bd   :  { %4314 = vmatpush.bf16.msra.mxu2 %v5689_v18  ;;  %v5706_v18 = vld [vmem:[%s8137_s15 + $0x148] sm:$0xf0] }
 0x7be   :  { %v3755_v26 = vpop.f32.mrf.mxu3  ;;  %v3723_v37 = vpop.f32.mrf.mxu2 }
 0x7bf   :  { %v3756_v60 = vadd.f32 %v3755_v26, %v3717_v57  ;;  %v3724_v58 = vadd.f32 %v7746_v38, %v3723_v37  ;;  %v5769_v57 = vor.u32 %v6106_v62, %v5768_v9  ;;  %v6102_v37 = vld [vmem:[%s8137_s15 + $0x1a4] sm:$0xf0]  ;;  %v6081_v62 = vld [vmem:[%s8137_s15 + $0x104] sm:$0xf] }
 0x7c0   :  { %v3789_v12 = vpop.f32.mrf.mxu0 }
 0x7c1   :  { %v3790_v36 = vadd.f32 %v3789_v12, %v3751_v45  ;;  %v6084_v45 = vld [vmem:[%s8137_s15 + $0x114] sm:$0xf0] }
 0x7c2   :  { %v5681_v12 = vor.u32 %v6084_v45, %v5680_v54  ;;  %v5744_v54 = vld [vmem:[%s8137_s15 + $0x190] sm:$0xf]  ;;  %v6100_v45 = vld [vmem:[%s8137_s15 + $0x194] sm:$0xf0] }
 0x7c3   :  { %v3819_v47 = vmax.f32 %v3790_v36, 0.0  ;;  %v5793_v36 = vor.u32 %v6112_v56, %v5792_v43  ;;  %v6087_v43 = vld [vmem:[%s8137_s15 + $0x134] sm:$0xf]  ;;  %v5698_v56 = vld [vmem:[%s8137_s15 + $0x138] sm:$0xf0] }
 0x7c4   :  { %4315 = vmatpush.bf16.msra.mxu2 %v5681_v12  ;;  %v5745_v12 = vor.u32 %v6100_v45, %v5744_v54  ;;  %v6101_v54 = vld [vmem:[%s8137_s15 + $0x1a4] sm:$0xf]  ;;  %v5754_v45 = vld [vmem:[%s8137_s15 + $0x1a8] sm:$0xf0] }
 0x7c5   :  { %v3831_v4 = vpack.c.bf16 %v3819_v47, %v3819_v47  ;;  %4327 = vmatpush.bf16.msra.mxu3 %v5793_v36 }
 0x7c6   :  { %v3757_v25 = vpop.f32.mrf.mxu3  ;;  %v3726_v35 = vpop.f32.mrf.mxu2 }
 0x7c7   :  { %v3846_v14 = vunpack.c.l.b16 %v3831_v4  ;;  %v3758_v13 = vadd.f32 %v3757_v25, %v3719_v24  ;;  %v6093_v4 = vld [vmem:[%s8137_s15 + $0x164] sm:$0xf]  ;;  %v3727_v61 = vadd.f32 %v7746_v38, %v3726_v35 }
 0x7c8   :  { %v3791_v46 = vpop.f32.mrf.mxu0  ;;  %4316 = vmatpush.bf16.msra.mxu2 %v5673_v49 }
 0x7c9   :  { %v3792_v5 = vadd.f32 %v3791_v46, %v3753_v55  ;;  %4328 = vmatpush.bf16.msra.mxu3 %v5785_v53  ;;  %v6108_v55 = vld [vmem:[%s8137_s15 + $0x1d4] sm:$0xf0]  ;;  %v5730_v46 = vld [vmem:[%s8137_s15 + $0x178] sm:$0xf0] }
 0x7ca   :  { %v5777_v22 = vor.u32 %v6108_v55, %v5776_v17  ;;  %v5733_v10 = vor.u32 %v6095_v40, %v5730_v46  ;;  %v6083_v17 = vld [vmem:[%s8137_s15 + $0x114] sm:$0xf]  ;;  %v5682_v55 = vld [vmem:[%s8137_s15 + $0x118] sm:$0xf0] }
 0x7cb   :  { %v3820_v21 = vmax.f32 %v3792_v5, 0.0  ;;  %v6111_v40 = vld [vmem:[%s8137_s15 + $0x1f4] sm:$0xf]  ;;  %v5794_v46 = vld [vmem:[%s8137_s15 + $0x1f8] sm:$0xf0] }
 0x7cd   :  { %v3832_v2 = vpack.c.bf16 %v3820_v21, %v3820_v21  ;;  %4329 = vmatpush.bf16.msra.mxu3 %v5777_v22  ;;  %v5685_v22 = vor.u32 %v6083_v17, %v5682_v55 }
 0x7ce   :  { %v3760_v23 = vpop.f32.mrf.mxu3 }
 0x7cf   :  { %v3847_v51 = vunpack.c.l.b16 %v3832_v2  ;;  %v3761_v29 = vadd.f32 %v3760_v23, %v3722_v7  ;;  %v5722_v2 = vld [vmem:[%s8137_s15 + $0x168] sm:$0xf0]  ;;  %v5701_v7 = vor.u32 %v6087_v43, %v5698_v56 }
 0x7d0   :  { %v3794_v30 = vpop.f32.mrf.mxu0  ;;  %v5725_v50 = vor.u32 %v6093_v4, %v5722_v2  ;;  %v5674_v4 = vld [vmem:[%s8137_s15 + $0x108] sm:$0xf0] }
 0x7d1   :  { %v3849_v34 = vpack.c.b16 %v3847_v51, %v3846_v14  ;;  %v3795_v0 = vadd.f32 %v3794_v30, %v3756_v60  ;;  %v3728_v14 = vpop.f32.mrf.mxu2  ;;  %4330 = vmatpush.bf16.msra.mxu3 %v5769_v57  ;;  %v5760_v51 = vld [vmem:[%s8137_s15 + $0x1b0] sm:$0xf]  ;;  %v6091_v30 = vld [vmem:[%s8137_s15 + $0x154] sm:$0xf]  ;;  %v5677_v2 = vor.u32 %v6081_v62, %v5674_v4 }
 0x7d3   :  { %4281 = vmatmul.bf16.vlgmr.msrb.gmra.mxu2 %v3849_v34  ;;  %4353 = vmatmul.bf16.vlgmr.msrb.gmra.mxu0 %v3849_v34  ;;  %v3821_v52 = vmax.f32 %v3795_v0, 0.0  ;;  %v5761_v34 = vor.u32 %v6104_v20, %v5760_v51  ;;  %v5714_v0 = vld [vmem:[%s8137_s15 + $0x158] sm:$0xf0]  ;;  %v6107_v20 = vld [vmem:[%s8137_s15 + $0x1d4] sm:$0xf] }
 0x7d4   :  { %4381 = vmatpush.bf16.msrb.mxu2 %v5733_v10  ;;  %v5717_v15 = vor.u32 %v6091_v30, %v5714_v0  ;;  %v5797_v10 = vor.u32 %v6111_v40, %v5794_v46  ;;  %v5778_v30 = vld [vmem:[%s8137_s15 + $0x1d8] sm:$0xf0]  ;;  %v6105_v0 = vld [vmem:[%s8137_s15 + $0x1c4] sm:$0xf] }
 0x7d5   :  { %v3833_v16 = vpack.c.bf16 %v3821_v52, %v3821_v52  ;;  %4331 = vmatpush.bf16.msra.mxu3 %v5761_v34  ;;  %v5752_v52 = vld [vmem:[%s8137_s15 + $0x1a0] sm:$0xf]  ;;  %v5781_v34 = vor.u32 %v6107_v20, %v5778_v30 }
 0x7d6   :  { %v3762_v63 = vpop.f32.mrf.mxu3  ;;  %v5753_v24 = vor.u32 %v6102_v37, %v5752_v52 }
 0x7d7   :  { %v3848_v31 = vunpack.c.l.b16 %v3833_v16  ;;  %v3763_v21 = vadd.f32 %v3762_v63, %v3724_v58 }
 0x7d8   :  { %v3796_v26 = vpop.f32.mrf.mxu0  ;;  %4382 = vmatpush.bf16.msrb.mxu2 %v5725_v50 }
 0x7d9   :  { %v3797_v28 = vadd.f32 %v3796_v26, %v3758_v13  ;;  %v3850_v25 = vpack.c.b16 %v3848_v31, %v3848_v31  ;;  %v5709_v26 = vor.u32 %v6089_v19, %v5706_v18  ;;  %4332 = vmatpush.bf16.msra.mxu3 %v5753_v24  ;;  %v3731_v36 = vpop.f32.mrf.mxu2  ;;  %v3729_v31 = vadd.f32 %v7746_v38, %v3728_v14 }
 0x7da   :  { %v3732_v58 = vadd.f32 %v7746_v38, %v3731_v36 }
 0x7db   :  { %v3822_v33 = vmax.f32 %v3797_v28, 0.0 }
 0x7dc   :  { %4383 = vmatpush.bf16.msrb.mxu2 %v5717_v15 }
 0x7dd   :  { %v3834_v8 = vpack.c.bf16 %v3822_v33, %v3822_v33  ;;  %4333 = vmatpush.bf16.msra.mxu3 %v5745_v12  ;;  %v6085_v33 = vld [vmem:[%s8137_s15 + $0x124] sm:$0xf]  ;;  %v5757_v12 = vor.u32 %v6101_v54, %v5754_v45 }
 0x7de   :  { %v3765_v3 = vpop.f32.mrf.mxu3 }
 0x7df   :  { %v3856_v59 = vunpack.c.l.b16 %v3834_v8  ;;  %v3766_v13 = vadd.f32 %v3765_v3, %v3727_v61 }
 0x7e0   :  { %v3799_v47 = vpop.f32.mrf.mxu0  ;;  %4384 = vmatpush.bf16.msrb.mxu2 %v5709_v26  ;;  %v5762_v26 = vld [vmem:[%s8137_s15 + $0x1b8] sm:$0xf0] }
 0x7e1   :  { %v3800_v6 = vadd.f32 %v3799_v47, %v3761_v29  ;;  %v6098_v29 = vld [vmem:[%s8137_s15 + $0x184] sm:$0xf0]  ;;  %v5690_v47 = vld [vmem:[%s8137_s15 + $0x128] sm:$0xf0]  ;;  %v3733_v9 = vpop.f32.mrf.mxu2 }
 0x7e2   :  { %v5737_v35 = vor.u32 %v6098_v29, %v5736_v32  ;;  %v3734_v52 = vadd.f32 %v7746_v38, %v3733_v9  ;;  %v6099_v32 = vld [vmem:[%s8137_s15 + $0x194] sm:$0xf]  ;;  %v5746_v29 = vld [vmem:[%s8137_s15 + $0x198] sm:$0xf0] }
 0x7e3   :  { %v3823_v39 = vmax.f32 %v3800_v6, 0.0  ;;  %4286 = vmatmul.bf16.gmra.mxu2 %v3850_v25  ;;  %4358 = vmatmul.bf16.gmra.mxu0 %v3850_v25  ;;  %v5693_v25 = vor.u32 %v6085_v33, %v5690_v47  ;;  %v5738_v47 = vld [vmem:[%s8137_s15 + $0x188] sm:$0xf0] }
 0x7e4   :  { %4385 = vmatpush.bf16.msrb.mxu2 %v5701_v7  ;;  %4334 = vmatpush.bf16.msra.mxu3 %v5737_v35  ;;  %v6097_v35 = vld [vmem:[%s8137_s15 + $0x184] sm:$0xf] }
 0x7e5   :  { %v3835_v5 = vpack.c.bf16 %v3823_v39, %v3823_v39 }
 0x7e6   :  { %v3767_v11 = vpop.f32.mrf.mxu3 }
 0x7e7   :  { %v3857_v48 = vunpack.c.l.b16 %v3835_v5  ;;  %v3768_v49 = vadd.f32 %v3767_v11, %v3729_v31  ;;  %v5770_v11 = vld [vmem:[%s8137_s15 + $0x1c8] sm:$0xf0] }
 0x7e8   :  { %v3801_v23 = vpop.f32.mrf.mxu0  ;;  %4386 = vmatpush.bf16.msrb.mxu2 %v5693_v25 }
 0x7e9   :  { %v3859_v42 = vpack.c.b16 %v3857_v48, %v3856_v59  ;;  %v3802_v60 = vadd.f32 %v3801_v23, %v3763_v21  ;;  %v6109_v21 = vld [vmem:[%s8137_s15 + $0x1e4] sm:$0xf]  ;;  %v5786_v23 = vld [vmem:[%s8137_s15 + $0x1e8] sm:$0xf0]  ;;  %v3736_v37 = vpop.f32.mrf.mxu2 }
 0x7ea   :  { %v3737_v43 = vadd.f32 %v7746_v38, %v3736_v37 }
 0x7eb   :  { %4299 = vmatmul.bf16.vlgmr.msrb.gmra.mxu3 %v3859_v42  ;;  %4371 = vmatmul.bf16.vlgmr.msrb.gmra.mxu1 %v3859_v42  ;;  %v3824_v41 = vmax.f32 %v3802_v60, 0.0  ;;  %v5789_v60 = vor.u32 %v6109_v21, %v5786_v23  ;;  %v3947_v21 = vld [vmem:[%s8138_s16] sm:$0x3] }
 0x7ec   :  { %4387 = vmatpush.bf16.msrb.mxu2 %v5685_v22  ;;  %4399 = vmatpush.bf16.msrb.mxu3 %v5797_v10 }
 0x7ed   :  { %v3836_v16 = vpack.c.bf16 %v3824_v41, %v3824_v41  ;;  %v5773_v41 = vor.u32 %v6105_v0, %v5770_v11 }
 0x7ee   :  { %v3770_v1 = vpop.f32.mrf.mxu3 }
 0x7ef   :  { %v3858_v27 = vunpack.c.l.b16 %v3836_v16  ;;  %v3771_v59 = vadd.f32 %v3770_v1, %v3732_v58 }
 0x7f0   :  { %v3804_v63 = vpop.f32.mrf.mxu0  ;;  %4388 = vmatpush.bf16.msrb.mxu2 %v5677_v2  ;;  %4400 = vmatpush.bf16.msrb.mxu3 %v5789_v60 }
 0x7f1   :  { %v3805_v28 = vadd.f32 %v3804_v63, %v3766_v13  ;;  %v3860_v6 = vpack.c.b16 %v3858_v27, %v3858_v27  ;;  %v6103_v63 = vld [vmem:[%s8137_s15 + $0x1b4] sm:$0xf]  ;;  %v3738_v1 = vpop.f32.mrf.mxu2 }
 0x7f2   :  { %v5765_v16 = vor.u32 %v6103_v63, %v5762_v26  ;;  %v3739_v25 = vadd.f32 %v7746_v38, %v3738_v1  ;;  %v6120_v1 = vld [vmem:[%s8142_s19 + $0x38] sm:$0xff] }
 0x7f3   :  { %v3825_v44 = vmax.f32 %v3805_v28, 0.0  ;;  %4561 = vmatpush.bf16.msra.mxu0 %v6120_v1 }
 0x7f4   :  { %4401 = vmatpush.bf16.msrb.mxu3 %v5781_v34 }
 0x7f5   :  { %v3837_v8 = vpack.c.bf16 %v3825_v44, %v3825_v44  ;;  %v5749_v44 = vor.u32 %v6099_v32, %v5746_v29 }
 0x7f6   :  { %v3772_v50 = vpop.f32.mrf.mxu3 }
 0x7f7   :  { %v3866_v48 = vunpack.c.l.b16 %v3837_v8  ;;  %v3773_v61 = vadd.f32 %v3772_v50, %v3734_v52 }
 0x7f8   :  { %v3806_v53 = vpop.f32.mrf.mxu0  ;;  %4402 = vmatpush.bf16.msrb.mxu3 %v5773_v41 }
 0x7f9   :  { %v3807_v3 = vadd.f32 %v3806_v53, %v3768_v49 }
 0x7fb   :  { %v3826_v39 = vmax.f32 %v3807_v3, 0.0  ;;  %4304 = vmatmul.bf16.gmra.mxu3 %v3860_v6  ;;  %4376 = vmatmul.bf16.gmra.mxu1 %v3860_v6  ;;  %v5741_v3 = vor.u32 %v6097_v35, %v5738_v47 }
 0x7fc   :  { %4403 = vmatpush.bf16.msrb.mxu3 %v5765_v16 }
 0x7fd   :  { %v3838_v5 = vpack.c.bf16 %v3826_v39, %v3826_v39 }
 0x7fe   :  { %v3775_v18 = vpop.f32.mrf.mxu3 }
 0x7ff   :  { %v3867_v57 = vunpack.c.l.b16 %v3838_v5  ;;  %v3776_v56 = vadd.f32 %v3775_v18, %v3737_v43 }
 0x800   :  { %v3809_v42 = vpop.f32.mrf.mxu0  ;;  %4404 = vmatpush.bf16.msrb.mxu3 %v5757_v12 }
 0x801   :  { %v3869_v14 = vpack.c.b16 %v3867_v57, %v3866_v48  ;;  %v3810_v51 = vadd.f32 %v3809_v42, %v3771_v59  ;;  %v3950_v48 = vperm.slane %v3947_v21, 1  ;;  %v3949_v42 = vperm.slane %v3947_v21, 0 }
 0x803   :  { %4317 = vmatmul.bf16.vlgmr.msra.gmra.mxu2 %v3869_v14  ;;  %v3827_v15 = vmax.f32 %v3810_v51, 0.0 }
 0x804   :  { %4405 = vmatpush.bf16.msrb.mxu3 %v5749_v44  ;;  %v6118_v44 = vld [vmem:[%s8142_s19 + $0x28] sm:$0xff] }
 0x805   :  { %v3839_v24 = vpack.c.bf16 %v3827_v15, %v3827_v15 }
 0x806   :  { %v3777_v53 = vpop.f32.mrf.mxu3 }
 0x807   :  { %v3868_v28 = vunpack.c.l.b16 %v3839_v24  ;;  %v3778_v17 = vadd.f32 %v3777_v53, %v3739_v25  ;;  %v6117_v53 = vld [vmem:[%s8142_s19 + $0x20] sm:$0xff] }
 0x808   :  { %v3811_v19 = vpop.f32.mrf.mxu0  ;;  %4406 = vmatpush.bf16.msrb.mxu3 %v5741_v3 }
 0x809   :  { %v3812_v13 = vadd.f32 %v3811_v19, %v3773_v61  ;;  %v3870_v31 = vpack.c.b16 %v3868_v28, %v3868_v28 }
 0x80b   :  { %v3828_v36 = vmax.f32 %v3812_v13, 0.0 }
 0x80d   :  { %v3840_v33 = vpack.c.bf16 %v3828_v36, %v3828_v36 }
 0x80f   :  { %v3876_v55 = vunpack.c.l.b16 %v3840_v33 }
 0x810   :  { %v3814_v7 = vpop.f32.mrf.mxu0 }
 0x811   :  { %v3815_v27 = vadd.f32 %v3814_v7, %v3776_v56 }
 0x813   :  { %v3829_v49 = vmax.f32 %v3815_v27, 0.0  ;;  %4322 = vmatmul.bf16.gmra.mxu2 %v3870_v31 }
 0x815   :  { %v3841_v6 = vpack.c.bf16 %v3829_v49, %v3829_v49  ;;  %v6119_v49 = vld [vmem:[%s8142_s19 + $0x30] sm:$0xff] }
 0x816   :  { %4562 = vmatpush.bf16.msra.mxu0 %v6119_v49 }
 0x817   :  { %v3877_v40 = vunpack.c.l.b16 %v3841_v6  ;;  %v6116_v6 = vld [vmem:[%s8142_s19 + $0x18] sm:$0xff] }
 0x818   :  { %v3816_v8 = vpop.f32.mrf.mxu0 }
 0x819   :  { %v3879_v39 = vpack.c.b16 %v3877_v40, %v3876_v55  ;;  %v3817_v22 = vadd.f32 %v3816_v8, %v3778_v17  ;;  %v6115_v8 = vld [vmem:[%s8142_s19 + $0x10] sm:$0xff] }
 0x81a   :  { %4563 = vmatpush.bf16.msra.mxu0 %v6118_v44 }
 0x81b   :  { %4335 = vmatmul.bf16.vlgmr.msra.gmra.mxu3 %v3879_v39  ;;  %v3830_v46 = vmax.f32 %v3817_v22, 0.0  ;;  %v6114_v22 = vld [vmem:[%s8142_s19 + $0x8] sm:$0xff] }
 0x81d   :  { %v3842_v10 = vpack.c.bf16 %v3830_v46, %v3830_v46 }
 0x81e   :  { %4564 = vmatpush.bf16.msra.mxu0 %v6117_v53 }
 0x81f   :  { %v3878_v58 = vunpack.c.l.b16 %v3842_v10 }
 0x821   :  { %v3880_v5 = vpack.c.b16 %v3878_v58, %v3878_v58  ;;  %v6113_v58 = vld [vmem:[%s8142_s19] sm:$0xff] }
 0x822   :  { %4565 = vmatpush.bf16.msra.mxu0 %v6116_v6 }
 0x823   :  { %4389 = vmatmul.bf16.vlgmr.msrb.gmra.mxu2 %v3869_v14 }
 0x826   :  { %4566 = vmatpush.bf16.msra.mxu0 %v6115_v8  ;;  %v6127_v8 = vld [vmem:[%s8144_s21 + $0x30] sm:$0xff] }
 0x82a   :  { %4567 = vmatpush.bf16.msra.mxu0 %v6114_v22  ;;  %v6124_v22 = vld [vmem:[%s8144_s21 + $0x18] sm:$0xff] }
 0x82b   :  { %4340 = vmatmul.bf16.gmra.mxu3 %v3880_v5 }
 0x82e   :  { %4568 = vmatpush.bf16.msra.mxu0 %v6113_v58 }
 0x833   :  { %4394 = vmatmul.bf16.gmra.mxu2 %v3870_v31 }
 0x83b   :  { %4407 = vmatmul.bf16.vlgmr.msrb.gmra.mxu3 %v3879_v39 }
 0x84b   :  { %4412 = vmatmul.bf16.gmra.mxu3 %v3880_v5 }
 0x850   :  { %v4354_v38 = vpop.f32.mrf.mxu0 }
 0x851   :  { %v4355_v2 = vadd.f32 %v4354_v38, %v3950_v48 }
 0x856   :  { %v4282_v9 = vpop.f32.mrf.mxu2 }
 0x857   :  { %v4283_v14 = vadd.f32 %v4282_v9, %v3949_v42 }
 0x858   :  { %v4356_v62 = vpop.f32.mrf.mxu0 }
 0x859   :  { %v4357_v30 = vadd.f32 %v4356_v62, %v3950_v48 }
 0x85e   :  { %v4284_v4 = vpop.f32.mrf.mxu2 }
 0x85f   :  { %v4285_v15 = vadd.f32 %v4284_v4, %v3949_v42 }
 0x860   :  { %v4359_v59 = vpop.f32.mrf.mxu0 }
 0x861   :  { %v4360_v52 = vadd.f32 %v4359_v59, %v3950_v48 }
 0x866   :  { %v4287_v57 = vpop.f32.mrf.mxu2 }
 0x867   :  { %v4288_v24 = vadd.f32 %v4287_v57, %v3949_v42 }
 0x868   :  { %v4361_v23 = vpop.f32.mrf.mxu0  ;;  %v4372_v50 = vpop.f32.mrf.mxu1 }
 0x869   :  { %v4373_v60 = vadd.f32 %v4372_v50, %v4355_v2 }
 0x86e   :  { %v4289_v51 = vpop.f32.mrf.mxu2  ;;  %v4300_v20 = vpop.f32.mrf.mxu3 }
 0x86f   :  { %v4301_v34 = vadd.f32 %v4300_v20, %v4283_v14 }
 0x870   :  { %v4374_v0 = vpop.f32.mrf.mxu1 }
 0x871   :  { %v4375_v11 = vadd.f32 %v4374_v0, %v4357_v30 }
 0x876   :  { %v4302_v41 = vpop.f32.mrf.mxu3 }
 0x877   :  { %v4303_v37 = vadd.f32 %v4302_v41, %v4285_v15 }
 0x878   :  { %v4377_v19 = vpop.f32.mrf.mxu1 }
 0x879   :  { %v4378_v61 = vadd.f32 %v4377_v19, %v4360_v52 }
 0x87e   :  { %v4305_v18 = vpop.f32.mrf.mxu3 }
 0x87f   :  { %v4306_v63 = vadd.f32 %v4305_v18, %v4288_v24 }
 0x880   :  { %v4379_v26 = vpop.f32.mrf.mxu1 }
 0x881   :  { %v6135_v26 = vld [vmem:[%s8139_s17] ss:$0 sm:$0xff] }
 0x886   :  { %v4307_v13 = vpop.f32.mrf.mxu3  ;;  %v4318_v16 = vpop.f32.mrf.mxu2 }
 0x887   :  { %v4319_v54 = vadd.f32 %v4318_v16, %v4301_v34 }
 0x88e   :  { %v4320_v45 = vpop.f32.mrf.mxu2 }
 0x88f   :  { %v8009_v43 = vadd.f32 %v4320_v45, %v4303_v37 }
 0x896   :  { %v4323_v28 = vpop.f32.mrf.mxu2 }
 0x897   :  { %v4324_v12 = vadd.f32 %v4323_v28, %v4306_v63 }
 0x89e   :  { %v4325_v56 = vpop.f32.mrf.mxu2  ;;  %v4336_v36 = vpop.f32.mrf.mxu3 }
 0x89f   :  { %v8011_v7 = vadd.f32 %v4336_v36, %v4319_v54 }
 0x8a6   :  { %v8013_v31 = vpop.f32.mrf.mxu3  ;;  %v4390_v27 = vpop.f32.mrf.mxu2 }
 0x8a7   :  { %v4391_v25 = vadd.f32 %v4390_v27, %v4373_v60  ;;  %v4339_v54 = vadd.f32 %v8013_v31, %v8009_v43  ;;  %v6136_v27 = vld [vmem:[%s8140_s18] ss:$0 sm:$0xff] }
 0x8ae   :  { %v4341_v32 = vpop.f32.mrf.mxu3  ;;  %v4392_v29 = vpop.f32.mrf.mxu2 }
 0x8af   :  { %v8018_v33 = vadd.f32 %v4341_v32, %v4324_v12  ;;  %v4393_v39 = vadd.f32 %v4392_v29, %v4375_v11 }
 0x8b6   :  { %v4343_v35 = vpop.f32.mrf.mxu3  ;;  %v4395_v47 = vpop.f32.mrf.mxu2 }
 0x8b7   :  { %v4396_v62 = vadd.f32 %v4395_v47, %v4378_v61 }
 0x8be   :  { %v4397_v3 = vpop.f32.mrf.mxu2  ;;  %v4408_v17 = vpop.f32.mrf.mxu3 }
 0x8bf   :  { %v4409_v55 = vadd.f32 %v4408_v17, %v4391_v25 }
 0x8c1   :  { %v5798_v40 = vmul.f32 -1.442695, %v4409_v55 }
 0x8c3   :  { %6139 = vpow2.f32 %v5798_v40  ;;  %v6128_v40 = vld [vmem:[%s8144_s21 + $0x38] sm:$0xff] }
 0x8c4   :  { %4706 = vmatpush.bf16.msra.mxu1 %v6128_v40  ;;  %v4724_v40 = vld [vmem:[%s8145_s23] sm:$0xff] }
 0x8c6   :  { %v4410_v46 = vpop.f32.mrf.mxu3 }
 0x8c7   :  { %v4411_v10 = vadd.f32 %v4410_v46, %v4393_v39  ;;  %v6126_v39 = vld [vmem:[%s8144_s21 + $0x28] sm:$0xff]  ;;  %v6137_v46 = vld [vmem:[%s8141_s20] ss:$0 sm:$0xff] }
 0x8c8   :  { %4707 = vmatpush.bf16.msra.mxu1 %v6127_v8 }
 0x8c9   :  { %v6140_v5 = vpop.eup %6139  ;;  %v5799_v38 = vmul.f32 -1.442695, %v4411_v10  ;;  %v6123_v10 = vld [vmem:[%s8144_s21 + $0x10] sm:$0xff] }
 0x8ca   :  { %v4426_v9 = vadd.f32 1.0, %v6140_v5 }
 0x8cb   :  { %6141 = vpow2.f32 %v5799_v38  ;;  %v6122_v38 = vld [vmem:[%s8144_s21 + $0x8] sm:$0xff] }
 0x8cc   :  { %6143 = vrcp.f32 %v4426_v9  ;;  %v4440_v42 = vand.u32 2147483648, %v4426_v9  ;;  %v4438_v51 = vand.u32 2147483647, %v4426_v9  ;;  %vm4434_vm3 = vweird.f32 %v4426_v9  ;;  %4708 = vmatpush.bf16.msra.mxu1 %v6126_v39  ;;  %v4725_v39 = vld [vmem:[%s8145_s23 + $0x8] sm:$0xff] }
 0x8ce   :  { %v4413_v4 = vpop.f32.mrf.mxu3  ;;  %v4441_v0 = vor.u32 1.1754944e-38, %v4440_v42  ;;  %vm4439_vm5 = vcmp.eq.f32.partialorder %v4438_v51, 8.507059e+37 }
 0x8cf   :  { %v4414_v21 = vadd.f32 %v4413_v4, %v4396_v62  ;;  %v6121_v62 = vld [vmem:[%s8144_s21] sm:$0xff] }
 0x8d1   :  { %v6142_v59 = vpop.eup %6141  ;;  %v5800_v48 = vmul.f32 -1.442695, %v4414_v21 }
 0x8d2   :  { %v6144_v57 = vpop.eup %6143  ;;  %v4427_v2 = vadd.f32 1.0, %v6142_v59 }
 0x8d3   :  { %v4430_v23 = vmul.f32 %v6144_v57, %v4426_v9  ;;  %6145 = vpow2.f32 %v5800_v48  ;;  %vm4435_vm2 = vweird.f32 %v6144_v57 }
 0x8d4   :  { %6147 = vrcp.f32 %v4427_v2  ;;  %vm4436_vm4 = vmor %vm4434_vm3, %vm4435_vm2  ;;  %v4455_v61 = vand.u32 2147483648, %v4427_v2  ;;  %v4453_v18 = vand.u32 2147483647, %v4427_v2  ;;  %vm4449_vm7 = vweird.f32 %v4427_v2 }
 0x8d5   :  { %v4431_v50 = vsub.f32 1.0, %v4430_v23 }
 0x8d6   :  { %v4415_v60 = vpop.f32.mrf.mxu3  ;;  %v4456_v16 = vor.u32 1.1754944e-38, %v4455_v61  ;;  %vm4454_vm9 = vcmp.eq.f32.partialorder %v4453_v18, 8.507059e+37 }
 0x8d7   :  { %v4432_v14 = vmul.f32 %v6144_v57, %v4431_v50 }
 0x8d9   :  { %v6146_v20 = vpop.eup %6145  ;;  %v4433_v30 = vadd.f32 %v6144_v57, %v4432_v14 }
 0x8da   :  { %v6148_v34 = vpop.eup %6147  ;;  %v4428_v11 = vadd.f32 1.0, %v6146_v20 }
 0x8db   :  { %v4437_v15 = vsel %vm4436_vm4, %v6144_v57, %v4433_v30  ;;  %v4445_v41 = vmul.f32 %v6148_v34, %v4427_v2  ;;  %vm4450_vm6 = vweird.f32 %v6148_v34 }
 0x8dc   :  { %v4442_v52 = vsel %vm4439_vm5, %v4441_v0, %v4437_v15  ;;  %6149 = vrcp.f32 %v4428_v11  ;;  %vm4451_vm8 = vmor %vm4449_vm7, %vm4450_vm6  ;;  %v4470_v1 = vand.u32 2147483648, %v4428_v11  ;;  %v4468_v49 = vand.u32 2147483647, %v4428_v11 }
 0x8dd   :  { %v4446_v37 = vsub.f32 1.0, %v4445_v41  ;;  %v4474_v19 = vmul.f32 %v4442_v52, %v8011_v7  ;;  %vm4464_vm11 = vweird.f32 %v4428_v11 }
 0x8de   :  { %v4471_v43 = vor.u32 1.1754944e-38, %v4470_v1  ;;  %vm4469_vm13 = vcmp.eq.f32.partialorder %v4468_v49, 8.507059e+37 }
 0x8df   :  { %v4447_v24 = vmul.f32 %v6148_v34, %v4446_v37  ;;  %v4481_v7 = vmul.f32 %v6135_v26, %v4474_v19 }
 0x8e1   :  { %v4448_v63 = vadd.f32 %v6148_v34, %v4447_v24  ;;  %v4488_v44 = vadd.f32 %v6136_v27, %v4481_v7 }
 0x8e2   :  { %v6150_v13 = vpop.eup %6149 }
 0x8e3   :  { %v4452_v45 = vsel %vm4451_vm8, %v6148_v34, %v4448_v63  ;;  %v4460_v28 = vmul.f32 %v6150_v13, %v4428_v11  ;;  %vm4465_vm10 = vweird.f32 %v6150_v13 }
 0x8e4   :  { %v4457_v12 = vsel %vm4454_vm9, %v4456_v16, %v4452_v45  ;;  %vm4466_vm12 = vmor %vm4464_vm11, %vm4465_vm10  ;;  %vm4730_vm10 = vcmask 195584  }
 0x8e5   :  { %v4461_v56 = vsub.f32 1.0, %v4460_v28  ;;  %v4475_v36 = vmul.f32 %v4457_v12, %v4339_v54 }
 0x8e7   :  { %v4482_v32 = vmul.f32 %v6135_v26, %v4475_v36  ;;  %v4462_v29 = vmul.f32 %v6150_v13, %v4461_v56 }
 0x8e9   :  { %v4489_v35 = vadd.f32 %v6136_v27, %v4482_v32  ;;  %v4463_v47 = vadd.f32 %v6150_v13, %v4462_v29 }
 0x8eb   :  { %v4491_v31 = vpack.c.bf16 %v4489_v35, %v4488_v44  ;;  %v4467_v53 = vsel %vm4466_vm12, %v6150_v13, %v4463_v47 }
 0x8ec   :  { %v4472_v25 = vsel %vm4469_vm13, %v4471_v43, %v4467_v53 }
 0x8ed   :  { %4569 = vmatmul.bf16.vlgmr.msra.gmra.mxu0 %v4491_v31  ;;  %v4476_v6 = vmul.f32 %v4472_v25, %v8018_v33  ;;  %v6125_v33 = vld [vmem:[%s8144_s21 + $0x20] sm:$0xff] }
 0x8ee   :  { %4709 = vmatpush.bf16.msra.mxu1 %v6125_v33  ;;  %v6138_v25 = vld [vmem:[%s8143_s22] ss:$0 sm:$0xff]  ;;  %v4726_v33 = vld [vmem:[%s8145_s23 + $0x10] sm:$0xff] }
 0x8ef   :  { %v4483_v3 = vmul.f32 %v6135_v26, %v4476_v6 }
 0x8f1   :  { %v4490_v17 = vadd.f32 %v6136_v27, %v4483_v3 }
 0x8f2   :  { %4710 = vmatpush.bf16.msra.mxu1 %v6124_v22 }
 0x8f3   :  { %v4492_v55 = vpack.c.bf16 %v4490_v17, %v4490_v17 }
 0x8f6   :  { %4711 = vmatpush.bf16.msra.mxu1 %v6123_v10  ;;  %v4728_v10 = vld [vmem:[%s8146_s24 + $0x8] sm:$0xff] }
 0x8fa   :  { %4712 = vmatpush.bf16.msra.mxu1 %v6122_v38 }
 0x8fd   :  { %4574 = vmatmul.bf16.gmra.mxu0 %v4492_v55 }
 0x8fe   :  { %4713 = vmatpush.bf16.msra.mxu1 %v6121_v62 }
 0x96a   :  { %v4570_v58 = vpop.f32.mrf.mxu0 }
 0x96b   :  { %v4571_v5 = vadd.f32 %v6137_v46, %v4570_v58  ;;  %v4727_v58 = vld [vmem:[%s8146_s24] sm:$0xff] }
 0x96d   :  { %v5833_v9 = vmul.f32 -1.442695, %v4571_v5  ;;  %v4729_v5 = vld [vmem:[%s8146_s24 + $0x10] sm:$0xff] }
 0x96f   :  { %6151 = vpow2.f32 %v5833_v9 }
 0x972   :  { %v4572_v4 = vpop.f32.mrf.mxu0 }
 0x973   :  { %v4573_v21 = vadd.f32 %v6137_v46, %v4572_v4 }
 0x975   :  { %v6152_v59 = vpop.eup %6151  ;;  %v5834_v48 = vmul.f32 -1.442695, %v4573_v21 }
 0x976   :  { %v4588_v57 = vadd.f32 1.0, %v6152_v59 }
 0x977   :  { %6153 = vpow2.f32 %v5834_v48 }
 0x978   :  { %6155 = vrcp.f32 %v4588_v57  ;;  %vm4596_vm15 = vweird.f32 %v4588_v57  ;;  %v4602_v19 = vand.u32 2147483648, %v4588_v57  ;;  %v4600_v18 = vand.u32 2147483647, %v4588_v57 }
 0x97a   :  { %v4575_v2 = vpop.f32.mrf.mxu0  ;;  %v4603_v54 = vor.u32 1.1754944e-38, %v4602_v19  ;;  %vm4601_vm4 = vcmp.eq.f32.partialorder %v4600_v18, 8.507059e+37 }
 0x97b   :  { %v4576_v23 = vadd.f32 %v6137_v46, %v4575_v2 }
 0x97d   :  { %v6154_v50 = vpop.eup %6153  ;;  %v5835_v42 = vmul.f32 -1.442695, %v4576_v23  ;;  %v4775_v23 = vld [vmem:[%s8147_s25] sm:$0xff] }
 0x97e   :  { %v6156_v60 = vpop.eup %6155  ;;  %v4589_v14 = vadd.f32 1.0, %v6154_v50 }
 0x97f   :  { %v4592_v51 = vmul.f32 %v6156_v60, %v4588_v57  ;;  %6157 = vpow2.f32 %v5835_v42  ;;  %vm4597_vm14 = vweird.f32 %v6156_v60  ;;  %v4776_v42 = vld [vmem:[%s8147_s25 + $0x8] sm:$0x3] }
 0x980   :  { %6159 = vrcp.f32 %v4589_v14  ;;  %v4617_v61 = vand.u32 2147483648, %v4589_v14  ;;  %v4615_v63 = vand.u32 2147483647, %v4589_v14  ;;  %vm4598_vm1 = vmor %vm4596_vm15, %vm4597_vm14  ;;  %vm4611_vm2 = vweird.f32 %v4589_v14 }
 0x981   :  { %v4593_v20 = vsub.f32 1.0, %v4592_v51 }
 0x982   :  { %v4577_v30 = vpop.f32.mrf.mxu0  ;;  %v4618_v45 = vor.u32 1.1754944e-38, %v4617_v61  ;;  %vm4616_vm5 = vcmp.eq.f32.partialorder %v4615_v63, 8.507059e+37 }
 0x983   :  { %v4594_v0 = vmul.f32 %v6156_v60, %v4593_v20  ;;  %v4778_v20 = vld [vmem:[%s8148_s26 + $0x8] sm:$0x3] }
 0x985   :  { %v6158_v34 = vpop.eup %6157  ;;  %v4595_v37 = vadd.f32 %v6156_v60, %v4594_v0 }
 0x986   :  { %v6160_v11 = vpop.eup %6159  ;;  %v4590_v15 = vadd.f32 1.0, %v6158_v34 }
 0x987   :  { %v4607_v41 = vmul.f32 %v6160_v11, %v4589_v14  ;;  %vm4612_vm0 = vweird.f32 %v6160_v11  ;;  %v4599_v26 = vsel %vm4598_vm1, %v6156_v60, %v4595_v37  ;;  %v4777_v60 = vld [vmem:[%s8148_s26] sm:$0xff] }
 0x988   :  { %6161 = vrcp.f32 %v4590_v15  ;;  %vm4613_vm3 = vmor %vm4611_vm2, %vm4612_vm0  ;;  %v4604_v56 = vsel %vm4601_vm4, %v4603_v54, %v4599_v26  ;;  %v4632_v29 = vand.u32 2147483648, %v4590_v15  ;;  %vm4626_vm7 = vweird.f32 %v4590_v15 }
 0x989   :  { %v4608_v52 = vsub.f32 1.0, %v4607_v41  ;;  %v4630_v49 = vand.u32 2147483647, %v4590_v15 }
 0x98a   :  { %v4633_v35 = vor.u32 1.1754944e-38, %v4632_v29 }
 0x98b   :  { %v4609_v24 = vmul.f32 %v6160_v11, %v4608_v52  ;;  %vm4631_vm9 = vcmp.eq.f32.partialorder %v4630_v49, 8.507059e+37 }
 0x98d   :  { %v4610_v13 = vadd.f32 %v6160_v11, %v4609_v24 }
 0x98e   :  { %v6162_v16 = vpop.eup %6161 }
 0x98f   :  { %v4614_v28 = vsel %vm4613_vm3, %v6160_v11, %v4610_v13  ;;  %v4622_v12 = vmul.f32 %v6162_v16, %v4590_v15  ;;  %vm4627_vm6 = vweird.f32 %v6162_v16 }
 0x990   :  { %v4619_v36 = vsel %vm4616_vm5, %v4618_v45, %v4614_v28  ;;  %vm4628_vm8 = vmor %vm4626_vm7, %vm4627_vm6 }
 0x991   :  { %v4636_v7 = vpack.c.bf16 %v4619_v36, %v4604_v56  ;;  %v4623_v27 = vsub.f32 1.0, %v4622_v12 }
 0x993   :  { %4714 = vmatmul.bf16.vlgmr.msra.gmra.mxu1 %v4636_v7  ;;  %v4624_v1 = vmul.f32 %v6162_v16, %v4623_v27 }
 0x995   :  { %v4625_v32 = vadd.f32 %v6162_v16, %v4624_v1 }
 0x997   :  { %v4629_v44 = vsel %vm4628_vm8, %v6162_v16, %v4625_v32 }
 0x998   :  { %v4634_v47 = vsel %vm4631_vm9, %v4633_v35, %v4629_v44 }
 0x999   :  { %v4637_v43 = vpack.c.bf16 %v4634_v47, %v4634_v47 }
 0x9a3   :  { %4719 = vmatmul.bf16.gmra.mxu1 %v4637_v43 }
 0xa10   :  { %v4715_v31 = vpop.f32.mrf.mxu1 }
 0xa11   :  { %v4716_v55 = vadd.f32 %v6138_v25, %v4715_v31 }
 0xa18   :  { %v4717_v53 = vpop.f32.mrf.mxu1 }
 0xa19   :  { %v4718_v17 = vadd.f32 %v6138_v25, %v4717_v53 }
 0xa20   :  { %v4720_v6 = vpop.f32.mrf.mxu1 }
 0xa21   :  { %v4721_v3 = vadd.f32 %v6138_v25, %v4720_v6 }
 0xa23   :  { %4753 = vmatpush.msra.mxu2 %v4721_v3 }
 0xa25   :  { %4754 = vmatpush.msra.mxu2 %v4718_v17 }
 0xa27   :  { %4755 = vmatpush.msra.mxu2 %v4716_v55 }
 0xa28   :  { %v4722_v8 = vpop.f32.mrf.mxu1  ;;  %5868 = vmatmul.msk.f32.vlgmr.msra.gmra.mxu2 %vm4730_vm10, %v4724_v40 }
 0xa30   :  { %5869 = vmatmul.msk.f32.gmra.mxu2 %vm4730_vm10, %v4725_v39 }
 0xa38   :  { %5870 = vmatmul.msk.f32.gmra.mxu2 %vm4730_vm10, %v4726_v33 }
 0xaab   :  { %v4757_v22 = vpop.f32.mrf.mxu2 }
 0xaac   :  { %v4758_v62 = vadd.f32 %v4757_v22, %v4727_v58 }
 0xaae   :  { %v4769_v48 = vmul.f32 0.01, %v4758_v62  ;;  %vm4766_vm13 = vcmp.ge.f32.partialorder %v4758_v62, 0.0 }
 0xab0   :  { %v4772_v50 = vsel %vm4766_vm13, %v4758_v62, %v4769_v48 }
 0xab3   :  { %v4760_v46 = vpop.f32.mrf.mxu2 }
 0xab4   :  { %v4761_v38 = vadd.f32 %v4760_v46, %v4728_v10 }
 0xab6   :  { %v4770_v21 = vmul.f32 0.01, %v4761_v38  ;;  %vm4767_vm12 = vcmp.ge.f32.partialorder %v4761_v38, 0.0 }
 0xab8   :  { %v4773_v2 = vsel %vm4767_vm12, %v4761_v38, %v4770_v21 }
 0xabb   :  { %v4763_v9 = vpop.f32.mrf.mxu2 }
 0xabc   :  { %v4764_v4 = vadd.f32 %v4763_v9, %v4729_v5 }
 0xabe   :  { %vm4768_vm11 = vcmp.ge.f32.partialorder %v4764_v4, 0.0  ;;  %v4771_v59 = vmul.f32 0.01, %v4764_v4 }
 0xac0   :  { %v4774_v57 = vsel %vm4768_vm11, %v4764_v4, %v4771_v59 }
 0xac1   :  { %4798 = vmatpush.msra.mxu3 %v4774_v57 }
 0xac3   :  { %4799 = vmatpush.msra.mxu3 %v4773_v2 }
 0xac5   :  { %4800 = vmatpush.msra.mxu3 %v4772_v50 }
 0xac6   :  { %5871 = vmatmul.msk.f32.vlgmr.msra.gmra.mxu3 %vm4730_vm10, %v4775_v23 }
 0xace   :  { %5872 = vmatmul.msk.f32.gmra.mxu3 %vm4730_vm10, %v4776_v42 }
 0xb49   :  { %v4802_v14 = vpop.f32.mrf.mxu3 }
 0xb4a   :  { %v4803_v51 = vadd.f32 %v4802_v14, %v4777_v60 }
 0xb4c   :  { %4808 = vst [vmem:[%s8149_s27] sm:$0xff] %v4803_v51 }
 0xb51   :  { %v4805_v30 = vpop.f32.mrf.mxu3 }
 0xb52   :  { %v4806_v34 = vadd.f32 %v4805_v30, %v4778_v20 }
 0xb54   :  { %4809 = vst [vmem:[%s8149_s27 + $0x8] sm:$0x3] %v4806_v34 }

</bundles_post_ra>
